<compile_context>
chip_gen: v7x
topology: tpu7x:2x2x1
jax: 0.10.0
libtpu: 0.0.40
codegen_flags: <defaults>
</compile_context>

<pallas_src>
import jax
import jax.numpy as jnp
from jax.experimental import pallas as pl
from jax.experimental.pallas import tpu as pltpu

# ImageNet normalization constants in the module's RGB order.
_MEAN_RGB = (0.485, 0.456, 0.406)
_STD_RGB = (0.229, 0.224, 0.225)


def _make_fused_kernel(C, H, W, Cout, scale_bgr, bias_bgr):
    """Fused preprocess + im2col + 3x3 conv + ReLU kernel for one image."""
    KH = KW = 3
    Wp = W + 2              # padded row width (conv padding = 1)
    M = H * Wp              # flattened spatial axis (row stride Wp; 2 garbage cols/row)
    L = (H + 2) * Wp + (KW - 1)   # flat scratch length so every K-slice stays in-bounds

    def kernel(x_ref, w_ref, b_ref, o_ref, xflat_ref, p_ref):
        # x_ref:     (1, C, H, W)    raw pixels 0..255, bf16, BGR planar
        # w_ref:     (Cout, C*9)     bf16, K ordered (c, dy, dx), Cin already BGR
        # b_ref:     (Cout, 1)       f32
        # o_ref:     (1, Cout, H, W) f32 (NCHW, so reshape(N,-1) outside is free)
        # xflat_ref: (C, L)          bf16 normalized + zero padded, flat per channel
        # p_ref:     (C*9, M)        bf16 patch matrix (K on sublanes, spatial on lanes)

        # Zero padding is applied in *normalized* space, exactly like the reference
        # (normalize first, then Conv2d(padding=1) zero-pads).
        xflat_ref[...] = jnp.zeros_like(xflat_ref)

        # Fused normalization: (x/255 - mean)/std == x*scale + bias (per channel).
        # TODO(synk): for large images (e.g. 640x640) these Python row loops should
        # become a row-tiled grid with halo DMA; fine for small/medium inputs.
        for c in range(C):
            xc = x_ref[0, c].astype(jnp.float32)                       # (H, W)
            xnc = (xc * scale_bgr[c] + bias_bgr[c]).astype(jnp.bfloat16)
            for h in range(H):
                xflat_ref[c, pl.ds((h + 1) * Wp + 1, W)] = xnc[h, :]

        # Build the patch matrix with contiguous lane slices (im2col stays in VMEM).
        k = 0
        for c in range(C):
            for dy in range(KH):
                for dx in range(KW):
                    p_ref[k, :] = xflat_ref[c, pl.ds(dy * Wp + dx, M)]
                    k += 1

        # Lane-dense MXU matmul: (Cout, K) @ (K, M) -> (Cout, M), f32 accumulation.
        acc = jnp.dot(w_ref[...], p_ref[...], preferred_element_type=jnp.float32)
        acc = jnp.maximum(acc + b_ref[...], 0.0)

        # Drop the 2 wrap-around columns per row and store NCHW directly.
        for h in range(H):
            o_ref[0, :, h, :] = acc[:, h * Wp: h * Wp + W]

    return kernel, L


def feature_extractor_forward(imgs_hwc_bgr, conv_weight, conv_bias):
    """imgs_hwc_bgr: (N, H, W, 3) raw pixels (cv2-style HWC, BGR order).

    conv_weight: (Cout, 3, 3, 3) with Cin in RGB order (PyTorch convention).
    conv_bias:   (Cout,)
    Returns (N, Cout*H*W) float32 == torch.reshape(net(imga), (N, -1)).
    """
    N, H, W, C = imgs_hwc_bgr.shape
    Cout = conv_weight.shape[0]

    # TODO(synk): letterbox (cv2 resize + border pad) has no clean Pallas equivalent;
    # inputs are assumed to already match self.input_size.

    # HWC -> planar CHW (channels kept in BGR order).  Raw 0..255 pixels are exact in
    # bf16, so this also halves the kernel's HBM read traffic.
    x = imgs_hwc_bgr.transpose(0, 3, 1, 2).astype(jnp.bfloat16)          # (N, C, H, W)

    # Fold the BGR->RGB flip into the weight's Cin axis (free) and flatten K in
    # (c, dy, dx) order to match the kernel's patch layout.
    w2d = conv_weight[:, ::-1, :, :].reshape(Cout, C * 9).astype(jnp.bfloat16)
    b2d = conv_bias.reshape(Cout, 1).astype(jnp.float32)

    # Per-channel normalization constants baked into the kernel, in BGR order.
    mean_bgr = _MEAN_RGB[::-1]
    std_bgr = _STD_RGB[::-1]
    scale_bgr = tuple(1.0 / (255.0 * s) for s in std_bgr)
    bias_bgr = tuple(-m / s for m, s in zip(mean_bgr, std_bgr))

    Wp = W + 2
    kernel, L = _make_fused_kernel(C, H, W, Cout, scale_bgr, bias_bgr)

    out = pl.pallas_call(
        kernel,
        out_shape=jax.ShapeDtypeStruct((N, Cout, H, W), jnp.float32),
        grid=(N,),
        in_specs=[
            pl.BlockSpec((1, C, H, W), lambda n: (n, 0, 0, 0)),
            pl.BlockSpec((Cout, C * 9), lambda n: (0, 0)),
            pl.BlockSpec((Cout, 1), lambda n: (0, 0)),
        ],
        out_specs=pl.BlockSpec((1, Cout, H, W), lambda n: (n, 0, 0, 0)),
        scratch_shapes=[
            pltpu.VMEM((C, L), jnp.bfloat16),          # normalized, padded, flat image
            pltpu.VMEM((C * 9, H * Wp), jnp.bfloat16),  # patch matrix (K x M)
        ],
        compiler_params=pltpu.CompilerParams(
            dimension_semantics=("parallel",)),         # shard images across cores
    )(x, w2d, b2d)

    return out.reshape(N, -1)


def _reference_forward(imgs_hwc_bgr, conv_weight, conv_bias):
    """Pure-JAX reference matching the PyTorch module (RGB pipeline, f32)."""
    mean = jnp.array(_MEAN_RGB, jnp.float32).reshape(1, 3, 1, 1)
    std = jnp.array(_STD_RGB, jnp.float32).reshape(1, 3, 1, 1)
    x = imgs_hwc_bgr.transpose(0, 3, 1, 2)[:, ::-1, :, :].astype(jnp.float32)
    x = (x / 255.0 - mean) / std
    y = jax.lax.conv_general_dilated(
        x, conv_weight.astype(jnp.float32), window_strides=(1, 1),
        padding=((1, 1), (1, 1)), dimension_numbers=("NCHW", "OIHW", "NCHW"))
    y = jnp.maximum(y + conv_bias.reshape(1, -1, 1, 1), 0.0)
    return y.reshape(imgs_hwc_bgr.shape[0], -1)


if __name__ == "__main__":
    key = jax.random.PRNGKey(0)
    k_img, k_w, k_b = jax.random.split(key, 3)

    N, H, W = 2, 16, 16
    Cin, Cout = 3, 8

    # Deterministic synthetic "images" with uint8-like pixel values (HWC, BGR).
    imgs = jax.random.randint(k_img, (N, H, W, Cin), 0, 256).astype(jnp.float32)

    # Deterministic synthetic conv stem parameters (the truncated model).
    conv_weight = jax.random.normal(k_w, (Cout, Cin, 3, 3), jnp.float32) * 0.1
    conv_bias = jax.random.normal(k_b, (Cout,), jnp.float32) * 0.1

    fet = jax.jit(feature_extractor_forward)(imgs, conv_weight, conv_bias)
    jax.block_until_ready(fet)

    assert fet.shape == (N, Cout * H * W), fet.shape
    assert fet.dtype == jnp.float32

    # Correctness check against the f32 reference (bf16 matmul operands => loose tol).
    ref = _reference_forward(imgs, conv_weight, conv_bias)
    max_err = float(jnp.max(jnp.abs(fet - ref)))
    assert max_err < 0.15, f"max abs error vs reference: {max_err}"

    print("KERNEL_OK")
</pallas_src>

<mosaic_0001>
module attributes {stable_mosaic.version = 11 : i64} {
  func.func @kernel(%arg0: i32, %arg1: memref<1x3x16x16xbf16, #tpu.memory_space<vmem>>, %arg2: memref<8x27xbf16, #tpu.memory_space<vmem>>, %arg3: memref<8x1xf32, #tpu.memory_space<vmem>>, %arg4: memref<1x8x16x16xf32, #tpu.memory_space<vmem>>, %arg5: memref<3x326xbf16, #tpu.memory_space<vmem>>, %arg6: memref<27x288xbf16, #tpu.memory_space<vmem>>) attributes {dimension_semantics = [#tpu.dimension_semantics<parallel>], iteration_bounds = array<i64: 2>, scalar_prefetch = 0 : i64, scratch_operands = 2 : i64, tpu.core_type = #tpu.core_type<tc>, window_params = [{transform_indices = @transform_0, window_bounds = array<i64: 1, 3, 16, 16>}, {pipeline_mode = #tpu.pipeline_mode<synchronous>, transform_indices = @transform_1, window_bounds = array<i64: 8, 27>}, {pipeline_mode = #tpu.pipeline_mode<synchronous>, transform_indices = @transform_2, window_bounds = array<i64: 8, 1>}, {transform_indices = @transform_3, window_bounds = array<i64: 1, 8, 16, 16>}]} {
    %cst = arith.constant 0.000000e+00 : bf16
    %0 = vector.broadcast %cst : bf16 to vector<3x326xbf16>
    %c0 = arith.constant 0 : index
    %c0_0 = arith.constant 0 : index
    %1 = vector.load %arg5[%c0, %c0_0] : memref<3x326xbf16, #tpu.memory_space<vmem>>, vector<3x326xbf16>
    tpu.vector_store %arg5[%c0, %c0_0], %0 {strides = array<i32>} : memref<3x326xbf16, #tpu.memory_space<vmem>>, vector<3x326xbf16>,
    %c0_1 = arith.constant 0 : index
    %c0_2 = arith.constant 0 : index
    %c0_3 = arith.constant 0 : index
    %c0_4 = arith.constant 0 : index
    %2 = vector.load %arg1[%c0_1, %c0_2, %c0_3, %c0_4] : memref<1x3x16x16xbf16, #tpu.memory_space<vmem>>, vector<1x1x16x16xbf16>
    %3 = vector.shape_cast %2 : vector<1x1x16x16xbf16> to vector<16x16xbf16>
    %4 = arith.extf %3 : vector<16x16xbf16> to vector<16x16xf32>
    %cst_5 = arith.constant 0.0174291935 : f32
    %5 = vector.broadcast %cst_5 : f32 to vector<16x16xf32>
    %6 = arith.mulf %4, %5 : vector<16x16xf32>
    %cst_6 = arith.constant -1.80444443 : f32
    %7 = vector.broadcast %cst_6 : f32 to vector<16x16xf32>
    %8 = arith.addf %6, %7 : vector<16x16xf32>
    %9 = arith.truncf %8 : vector<16x16xf32> to vector<16x16xbf16>
    %10 = vector.extract_strided_slice %9 {offsets = [0, 0], sizes = [1, 16], strides = [1, 1]} : vector<16x16xbf16> to vector<1x16xbf16>
    %11 = vector.shape_cast %10 : vector<1x16xbf16> to vector<16xbf16>
    %c0_7 = arith.constant 0 : index
    %c19 = arith.constant 19 : index
    %12 = vector.load %arg5[%c0_7, %c19] : memref<3x326xbf16, #tpu.memory_space<vmem>>, vector<1x16xbf16>
    %13 = vector.shape_cast %12 : vector<1x16xbf16> to vector<16xbf16>
    %14 = vector.shape_cast %11 : vector<16xbf16> to vector<1x16xbf16>
    tpu.vector_store %arg5[%c0_7, %c19], %14 {strides = array<i32>} : memref<3x326xbf16, #tpu.memory_space<vmem>>, vector<1x16xbf16>,
    %15 = vector.extract_strided_slice %9 {offsets = [1, 0], sizes = [1, 16], strides = [1, 1]} : vector<16x16xbf16> to vector<1x16xbf16>
    %16 = vector.shape_cast %15 : vector<1x16xbf16> to vector<16xbf16>
    %c0_8 = arith.constant 0 : index
    %c37 = arith.constant 37 : index
    %17 = vector.load %arg5[%c0_8, %c37] : memref<3x326xbf16, #tpu.memory_space<vmem>>, vector<1x16xbf16>
    %18 = vector.shape_cast %17 : vector<1x16xbf16> to vector<16xbf16>
    %19 = vector.shape_cast %16 : vector<16xbf16> to vector<1x16xbf16>
    tpu.vector_store %arg5[%c0_8, %c37], %19 {strides = array<i32>} : memref<3x326xbf16, #tpu.memory_space<vmem>>, vector<1x16xbf16>,
    %20 = vector.extract_strided_slice %9 {offsets = [2, 0], sizes = [1, 16], strides = [1, 1]} : vector<16x16xbf16> to vector<1x16xbf16>
    %21 = vector.shape_cast %20 : vector<1x16xbf16> to vector<16xbf16>
    %c0_9 = arith.constant 0 : index
    %c55 = arith.constant 55 : index
    %22 = vector.load %arg5[%c0_9, %c55] : memref<3x326xbf16, #tpu.memory_space<vmem>>, vector<1x16xbf16>
    %23 = vector.shape_cast %22 : vector<1x16xbf16> to vector<16xbf16>
    %24 = vector.shape_cast %21 : vector<16xbf16> to vector<1x16xbf16>
    tpu.vector_store %arg5[%c0_9, %c55], %24 {strides = array<i32>} : memref<3x326xbf16, #tpu.memory_space<vmem>>, vector<1x16xbf16>,
    %25 = vector.extract_strided_slice %9 {offsets = [3, 0], sizes = [1, 16], strides = [1, 1]} : vector<16x16xbf16> to vector<1x16xbf16>
    %26 = vector.shape_cast %25 : vector<1x16xbf16> to vector<16xbf16>
    %c0_10 = arith.constant 0 : index
    %c73 = arith.constant 73 : index
    %27 = vector.load %arg5[%c0_10, %c73] : memref<3x326xbf16, #tpu.memory_space<vmem>>, vector<1x16xbf16>
    %28 = vector.shape_cast %27 : vector<1x16xbf16> to vector<16xbf16>
    %29 = vector.shape_cast %26 : vector<16xbf16> to vector<1x16xbf16>
    tpu.vector_store %arg5[%c0_10, %c73], %29 {strides = array<i32>} : memref<3x326xbf16, #tpu.memory_space<vmem>>, vector<1x16xbf16>,
    %30 = vector.extract_strided_slice %9 {offsets = [4, 0], sizes = [1, 16], strides = [1, 1]} : vector<16x16xbf16> to vector<1x16xbf16>
    %31 = vector.shape_cast %30 : vector<1x16xbf16> to vector<16xbf16>
    %c0_11 = arith.constant 0 : index
    %c91 = arith.constant 91 : index
    %32 = vector.load %arg5[%c0_11, %c91] : memref<3x326xbf16, #tpu.memory_space<vmem>>, vector<1x16xbf16>
    %33 = vector.shape_cast %32 : vector<1x16xbf16> to vector<16xbf16>
    %34 = vector.shape_cast %31 : vector<16xbf16> to vector<1x16xbf16>
    tpu.vector_store %arg5[%c0_11, %c91], %34 {strides = array<i32>} : memref<3x326xbf16, #tpu.memory_space<vmem>>, vector<1x16xbf16>,
    %35 = vector.extract_strided_slice %9 {offsets = [5, 0], sizes = [1, 16], strides = [1, 1]} : vector<16x16xbf16> to vector<1x16xbf16>
    %36 = vector.shape_cast %35 : vector<1x16xbf16> to vector<16xbf16>
    %c0_12 = arith.constant 0 : index
    %c109 = arith.constant 109 : index
    %37 = vector.load %arg5[%c0_12, %c109] : memref<3x326xbf16, #tpu.memory_space<vmem>>, vector<1x16xbf16>
    %38 = vector.shape_cast %37 : vector<1x16xbf16> to vector<16xbf16>
    %39 = vector.shape_cast %36 : vector<16xbf16> to vector<1x16xbf16>
    tpu.vector_store %arg5[%c0_12, %c109], %39 {strides = array<i32>} : memref<3x326xbf16, #tpu.memory_space<vmem>>, vector<1x16xbf16>,
    %40 = vector.extract_strided_slice %9 {offsets = [6, 0], sizes = [1, 16], strides = [1, 1]} : vector<16x16xbf16> to vector<1x16xbf16>
    %41 = vector.shape_cast %40 : vector<1x16xbf16> to vector<16xbf16>
    %c0_13 = arith.constant 0 : index
    %c127 = arith.constant 127 : index
    %42 = vector.load %arg5[%c0_13, %c127] : memref<3x326xbf16, #tpu.memory_space<vmem>>, vector<1x16xbf16>
    %43 = vector.shape_cast %42 : vector<1x16xbf16> to vector<16xbf16>
    %44 = vector.shape_cast %41 : vector<16xbf16> to vector<1x16xbf16>
    tpu.vector_store %arg5[%c0_13, %c127], %44 {strides = array<i32>} : memref<3x326xbf16, #tpu.memory_space<vmem>>, vector<1x16xbf16>,
    %45 = vector.extract_strided_slice %9 {offsets = [7, 0], sizes = [1, 16], strides = [1, 1]} : vector<16x16xbf16> to vector<1x16xbf16>
    %46 = vector.shape_cast %45 : vector<1x16xbf16> to vector<16xbf16>
    %c0_14 = arith.constant 0 : index
    %c145 = arith.constant 145 : index
    %47 = vector.load %arg5[%c0_14, %c145] : memref<3x326xbf16, #tpu.memory_space<vmem>>, vector<1x16xbf16>
    %48 = vector.shape_cast %47 : vector<1x16xbf16> to vector<16xbf16>
    %49 = vector.shape_cast %46 : vector<16xbf16> to vector<1x16xbf16>
    tpu.vector_store %arg5[%c0_14, %c145], %49 {strides = array<i32>} : memref<3x326xbf16, #tpu.memory_space<vmem>>, vector<1x16xbf16>,
    %50 = vector.extract_strided_slice %9 {offsets = [8, 0], sizes = [1, 16], strides = [1, 1]} : vector<16x16xbf16> to vector<1x16xbf16>
    %51 = vector.shape_cast %50 : vector<1x16xbf16> to vector<16xbf16>
    %c0_15 = arith.constant 0 : index
    %c163 = arith.constant 163 : index
    %52 = vector.load %arg5[%c0_15, %c163] : memref<3x326xbf16, #tpu.memory_space<vmem>>, vector<1x16xbf16>
    %53 = vector.shape_cast %52 : vector<1x16xbf16> to vector<16xbf16>
    %54 = vector.shape_cast %51 : vector<16xbf16> to vector<1x16xbf16>
    tpu.vector_store %arg5[%c0_15, %c163], %54 {strides = array<i32>} : memref<3x326xbf16, #tpu.memory_space<vmem>>, vector<1x16xbf16>,
    %55 = vector.extract_strided_slice %9 {offsets = [9, 0], sizes = [1, 16], strides = [1, 1]} : vector<16x16xbf16> to vector<1x16xbf16>
    %56 = vector.shape_cast %55 : vector<1x16xbf16> to vector<16xbf16>
    %c0_16 = arith.constant 0 : index
    %c181 = arith.constant 181 : index
    %57 = vector.load %arg5[%c0_16, %c181] : memref<3x326xbf16, #tpu.memory_space<vmem>>, vector<1x16xbf16>
    %58 = vector.shape_cast %57 : vector<1x16xbf16> to vector<16xbf16>
    %59 = vector.shape_cast %56 : vector<16xbf16> to vector<1x16xbf16>
    tpu.vector_store %arg5[%c0_16, %c181], %59 {strides = array<i32>} : memref<3x326xbf16, #tpu.memory_space<vmem>>, vector<1x16xbf16>,
    %60 = vector.extract_strided_slice %9 {offsets = [10, 0], sizes = [1, 16], strides = [1, 1]} : vector<16x16xbf16> to vector<1x16xbf16>
    %61 = vector.shape_cast %60 : vector<1x16xbf16> to vector<16xbf16>
    %c0_17 = arith.constant 0 : index
    %c199 = arith.constant 199 : index
    %62 = vector.load %arg5[%c0_17, %c199] : memref<3x326xbf16, #tpu.memory_space<vmem>>, vector<1x16xbf16>
    %63 = vector.shape_cast %62 : vector<1x16xbf16> to vector<16xbf16>
    %64 = vector.shape_cast %61 : vector<16xbf16> to vector<1x16xbf16>
    tpu.vector_store %arg5[%c0_17, %c199], %64 {strides = array<i32>} : memref<3x326xbf16, #tpu.memory_space<vmem>>, vector<1x16xbf16>,
    %65 = vector.extract_strided_slice %9 {offsets = [11, 0], sizes = [1, 16], strides = [1, 1]} : vector<16x16xbf16> to vector<1x16xbf16>
    %66 = vector.shape_cast %65 : vector<1x16xbf16> to vector<16xbf16>
    %c0_18 = arith.constant 0 : index
    %c217 = arith.constant 217 : index
    %67 = vector.load %arg5[%c0_18, %c217] : memref<3x326xbf16, #tpu.memory_space<vmem>>, vector<1x16xbf16>
    %68 = vector.shape_cast %67 : vector<1x16xbf16> to vector<16xbf16>
    %69 = vector.shape_cast %66 : vector<16xbf16> to vector<1x16xbf16>
    tpu.vector_store %arg5[%c0_18, %c217], %69 {strides = array<i32>} : memref<3x326xbf16, #tpu.memory_space<vmem>>, vector<1x16xbf16>,
    %70 = vector.extract_strided_slice %9 {offsets = [12, 0], sizes = [1, 16], strides = [1, 1]} : vector<16x16xbf16> to vector<1x16xbf16>
    %71 = vector.shape_cast %70 : vector<1x16xbf16> to vector<16xbf16>
    %c0_19 = arith.constant 0 : index
    %c235 = arith.constant 235 : index
    %72 = vector.load %arg5[%c0_19, %c235] : memref<3x326xbf16, #tpu.memory_space<vmem>>, vector<1x16xbf16>
    %73 = vector.shape_cast %72 : vector<1x16xbf16> to vector<16xbf16>
    %74 = vector.shape_cast %71 : vector<16xbf16> to vector<1x16xbf16>
    tpu.vector_store %arg5[%c0_19, %c235], %74 {strides = array<i32>} : memref<3x326xbf16, #tpu.memory_space<vmem>>, vector<1x16xbf16>,
    %75 = vector.extract_strided_slice %9 {offsets = [13, 0], sizes = [1, 16], strides = [1, 1]} : vector<16x16xbf16> to vector<1x16xbf16>
    %76 = vector.shape_cast %75 : vector<1x16xbf16> to vector<16xbf16>
    %c0_20 = arith.constant 0 : index
    %c253 = arith.constant 253 : index
    %77 = vector.load %arg5[%c0_20, %c253] : memref<3x326xbf16, #tpu.memory_space<vmem>>, vector<1x16xbf16>
    %78 = vector.shape_cast %77 : vector<1x16xbf16> to vector<16xbf16>
    %79 = vector.shape_cast %76 : vector<16xbf16> to vector<1x16xbf16>
    tpu.vector_store %arg5[%c0_20, %c253], %79 {strides = array<i32>} : memref<3x326xbf16, #tpu.memory_space<vmem>>, vector<1x16xbf16>,
    %80 = vector.extract_strided_slice %9 {offsets = [14, 0], sizes = [1, 16], strides = [1, 1]} : vector<16x16xbf16> to vector<1x16xbf16>
    %81 = vector.shape_cast %80 : vector<1x16xbf16> to vector<16xbf16>
    %c0_21 = arith.constant 0 : index
    %c271 = arith.constant 271 : index
    %82 = vector.load %arg5[%c0_21, %c271] : memref<3x326xbf16, #tpu.memory_space<vmem>>, vector<1x16xbf16>
    %83 = vector.shape_cast %82 : vector<1x16xbf16> to vector<16xbf16>
    %84 = vector.shape_cast %81 : vector<16xbf16> to vector<1x16xbf16>
    tpu.vector_store %arg5[%c0_21, %c271], %84 {strides = array<i32>} : memref<3x326xbf16, #tpu.memory_space<vmem>>, vector<1x16xbf16>,
    %85 = vector.extract_strided_slice %9 {offsets = [15, 0], sizes = [1, 16], strides = [1, 1]} : vector<16x16xbf16> to vector<1x16xbf16>
    %86 = vector.shape_cast %85 : vector<1x16xbf16> to vector<16xbf16>
    %c0_22 = arith.constant 0 : index
    %c289 = arith.constant 289 : index
    %87 = vector.load %arg5[%c0_22, %c289] : memref<3x326xbf16, #tpu.memory_space<vmem>>, vector<1x16xbf16>
    %88 = vector.shape_cast %87 : vector<1x16xbf16> to vector<16xbf16>
    %89 = vector.shape_cast %86 : vector<16xbf16> to vector<1x16xbf16>
    tpu.vector_store %arg5[%c0_22, %c289], %89 {strides = array<i32>} : memref<3x326xbf16, #tpu.memory_space<vmem>>, vector<1x16xbf16>,
    %c0_23 = arith.constant 0 : index
    %c1 = arith.constant 1 : index
    %c0_24 = arith.constant 0 : index
    %c0_25 = arith.constant 0 : index
    %90 = vector.load %arg1[%c0_23, %c1, %c0_24, %c0_25] : memref<1x3x16x16xbf16, #tpu.memory_space<vmem>>, vector<1x1x16x16xbf16>
    %91 = vector.shape_cast %90 : vector<1x1x16x16xbf16> to vector<16x16xbf16>
    %92 = arith.extf %91 : vector<16x16xbf16> to vector<16x16xf32>
    %cst_26 = arith.constant 0.0175070036 : f32
    %93 = vector.broadcast %cst_26 : f32 to vector<16x16xf32>
    %94 = arith.mulf %92, %93 : vector<16x16xf32>
    %cst_27 = arith.constant -2.03571439 : f32
    %95 = vector.broadcast %cst_27 : f32 to vector<16x16xf32>
    %96 = arith.addf %94, %95 : vector<16x16xf32>
    %97 = arith.truncf %96 : vector<16x16xf32> to vector<16x16xbf16>
    %98 = vector.extract_strided_slice %97 {offsets = [0, 0], sizes = [1, 16], strides = [1, 1]} : vector<16x16xbf16> to vector<1x16xbf16>
    %99 = vector.shape_cast %98 : vector<1x16xbf16> to vector<16xbf16>
    %c1_28 = arith.constant 1 : index
    %c19_29 = arith.constant 19 : index
    %100 = vector.load %arg5[%c1_28, %c19_29] : memref<3x326xbf16, #tpu.memory_space<vmem>>, vector<1x16xbf16>
    %101 = vector.shape_cast %100 : vector<1x16xbf16> to vector<16xbf16>
    %102 = vector.shape_cast %99 : vector<16xbf16> to vector<1x16xbf16>
    tpu.vector_store %arg5[%c1_28, %c19_29], %102 {strides = array<i32>} : memref<3x326xbf16, #tpu.memory_space<vmem>>, vector<1x16xbf16>,
    %103 = vector.extract_strided_slice %97 {offsets = [1, 0], sizes = [1, 16], strides = [1, 1]} : vector<16x16xbf16> to vector<1x16xbf16>
    %104 = vector.shape_cast %103 : vector<1x16xbf16> to vector<16xbf16>
    %c1_30 = arith.constant 1 : index
    %c37_31 = arith.constant 37 : index
    %105 = vector.load %arg5[%c1_30, %c37_31] : memref<3x326xbf16, #tpu.memory_space<vmem>>, vector<1x16xbf16>
    %106 = vector.shape_cast %105 : vector<1x16xbf16> to vector<16xbf16>
    %107 = vector.shape_cast %104 : vector<16xbf16> to vector<1x16xbf16>
    tpu.vector_store %arg5[%c1_30, %c37_31], %107 {strides = array<i32>} : memref<3x326xbf16, #tpu.memory_space<vmem>>, vector<1x16xbf16>,
    %108 = vector.extract_strided_slice %97 {offsets = [2, 0], sizes = [1, 16], strides = [1, 1]} : vector<16x16xbf16> to vector<1x16xbf16>
    %109 = vector.shape_cast %108 : vector<1x16xbf16> to vector<16xbf16>
    %c1_32 = arith.constant 1 : index
    %c55_33 = arith.constant 55 : index
    %110 = vector.load %arg5[%c1_32, %c55_33] : memref<3x326xbf16, #tpu.memory_space<vmem>>, vector<1x16xbf16>
    %111 = vector.shape_cast %110 : vector<1x16xbf16> to vector<16xbf16>
    %112 = vector.shape_cast %109 : vector<16xbf16> to vector<1x16xbf16>
    tpu.vector_store %arg5[%c1_32, %c55_33], %112 {strides = array<i32>} : memref<3x326xbf16, #tpu.memory_space<vmem>>, vector<1x16xbf16>,
    %113 = vector.extract_strided_slice %97 {offsets = [3, 0], sizes = [1, 16], strides = [1, 1]} : vector<16x16xbf16> to vector<1x16xbf16>
    %114 = vector.shape_cast %113 : vector<1x16xbf16> to vector<16xbf16>
    %c1_34 = arith.constant 1 : index
    %c73_35 = arith.constant 73 : index
    %115 = vector.load %arg5[%c1_34, %c73_35] : memref<3x326xbf16, #tpu.memory_space<vmem>>, vector<1x16xbf16>
    %116 = vector.shape_cast %115 : vector<1x16xbf16> to vector<16xbf16>
    %117 = vector.shape_cast %114 : vector<16xbf16> to vector<1x16xbf16>
    tpu.vector_store %arg5[%c1_34, %c73_35], %117 {strides = array<i32>} : memref<3x326xbf16, #tpu.memory_space<vmem>>, vector<1x16xbf16>,
    %118 = vector.extract_strided_slice %97 {offsets = [4, 0], sizes = [1, 16], strides = [1, 1]} : vector<16x16xbf16> to vector<1x16xbf16>
    %119 = vector.shape_cast %118 : vector<1x16xbf16> to vector<16xbf16>
    %c1_36 = arith.constant 1 : index
    %c91_37 = arith.constant 91 : index
    %120 = vector.load %arg5[%c1_36, %c91_37] : memref<3x326xbf16, #tpu.memory_space<vmem>>, vector<1x16xbf16>
    %121 = vector.shape_cast %120 : vector<1x16xbf16> to vector<16xbf16>
    %122 = vector.shape_cast %119 : vector<16xbf16> to vector<1x16xbf16>
    tpu.vector_store %arg5[%c1_36, %c91_37], %122 {strides = array<i32>} : memref<3x326xbf16, #tpu.memory_space<vmem>>, vector<1x16xbf16>,
    %123 = vector.extract_strided_slice %97 {offsets = [5, 0], sizes = [1, 16], strides = [1, 1]} : vector<16x16xbf16> to vector<1x16xbf16>
    %124 = vector.shape_cast %123 : vector<1x16xbf16> to vector<16xbf16>
    %c1_38 = arith.constant 1 : index
    %c109_39 = arith.constant 109 : index
    %125 = vector.load %arg5[%c1_38, %c109_39] : memref<3x326xbf16, #tpu.memory_space<vmem>>, vector<1x16xbf16>
    %126 = vector.shape_cast %125 : vector<1x16xbf16> to vector<16xbf16>
    %127 = vector.shape_cast %124 : vector<16xbf16> to vector<1x16xbf16>
    tpu.vector_store %arg5[%c1_38, %c109_39], %127 {strides = array<i32>} : memref<3x326xbf16, #tpu.memory_space<vmem>>, vector<1x16xbf16>,
    %128 = vector.extract_strided_slice %97 {offsets = [6, 0], sizes = [1, 16], strides = [1, 1]} : vector<16x16xbf16> to vector<1x16xbf16>
    %129 = vector.shape_cast %128 : vector<1x16xbf16> to vector<16xbf16>
    %c1_40 = arith.constant 1 : index
    %c127_41 = arith.constant 127 : index
    %130 = vector.load %arg5[%c1_40, %c127_41] : memref<3x326xbf16, #tpu.memory_space<vmem>>, vector<1x16xbf16>
    %131 = vector.shape_cast %130 : vector<1x16xbf16> to vector<16xbf16>
    %132 = vector.shape_cast %129 : vector<16xbf16> to vector<1x16xbf16>
    tpu.vector_store %arg5[%c1_40, %c127_41], %132 {strides = array<i32>} : memref<3x326xbf16, #tpu.memory_space<vmem>>, vector<1x16xbf16>,
    %133 = vector.extract_strided_slice %97 {offsets = [7, 0], sizes = [1, 16], strides = [1, 1]} : vector<16x16xbf16> to vector<1x16xbf16>
    %134 = vector.shape_cast %133 : vector<1x16xbf16> to vector<16xbf16>
    %c1_42 = arith.constant 1 : index
    %c145_43 = arith.constant 145 : index
    %135 = vector.load %arg5[%c1_42, %c145_43] : memref<3x326xbf16, #tpu.memory_space<vmem>>, vector<1x16xbf16>
    %136 = vector.shape_cast %135 : vector<1x16xbf16> to vector<16xbf16>
    %137 = vector.shape_cast %134 : vector<16xbf16> to vector<1x16xbf16>
    tpu.vector_store %arg5[%c1_42, %c145_43], %137 {strides = array<i32>} : memref<3x326xbf16, #tpu.memory_space<vmem>>, vector<1x16xbf16>,
    %138 = vector.extract_strided_slice %97 {offsets = [8, 0], sizes = [1, 16], strides = [1, 1]} : vector<16x16xbf16> to vector<1x16xbf16>
    %139 = vector.shape_cast %138 : vector<1x16xbf16> to vector<16xbf16>
    %c1_44 = arith.constant 1 : index
    %c163_45 = arith.constant 163 : index
    %140 = vector.load %arg5[%c1_44, %c163_45] : memref<3x326xbf16, #tpu.memory_space<vmem>>, vector<1x16xbf16>
    %141 = vector.shape_cast %140 : vector<1x16xbf16> to vector<16xbf16>
    %142 = vector.shape_cast %139 : vector<16xbf16> to vector<1x16xbf16>
    tpu.vector_store %arg5[%c1_44, %c163_45], %142 {strides = array<i32>} : memref<3x326xbf16, #tpu.memory_space<vmem>>, vector<1x16xbf16>,
    %143 = vector.extract_strided_slice %97 {offsets = [9, 0], sizes = [1, 16], strides = [1, 1]} : vector<16x16xbf16> to vector<1x16xbf16>
    %144 = vector.shape_cast %143 : vector<1x16xbf16> to vector<16xbf16>
    %c1_46 = arith.constant 1 : index
    %c181_47 = arith.constant 181 : index
    %145 = vector.load %arg5[%c1_46, %c181_47] : memref<3x326xbf16, #tpu.memory_space<vmem>>, vector<1x16xbf16>
    %146 = vector.shape_cast %145 : vector<1x16xbf16> to vector<16xbf16>
    %147 = vector.shape_cast %144 : vector<16xbf16> to vector<1x16xbf16>
    tpu.vector_store %arg5[%c1_46, %c181_47], %147 {strides = array<i32>} : memref<3x326xbf16, #tpu.memory_space<vmem>>, vector<1x16xbf16>,
    %148 = vector.extract_strided_slice %97 {offsets = [10, 0], sizes = [1, 16], strides = [1, 1]} : vector<16x16xbf16> to vector<1x16xbf16>
    %149 = vector.shape_cast %148 : vector<1x16xbf16> to vector<16xbf16>
    %c1_48 = arith.constant 1 : index
    %c199_49 = arith.constant 199 : index
    %150 = vector.load %arg5[%c1_48, %c199_49] : memref<3x326xbf16, #tpu.memory_space<vmem>>, vector<1x16xbf16>
    %151 = vector.shape_cast %150 : vector<1x16xbf16> to vector<16xbf16>
    %152 = vector.shape_cast %149 : vector<16xbf16> to vector<1x16xbf16>
    tpu.vector_store %arg5[%c1_48, %c199_49], %152 {strides = array<i32>} : memref<3x326xbf16, #tpu.memory_space<vmem>>, vector<1x16xbf16>,
    %153 = vector.extract_strided_slice %97 {offsets = [11, 0], sizes = [1, 16], strides = [1, 1]} : vector<16x16xbf16> to vector<1x16xbf16>
    %154 = vector.shape_cast %153 : vector<1x16xbf16> to vector<16xbf16>
    %c1_50 = arith.constant 1 : index
    %c217_51 = arith.constant 217 : index
    %155 = vector.load %arg5[%c1_50, %c217_51] : memref<3x326xbf16, #tpu.memory_space<vmem>>, vector<1x16xbf16>
    %156 = vector.shape_cast %155 : vector<1x16xbf16> to vector<16xbf16>
    %157 = vector.shape_cast %154 : vector<16xbf16> to vector<1x16xbf16>
    tpu.vector_store %arg5[%c1_50, %c217_51], %157 {strides = array<i32>} : memref<3x326xbf16, #tpu.memory_space<vmem>>, vector<1x16xbf16>,
    %158 = vector.extract_strided_slice %97 {offsets = [12, 0], sizes = [1, 16], strides = [1, 1]} : vector<16x16xbf16> to vector<1x16xbf16>
    %159 = vector.shape_cast %158 : vector<1x16xbf16> to vector<16xbf16>
    %c1_52 = arith.constant 1 : index
    %c235_53 = arith.constant 235 : index
    %160 = vector.load %arg5[%c1_52, %c235_53] : memref<3x326xbf16, #tpu.memory_space<vmem>>, vector<1x16xbf16>
    %161 = vector.shape_cast %160 : vector<1x16xbf16> to vector<16xbf16>
    %162 = vector.shape_cast %159 : vector<16xbf16> to vector<1x16xbf16>
    tpu.vector_store %arg5[%c1_52, %c235_53], %162 {strides = array<i32>} : memref<3x326xbf16, #tpu.memory_space<vmem>>, vector<1x16xbf16>,
    %163 = vector.extract_strided_slice %97 {offsets = [13, 0], sizes = [1, 16], strides = [1, 1]} : vector<16x16xbf16> to vector<1x16xbf16>
    %164 = vector.shape_cast %163 : vector<1x16xbf16> to vector<16xbf16>
    %c1_54 = arith.constant 1 : index
    %c253_55 = arith.constant 253 : index
    %165 = vector.load %arg5[%c1_54, %c253_55] : memref<3x326xbf16, #tpu.memory_space<vmem>>, vector<1x16xbf16>
    %166 = vector.shape_cast %165 : vector<1x16xbf16> to vector<16xbf16>
    %167 = vector.shape_cast %164 : vector<16xbf16> to vector<1x16xbf16>
    tpu.vector_store %arg5[%c1_54, %c253_55], %167 {strides = array<i32>} : memref<3x326xbf16, #tpu.memory_space<vmem>>, vector<1x16xbf16>,
    %168 = vector.extract_strided_slice %97 {offsets = [14, 0], sizes = [1, 16], strides = [1, 1]} : vector<16x16xbf16> to vector<1x16xbf16>
    %169 = vector.shape_cast %168 : vector<1x16xbf16> to vector<16xbf16>
    %c1_56 = arith.constant 1 : index
    %c271_57 = arith.constant 271 : index
    %170 = vector.load %arg5[%c1_56, %c271_57] : memref<3x326xbf16, #tpu.memory_space<vmem>>, vector<1x16xbf16>
    %171 = vector.shape_cast %170 : vector<1x16xbf16> to vector<16xbf16>
    %172 = vector.shape_cast %169 : vector<16xbf16> to vector<1x16xbf16>
    tpu.vector_store %arg5[%c1_56, %c271_57], %172 {strides = array<i32>} : memref<3x326xbf16, #tpu.memory_space<vmem>>, vector<1x16xbf16>,
    %173 = vector.extract_strided_slice %97 {offsets = [15, 0], sizes = [1, 16], strides = [1, 1]} : vector<16x16xbf16> to vector<1x16xbf16>
    %174 = vector.shape_cast %173 : vector<1x16xbf16> to vector<16xbf16>
    %c1_58 = arith.constant 1 : index
    %c289_59 = arith.constant 289 : index
    %175 = vector.load %arg5[%c1_58, %c289_59] : memref<3x326xbf16, #tpu.memory_space<vmem>>, vector<1x16xbf16>
    %176 = vector.shape_cast %175 : vector<1x16xbf16> to vector<16xbf16>
    %177 = vector.shape_cast %174 : vector<16xbf16> to vector<1x16xbf16>
    tpu.vector_store %arg5[%c1_58, %c289_59], %177 {strides = array<i32>} : memref<3x326xbf16, #tpu.memory_space<vmem>>, vector<1x16xbf16>,
    %c0_60 = arith.constant 0 : index
    %c2 = arith.constant 2 : index
    %c0_61 = arith.constant 0 : index
    %c0_62 = arith.constant 0 : index
    %178 = vector.load %arg1[%c0_60, %c2, %c0_61, %c0_62] : memref<1x3x16x16xbf16, #tpu.memory_space<vmem>>, vector<1x1x16x16xbf16>
    %179 = vector.shape_cast %178 : vector<1x1x16x16xbf16> to vector<16x16xbf16>
    %180 = arith.extf %179 : vector<16x16xbf16> to vector<16x16xf32>
    %cst_63 = arith.constant 0.0171247534 : f32
    %181 = vector.broadcast %cst_63 : f32 to vector<16x16xf32>
    %182 = arith.mulf %180, %181 : vector<16x16xf32>
    %cst_64 = arith.constant -2.11790395 : f32
    %183 = vector.broadcast %cst_64 : f32 to vector<16x16xf32>
    %184 = arith.addf %182, %183 : vector<16x16xf32>
    %185 = arith.truncf %184 : vector<16x16xf32> to vector<16x16xbf16>
    %186 = vector.extract_strided_slice %185 {offsets = [0, 0], sizes = [1, 16], strides = [1, 1]} : vector<16x16xbf16> to vector<1x16xbf16>
    %187 = vector.shape_cast %186 : vector<1x16xbf16> to vector<16xbf16>
    %c2_65 = arith.constant 2 : index
    %c19_66 = arith.constant 19 : index
    %188 = vector.load %arg5[%c2_65, %c19_66] : memref<3x326xbf16, #tpu.memory_space<vmem>>, vector<1x16xbf16>
    %189 = vector.shape_cast %188 : vector<1x16xbf16> to vector<16xbf16>
    %190 = vector.shape_cast %187 : vector<16xbf16> to vector<1x16xbf16>
    tpu.vector_store %arg5[%c2_65, %c19_66], %190 {strides = array<i32>} : memref<3x326xbf16, #tpu.memory_space<vmem>>, vector<1x16xbf16>,
    %191 = vector.extract_strided_slice %185 {offsets = [1, 0], sizes = [1, 16], strides = [1, 1]} : vector<16x16xbf16> to vector<1x16xbf16>
    %192 = vector.shape_cast %191 : vector<1x16xbf16> to vector<16xbf16>
    %c2_67 = arith.constant 2 : index
    %c37_68 = arith.constant 37 : index
    %193 = vector.load %arg5[%c2_67, %c37_68] : memref<3x326xbf16, #tpu.memory_space<vmem>>, vector<1x16xbf16>
    %194 = vector.shape_cast %193 : vector<1x16xbf16> to vector<16xbf16>
    %195 = vector.shape_cast %192 : vector<16xbf16> to vector<1x16xbf16>
    tpu.vector_store %arg5[%c2_67, %c37_68], %195 {strides = array<i32>} : memref<3x326xbf16, #tpu.memory_space<vmem>>, vector<1x16xbf16>,
    %196 = vector.extract_strided_slice %185 {offsets = [2, 0], sizes = [1, 16], strides = [1, 1]} : vector<16x16xbf16> to vector<1x16xbf16>
    %197 = vector.shape_cast %196 : vector<1x16xbf16> to vector<16xbf16>
    %c2_69 = arith.constant 2 : index
    %c55_70 = arith.constant 55 : index
    %198 = vector.load %arg5[%c2_69, %c55_70] : memref<3x326xbf16, #tpu.memory_space<vmem>>, vector<1x16xbf16>
    %199 = vector.shape_cast %198 : vector<1x16xbf16> to vector<16xbf16>
    %200 = vector.shape_cast %197 : vector<16xbf16> to vector<1x16xbf16>
    tpu.vector_store %arg5[%c2_69, %c55_70], %200 {strides = array<i32>} : memref<3x326xbf16, #tpu.memory_space<vmem>>, vector<1x16xbf16>,
    %201 = vector.extract_strided_slice %185 {offsets = [3, 0], sizes = [1, 16], strides = [1, 1]} : vector<16x16xbf16> to vector<1x16xbf16>
    %202 = vector.shape_cast %201 : vector<1x16xbf16> to vector<16xbf16>
    %c2_71 = arith.constant 2 : index
    %c73_72 = arith.constant 73 : index
    %203 = vector.load %arg5[%c2_71, %c73_72] : memref<3x326xbf16, #tpu.memory_space<vmem>>, vector<1x16xbf16>
    %204 = vector.shape_cast %203 : vector<1x16xbf16> to vector<16xbf16>
    %205 = vector.shape_cast %202 : vector<16xbf16> to vector<1x16xbf16>
    tpu.vector_store %arg5[%c2_71, %c73_72], %205 {strides = array<i32>} : memref<3x326xbf16, #tpu.memory_space<vmem>>, vector<1x16xbf16>,
    %206 = vector.extract_strided_slice %185 {offsets = [4, 0], sizes = [1, 16], strides = [1, 1]} : vector<16x16xbf16> to vector<1x16xbf16>
    %207 = vector.shape_cast %206 : vector<1x16xbf16> to vector<16xbf16>
    %c2_73 = arith.constant 2 : index
    %c91_74 = arith.constant 91 : index
    %208 = vector.load %arg5[%c2_73, %c91_74] : memref<3x326xbf16, #tpu.memory_space<vmem>>, vector<1x16xbf16>
    %209 = vector.shape_cast %208 : vector<1x16xbf16> to vector<16xbf16>
    %210 = vector.shape_cast %207 : vector<16xbf16> to vector<1x16xbf16>
    tpu.vector_store %arg5[%c2_73, %c91_74], %210 {strides = array<i32>} : memref<3x326xbf16, #tpu.memory_space<vmem>>, vector<1x16xbf16>,
    %211 = vector.extract_strided_slice %185 {offsets = [5, 0], sizes = [1, 16], strides = [1, 1]} : vector<16x16xbf16> to vector<1x16xbf16>
    %212 = vector.shape_cast %211 : vector<1x16xbf16> to vector<16xbf16>
    %c2_75 = arith.constant 2 : index
    %c109_76 = arith.constant 109 : index
    %213 = vector.load %arg5[%c2_75, %c109_76] : memref<3x326xbf16, #tpu.memory_space<vmem>>, vector<1x16xbf16>
    %214 = vector.shape_cast %213 : vector<1x16xbf16> to vector<16xbf16>
    %215 = vector.shape_cast %212 : vector<16xbf16> to vector<1x16xbf16>
    tpu.vector_store %arg5[%c2_75, %c109_76], %215 {strides = array<i32>} : memref<3x326xbf16, #tpu.memory_space<vmem>>, vector<1x16xbf16>,
    %216 = vector.extract_strided_slice %185 {offsets = [6, 0], sizes = [1, 16], strides = [1, 1]} : vector<16x16xbf16> to vector<1x16xbf16>
    %217 = vector.shape_cast %216 : vector<1x16xbf16> to vector<16xbf16>
    %c2_77 = arith.constant 2 : index
    %c127_78 = arith.constant 127 : index
    %218 = vector.load %arg5[%c2_77, %c127_78] : memref<3x326xbf16, #tpu.memory_space<vmem>>, vector<1x16xbf16>
    %219 = vector.shape_cast %218 : vector<1x16xbf16> to vector<16xbf16>
    %220 = vector.shape_cast %217 : vector<16xbf16> to vector<1x16xbf16>
    tpu.vector_store %arg5[%c2_77, %c127_78], %220 {strides = array<i32>} : memref<3x326xbf16, #tpu.memory_space<vmem>>, vector<1x16xbf16>,
    %221 = vector.extract_strided_slice %185 {offsets = [7, 0], sizes = [1, 16], strides = [1, 1]} : vector<16x16xbf16> to vector<1x16xbf16>
    %222 = vector.shape_cast %221 : vector<1x16xbf16> to vector<16xbf16>
    %c2_79 = arith.constant 2 : index
    %c145_80 = arith.constant 145 : index
    %223 = vector.load %arg5[%c2_79, %c145_80] : memref<3x326xbf16, #tpu.memory_space<vmem>>, vector<1x16xbf16>
    %224 = vector.shape_cast %223 : vector<1x16xbf16> to vector<16xbf16>
    %225 = vector.shape_cast %222 : vector<16xbf16> to vector<1x16xbf16>
    tpu.vector_store %arg5[%c2_79, %c145_80], %225 {strides = array<i32>} : memref<3x326xbf16, #tpu.memory_space<vmem>>, vector<1x16xbf16>,
    %226 = vector.extract_strided_slice %185 {offsets = [8, 0], sizes = [1, 16], strides = [1, 1]} : vector<16x16xbf16> to vector<1x16xbf16>
    %227 = vector.shape_cast %226 : vector<1x16xbf16> to vector<16xbf16>
    %c2_81 = arith.constant 2 : index
    %c163_82 = arith.constant 163 : index
    %228 = vector.load %arg5[%c2_81, %c163_82] : memref<3x326xbf16, #tpu.memory_space<vmem>>, vector<1x16xbf16>
    %229 = vector.shape_cast %228 : vector<1x16xbf16> to vector<16xbf16>
    %230 = vector.shape_cast %227 : vector<16xbf16> to vector<1x16xbf16>
    tpu.vector_store %arg5[%c2_81, %c163_82], %230 {strides = array<i32>} : memref<3x326xbf16, #tpu.memory_space<vmem>>, vector<1x16xbf16>,
    %231 = vector.extract_strided_slice %185 {offsets = [9, 0], sizes = [1, 16], strides = [1, 1]} : vector<16x16xbf16> to vector<1x16xbf16>
    %232 = vector.shape_cast %231 : vector<1x16xbf16> to vector<16xbf16>
    %c2_83 = arith.constant 2 : index
    %c181_84 = arith.constant 181 : index
    %233 = vector.load %arg5[%c2_83, %c181_84] : memref<3x326xbf16, #tpu.memory_space<vmem>>, vector<1x16xbf16>
    %234 = vector.shape_cast %233 : vector<1x16xbf16> to vector<16xbf16>
    %235 = vector.shape_cast %232 : vector<16xbf16> to vector<1x16xbf16>
    tpu.vector_store %arg5[%c2_83, %c181_84], %235 {strides = array<i32>} : memref<3x326xbf16, #tpu.memory_space<vmem>>, vector<1x16xbf16>,
    %236 = vector.extract_strided_slice %185 {offsets = [10, 0], sizes = [1, 16], strides = [1, 1]} : vector<16x16xbf16> to vector<1x16xbf16>
    %237 = vector.shape_cast %236 : vector<1x16xbf16> to vector<16xbf16>
    %c2_85 = arith.constant 2 : index
    %c199_86 = arith.constant 199 : index
    %238 = vector.load %arg5[%c2_85, %c199_86] : memref<3x326xbf16, #tpu.memory_space<vmem>>, vector<1x16xbf16>
    %239 = vector.shape_cast %238 : vector<1x16xbf16> to vector<16xbf16>
    %240 = vector.shape_cast %237 : vector<16xbf16> to vector<1x16xbf16>
    tpu.vector_store %arg5[%c2_85, %c199_86], %240 {strides = array<i32>} : memref<3x326xbf16, #tpu.memory_space<vmem>>, vector<1x16xbf16>,
    %241 = vector.extract_strided_slice %185 {offsets = [11, 0], sizes = [1, 16], strides = [1, 1]} : vector<16x16xbf16> to vector<1x16xbf16>
    %242 = vector.shape_cast %241 : vector<1x16xbf16> to vector<16xbf16>
    %c2_87 = arith.constant 2 : index
    %c217_88 = arith.constant 217 : index
    %243 = vector.load %arg5[%c2_87, %c217_88] : memref<3x326xbf16, #tpu.memory_space<vmem>>, vector<1x16xbf16>
    %244 = vector.shape_cast %243 : vector<1x16xbf16> to vector<16xbf16>
    %245 = vector.shape_cast %242 : vector<16xbf16> to vector<1x16xbf16>
    tpu.vector_store %arg5[%c2_87, %c217_88], %245 {strides = array<i32>} : memref<3x326xbf16, #tpu.memory_space<vmem>>, vector<1x16xbf16>,
    %246 = vector.extract_strided_slice %185 {offsets = [12, 0], sizes = [1, 16], strides = [1, 1]} : vector<16x16xbf16> to vector<1x16xbf16>
    %247 = vector.shape_cast %246 : vector<1x16xbf16> to vector<16xbf16>
    %c2_89 = arith.constant 2 : index
    %c235_90 = arith.constant 235 : index
    %248 = vector.load %arg5[%c2_89, %c235_90] : memref<3x326xbf16, #tpu.memory_space<vmem>>, vector<1x16xbf16>
    %249 = vector.shape_cast %248 : vector<1x16xbf16> to vector<16xbf16>
    %250 = vector.shape_cast %247 : vector<16xbf16> to vector<1x16xbf16>
    tpu.vector_store %arg5[%c2_89, %c235_90], %250 {strides = array<i32>} : memref<3x326xbf16, #tpu.memory_space<vmem>>, vector<1x16xbf16>,
    %251 = vector.extract_strided_slice %185 {offsets = [13, 0], sizes = [1, 16], strides = [1, 1]} : vector<16x16xbf16> to vector<1x16xbf16>
    %252 = vector.shape_cast %251 : vector<1x16xbf16> to vector<16xbf16>
    %c2_91 = arith.constant 2 : index
    %c253_92 = arith.constant 253 : index
    %253 = vector.load %arg5[%c2_91, %c253_92] : memref<3x326xbf16, #tpu.memory_space<vmem>>, vector<1x16xbf16>
    %254 = vector.shape_cast %253 : vector<1x16xbf16> to vector<16xbf16>
    %255 = vector.shape_cast %252 : vector<16xbf16> to vector<1x16xbf16>
    tpu.vector_store %arg5[%c2_91, %c253_92], %255 {strides = array<i32>} : memref<3x326xbf16, #tpu.memory_space<vmem>>, vector<1x16xbf16>,
    %256 = vector.extract_strided_slice %185 {offsets = [14, 0], sizes = [1, 16], strides = [1, 1]} : vector<16x16xbf16> to vector<1x16xbf16>
    %257 = vector.shape_cast %256 : vector<1x16xbf16> to vector<16xbf16>
    %c2_93 = arith.constant 2 : index
    %c271_94 = arith.constant 271 : index
    %258 = vector.load %arg5[%c2_93, %c271_94] : memref<3x326xbf16, #tpu.memory_space<vmem>>, vector<1x16xbf16>
    %259 = vector.shape_cast %258 : vector<1x16xbf16> to vector<16xbf16>
    %260 = vector.shape_cast %257 : vector<16xbf16> to vector<1x16xbf16>
    tpu.vector_store %arg5[%c2_93, %c271_94], %260 {strides = array<i32>} : memref<3x326xbf16, #tpu.memory_space<vmem>>, vector<1x16xbf16>,
    %261 = vector.extract_strided_slice %185 {offsets = [15, 0], sizes = [1, 16], strides = [1, 1]} : vector<16x16xbf16> to vector<1x16xbf16>
    %262 = vector.shape_cast %261 : vector<1x16xbf16> to vector<16xbf16>
    %c2_95 = arith.constant 2 : index
    %c289_96 = arith.constant 289 : index
    %263 = vector.load %arg5[%c2_95, %c289_96] : memref<3x326xbf16, #tpu.memory_space<vmem>>, vector<1x16xbf16>
    %264 = vector.shape_cast %263 : vector<1x16xbf16> to vector<16xbf16>
    %265 = vector.shape_cast %262 : vector<16xbf16> to vector<1x16xbf16>
    tpu.vector_store %arg5[%c2_95, %c289_96], %265 {strides = array<i32>} : memref<3x326xbf16, #tpu.memory_space<vmem>>, vector<1x16xbf16>,
    %c0_97 = arith.constant 0 : index
    %c0_98 = arith.constant 0 : index
    %266 = vector.load %arg5[%c0_97, %c0_98] : memref<3x326xbf16, #tpu.memory_space<vmem>>, vector<1x288xbf16>
    %267 = vector.shape_cast %266 : vector<1x288xbf16> to vector<288xbf16>
    %c0_99 = arith.constant 0 : index
    %c0_100 = arith.constant 0 : index
    %268 = vector.load %arg6[%c0_99, %c0_100] : memref<27x288xbf16, #tpu.memory_space<vmem>>, vector<1x288xbf16>
    %269 = vector.shape_cast %268 : vector<1x288xbf16> to vector<288xbf16>
    %270 = vector.shape_cast %267 : vector<288xbf16> to vector<1x288xbf16>
    tpu.vector_store %arg6[%c0_99, %c0_100], %270 {strides = array<i32>} : memref<27x288xbf16, #tpu.memory_space<vmem>>, vector<1x288xbf16>,
    %c0_101 = arith.constant 0 : index
    %c1_102 = arith.constant 1 : index
    %271 = vector.load %arg5[%c0_101, %c1_102] : memref<3x326xbf16, #tpu.memory_space<vmem>>, vector<1x288xbf16>
    %272 = vector.shape_cast %271 : vector<1x288xbf16> to vector<288xbf16>
    %c1_103 = arith.constant 1 : index
    %c0_104 = arith.constant 0 : index
    %273 = vector.load %arg6[%c1_103, %c0_104] : memref<27x288xbf16, #tpu.memory_space<vmem>>, vector<1x288xbf16>
    %274 = vector.shape_cast %273 : vector<1x288xbf16> to vector<288xbf16>
    %275 = vector.shape_cast %272 : vector<288xbf16> to vector<1x288xbf16>
    tpu.vector_store %arg6[%c1_103, %c0_104], %275 {strides = array<i32>} : memref<27x288xbf16, #tpu.memory_space<vmem>>, vector<1x288xbf16>,
    %c0_105 = arith.constant 0 : index
    %c2_106 = arith.constant 2 : index
    %276 = vector.load %arg5[%c0_105, %c2_106] : memref<3x326xbf16, #tpu.memory_space<vmem>>, vector<1x288xbf16>
    %277 = vector.shape_cast %276 : vector<1x288xbf16> to vector<288xbf16>
    %c2_107 = arith.constant 2 : index
    %c0_108 = arith.constant 0 : index
    %278 = vector.load %arg6[%c2_107, %c0_108] : memref<27x288xbf16, #tpu.memory_space<vmem>>, vector<1x288xbf16>
    %279 = vector.shape_cast %278 : vector<1x288xbf16> to vector<288xbf16>
    %280 = vector.shape_cast %277 : vector<288xbf16> to vector<1x288xbf16>
    tpu.vector_store %arg6[%c2_107, %c0_108], %280 {strides = array<i32>} : memref<27x288xbf16, #tpu.memory_space<vmem>>, vector<1x288xbf16>,
    %c0_109 = arith.constant 0 : index
    %c18 = arith.constant 18 : index
    %281 = vector.load %arg5[%c0_109, %c18] : memref<3x326xbf16, #tpu.memory_space<vmem>>, vector<1x288xbf16>
    %282 = vector.shape_cast %281 : vector<1x288xbf16> to vector<288xbf16>
    %c3 = arith.constant 3 : index
    %c0_110 = arith.constant 0 : index
    %283 = vector.load %arg6[%c3, %c0_110] : memref<27x288xbf16, #tpu.memory_space<vmem>>, vector<1x288xbf16>
    %284 = vector.shape_cast %283 : vector<1x288xbf16> to vector<288xbf16>
    %285 = vector.shape_cast %282 : vector<288xbf16> to vector<1x288xbf16>
    tpu.vector_store %arg6[%c3, %c0_110], %285 {strides = array<i32>} : memref<27x288xbf16, #tpu.memory_space<vmem>>, vector<1x288xbf16>,
    %c0_111 = arith.constant 0 : index
    %c19_112 = arith.constant 19 : index
    %286 = vector.load %arg5[%c0_111, %c19_112] : memref<3x326xbf16, #tpu.memory_space<vmem>>, vector<1x288xbf16>
    %287 = vector.shape_cast %286 : vector<1x288xbf16> to vector<288xbf16>
    %c4 = arith.constant 4 : index
    %c0_113 = arith.constant 0 : index
    %288 = vector.load %arg6[%c4, %c0_113] : memref<27x288xbf16, #tpu.memory_space<vmem>>, vector<1x288xbf16>
    %289 = vector.shape_cast %288 : vector<1x288xbf16> to vector<288xbf16>
    %290 = vector.shape_cast %287 : vector<288xbf16> to vector<1x288xbf16>
    tpu.vector_store %arg6[%c4, %c0_113], %290 {strides = array<i32>} : memref<27x288xbf16, #tpu.memory_space<vmem>>, vector<1x288xbf16>,
    %c0_114 = arith.constant 0 : index
    %c20 = arith.constant 20 : index
    %291 = vector.load %arg5[%c0_114, %c20] : memref<3x326xbf16, #tpu.memory_space<vmem>>, vector<1x288xbf16>
    %292 = vector.shape_cast %291 : vector<1x288xbf16> to vector<288xbf16>
    %c5 = arith.constant 5 : index
    %c0_115 = arith.constant 0 : index
    %293 = vector.load %arg6[%c5, %c0_115] : memref<27x288xbf16, #tpu.memory_space<vmem>>, vector<1x288xbf16>
    %294 = vector.shape_cast %293 : vector<1x288xbf16> to vector<288xbf16>
    %295 = vector.shape_cast %292 : vector<288xbf16> to vector<1x288xbf16>
    tpu.vector_store %arg6[%c5, %c0_115], %295 {strides = array<i32>} : memref<27x288xbf16, #tpu.memory_space<vmem>>, vector<1x288xbf16>,
    %c0_116 = arith.constant 0 : index
    %c36 = arith.constant 36 : index
    %296 = vector.load %arg5[%c0_116, %c36] : memref<3x326xbf16, #tpu.memory_space<vmem>>, vector<1x288xbf16>
    %297 = vector.shape_cast %296 : vector<1x288xbf16> to vector<288xbf16>
    %c6 = arith.constant 6 : index
    %c0_117 = arith.constant 0 : index
    %298 = vector.load %arg6[%c6, %c0_117] : memref<27x288xbf16, #tpu.memory_space<vmem>>, vector<1x288xbf16>
    %299 = vector.shape_cast %298 : vector<1x288xbf16> to vector<288xbf16>
    %300 = vector.shape_cast %297 : vector<288xbf16> to vector<1x288xbf16>
    tpu.vector_store %arg6[%c6, %c0_117], %300 {strides = array<i32>} : memref<27x288xbf16, #tpu.memory_space<vmem>>, vector<1x288xbf16>,
    %c0_118 = arith.constant 0 : index
    %c37_119 = arith.constant 37 : index
    %301 = vector.load %arg5[%c0_118, %c37_119] : memref<3x326xbf16, #tpu.memory_space<vmem>>, vector<1x288xbf16>
    %302 = vector.shape_cast %301 : vector<1x288xbf16> to vector<288xbf16>
    %c7 = arith.constant 7 : index
    %c0_120 = arith.constant 0 : index
    %303 = vector.load %arg6[%c7, %c0_120] : memref<27x288xbf16, #tpu.memory_space<vmem>>, vector<1x288xbf16>
    %304 = vector.shape_cast %303 : vector<1x288xbf16> to vector<288xbf16>
    %305 = vector.shape_cast %302 : vector<288xbf16> to vector<1x288xbf16>
    tpu.vector_store %arg6[%c7, %c0_120], %305 {strides = array<i32>} : memref<27x288xbf16, #tpu.memory_space<vmem>>, vector<1x288xbf16>,
    %c0_121 = arith.constant 0 : index
    %c38 = arith.constant 38 : index
    %306 = vector.load %arg5[%c0_121, %c38] : memref<3x326xbf16, #tpu.memory_space<vmem>>, vector<1x288xbf16>
    %307 = vector.shape_cast %306 : vector<1x288xbf16> to vector<288xbf16>
    %c8 = arith.constant 8 : index
    %c0_122 = arith.constant 0 : index
    %308 = vector.load %arg6[%c8, %c0_122] : memref<27x288xbf16, #tpu.memory_space<vmem>>, vector<1x288xbf16>
    %309 = vector.shape_cast %308 : vector<1x288xbf16> to vector<288xbf16>
    %310 = vector.shape_cast %307 : vector<288xbf16> to vector<1x288xbf16>
    tpu.vector_store %arg6[%c8, %c0_122], %310 {strides = array<i32>} : memref<27x288xbf16, #tpu.memory_space<vmem>>, vector<1x288xbf16>,
    %c1_123 = arith.constant 1 : index
    %c0_124 = arith.constant 0 : index
    %311 = vector.load %arg5[%c1_123, %c0_124] : memref<3x326xbf16, #tpu.memory_space<vmem>>, vector<1x288xbf16>
    %312 = vector.shape_cast %311 : vector<1x288xbf16> to vector<288xbf16>
    %c9 = arith.constant 9 : index
    %c0_125 = arith.constant 0 : index
    %313 = vector.load %arg6[%c9, %c0_125] : memref<27x288xbf16, #tpu.memory_space<vmem>>, vector<1x288xbf16>
    %314 = vector.shape_cast %313 : vector<1x288xbf16> to vector<288xbf16>
    %315 = vector.shape_cast %312 : vector<288xbf16> to vector<1x288xbf16>
    tpu.vector_store %arg6[%c9, %c0_125], %315 {strides = array<i32>} : memref<27x288xbf16, #tpu.memory_space<vmem>>, vector<1x288xbf16>,
    %c1_126 = arith.constant 1 : index
    %c1_127 = arith.constant 1 : index
    %316 = vector.load %arg5[%c1_126, %c1_127] : memref<3x326xbf16, #tpu.memory_space<vmem>>, vector<1x288xbf16>
    %317 = vector.shape_cast %316 : vector<1x288xbf16> to vector<288xbf16>
    %c10 = arith.constant 10 : index
    %c0_128 = arith.constant 0 : index
    %318 = vector.load %arg6[%c10, %c0_128] : memref<27x288xbf16, #tpu.memory_space<vmem>>, vector<1x288xbf16>
    %319 = vector.shape_cast %318 : vector<1x288xbf16> to vector<288xbf16>
    %320 = vector.shape_cast %317 : vector<288xbf16> to vector<1x288xbf16>
    tpu.vector_store %arg6[%c10, %c0_128], %320 {strides = array<i32>} : memref<27x288xbf16, #tpu.memory_space<vmem>>, vector<1x288xbf16>,
    %c1_129 = arith.constant 1 : index
    %c2_130 = arith.constant 2 : index
    %321 = vector.load %arg5[%c1_129, %c2_130] : memref<3x326xbf16, #tpu.memory_space<vmem>>, vector<1x288xbf16>
    %322 = vector.shape_cast %321 : vector<1x288xbf16> to vector<288xbf16>
    %c11 = arith.constant 11 : index
    %c0_131 = arith.constant 0 : index
    %323 = vector.load %arg6[%c11, %c0_131] : memref<27x288xbf16, #tpu.memory_space<vmem>>, vector<1x288xbf16>
    %324 = vector.shape_cast %323 : vector<1x288xbf16> to vector<288xbf16>
    %325 = vector.shape_cast %322 : vector<288xbf16> to vector<1x288xbf16>
    tpu.vector_store %arg6[%c11, %c0_131], %325 {strides = array<i32>} : memref<27x288xbf16, #tpu.memory_space<vmem>>, vector<1x288xbf16>,
    %c1_132 = arith.constant 1 : index
    %c18_133 = arith.constant 18 : index
    %326 = vector.load %arg5[%c1_132, %c18_133] : memref<3x326xbf16, #tpu.memory_space<vmem>>, vector<1x288xbf16>
    %327 = vector.shape_cast %326 : vector<1x288xbf16> to vector<288xbf16>
    %c12 = arith.constant 12 : index
    %c0_134 = arith.constant 0 : index
    %328 = vector.load %arg6[%c12, %c0_134] : memref<27x288xbf16, #tpu.memory_space<vmem>>, vector<1x288xbf16>
    %329 = vector.shape_cast %328 : vector<1x288xbf16> to vector<288xbf16>
    %330 = vector.shape_cast %327 : vector<288xbf16> to vector<1x288xbf16>
    tpu.vector_store %arg6[%c12, %c0_134], %330 {strides = array<i32>} : memref<27x288xbf16, #tpu.memory_space<vmem>>, vector<1x288xbf16>,
    %c1_135 = arith.constant 1 : index
    %c19_136 = arith.constant 19 : index
    %331 = vector.load %arg5[%c1_135, %c19_136] : memref<3x326xbf16, #tpu.memory_space<vmem>>, vector<1x288xbf16>
    %332 = vector.shape_cast %331 : vector<1x288xbf16> to vector<288xbf16>
    %c13 = arith.constant 13 : index
    %c0_137 = arith.constant 0 : index
    %333 = vector.load %arg6[%c13, %c0_137] : memref<27x288xbf16, #tpu.memory_space<vmem>>, vector<1x288xbf16>
    %334 = vector.shape_cast %333 : vector<1x288xbf16> to vector<288xbf16>
    %335 = vector.shape_cast %332 : vector<288xbf16> to vector<1x288xbf16>
    tpu.vector_store %arg6[%c13, %c0_137], %335 {strides = array<i32>} : memref<27x288xbf16, #tpu.memory_space<vmem>>, vector<1x288xbf16>,
    %c1_138 = arith.constant 1 : index
    %c20_139 = arith.constant 20 : index
    %336 = vector.load %arg5[%c1_138, %c20_139] : memref<3x326xbf16, #tpu.memory_space<vmem>>, vector<1x288xbf16>
    %337 = vector.shape_cast %336 : vector<1x288xbf16> to vector<288xbf16>
    %c14 = arith.constant 14 : index
    %c0_140 = arith.constant 0 : index
    %338 = vector.load %arg6[%c14, %c0_140] : memref<27x288xbf16, #tpu.memory_space<vmem>>, vector<1x288xbf16>
    %339 = vector.shape_cast %338 : vector<1x288xbf16> to vector<288xbf16>
    %340 = vector.shape_cast %337 : vector<288xbf16> to vector<1x288xbf16>
    tpu.vector_store %arg6[%c14, %c0_140], %340 {strides = array<i32>} : memref<27x288xbf16, #tpu.memory_space<vmem>>, vector<1x288xbf16>,
    %c1_141 = arith.constant 1 : index
    %c36_142 = arith.constant 36 : index
    %341 = vector.load %arg5[%c1_141, %c36_142] : memref<3x326xbf16, #tpu.memory_space<vmem>>, vector<1x288xbf16>
    %342 = vector.shape_cast %341 : vector<1x288xbf16> to vector<288xbf16>
    %c15 = arith.constant 15 : index
    %c0_143 = arith.constant 0 : index
    %343 = vector.load %arg6[%c15, %c0_143] : memref<27x288xbf16, #tpu.memory_space<vmem>>, vector<1x288xbf16>
    %344 = vector.shape_cast %343 : vector<1x288xbf16> to vector<288xbf16>
    %345 = vector.shape_cast %342 : vector<288xbf16> to vector<1x288xbf16>
    tpu.vector_store %arg6[%c15, %c0_143], %345 {strides = array<i32>} : memref<27x288xbf16, #tpu.memory_space<vmem>>, vector<1x288xbf16>,
    %c1_144 = arith.constant 1 : index
    %c37_145 = arith.constant 37 : index
    %346 = vector.load %arg5[%c1_144, %c37_145] : memref<3x326xbf16, #tpu.memory_space<vmem>>, vector<1x288xbf16>
    %347 = vector.shape_cast %346 : vector<1x288xbf16> to vector<288xbf16>
    %c16 = arith.constant 16 : index
    %c0_146 = arith.constant 0 : index
    %348 = vector.load %arg6[%c16, %c0_146] : memref<27x288xbf16, #tpu.memory_space<vmem>>, vector<1x288xbf16>
    %349 = vector.shape_cast %348 : vector<1x288xbf16> to vector<288xbf16>
    %350 = vector.shape_cast %347 : vector<288xbf16> to vector<1x288xbf16>
    tpu.vector_store %arg6[%c16, %c0_146], %350 {strides = array<i32>} : memref<27x288xbf16, #tpu.memory_space<vmem>>, vector<1x288xbf16>,
    %c1_147 = arith.constant 1 : index
    %c38_148 = arith.constant 38 : index
    %351 = vector.load %arg5[%c1_147, %c38_148] : memref<3x326xbf16, #tpu.memory_space<vmem>>, vector<1x288xbf16>
    %352 = vector.shape_cast %351 : vector<1x288xbf16> to vector<288xbf16>
    %c17 = arith.constant 17 : index
    %c0_149 = arith.constant 0 : index
    %353 = vector.load %arg6[%c17, %c0_149] : memref<27x288xbf16, #tpu.memory_space<vmem>>, vector<1x288xbf16>
    %354 = vector.shape_cast %353 : vector<1x288xbf16> to vector<288xbf16>
    %355 = vector.shape_cast %352 : vector<288xbf16> to vector<1x288xbf16>
    tpu.vector_store %arg6[%c17, %c0_149], %355 {strides = array<i32>} : memref<27x288xbf16, #tpu.memory_space<vmem>>, vector<1x288xbf16>,
    %c2_150 = arith.constant 2 : index
    %c0_151 = arith.constant 0 : index
    %356 = vector.load %arg5[%c2_150, %c0_151] : memref<3x326xbf16, #tpu.memory_space<vmem>>, vector<1x288xbf16>
    %357 = vector.shape_cast %356 : vector<1x288xbf16> to vector<288xbf16>
    %c18_152 = arith.constant 18 : index
    %c0_153 = arith.constant 0 : index
    %358 = vector.load %arg6[%c18_152, %c0_153] : memref<27x288xbf16, #tpu.memory_space<vmem>>, vector<1x288xbf16>
    %359 = vector.shape_cast %358 : vector<1x288xbf16> to vector<288xbf16>
    %360 = vector.shape_cast %357 : vector<288xbf16> to vector<1x288xbf16>
    tpu.vector_store %arg6[%c18_152, %c0_153], %360 {strides = array<i32>} : memref<27x288xbf16, #tpu.memory_space<vmem>>, vector<1x288xbf16>,
    %c2_154 = arith.constant 2 : index
    %c1_155 = arith.constant 1 : index
    %361 = vector.load %arg5[%c2_154, %c1_155] : memref<3x326xbf16, #tpu.memory_space<vmem>>, vector<1x288xbf16>
    %362 = vector.shape_cast %361 : vector<1x288xbf16> to vector<288xbf16>
    %c19_156 = arith.constant 19 : index
    %c0_157 = arith.constant 0 : index
    %363 = vector.load %arg6[%c19_156, %c0_157] : memref<27x288xbf16, #tpu.memory_space<vmem>>, vector<1x288xbf16>
    %364 = vector.shape_cast %363 : vector<1x288xbf16> to vector<288xbf16>
    %365 = vector.shape_cast %362 : vector<288xbf16> to vector<1x288xbf16>
    tpu.vector_store %arg6[%c19_156, %c0_157], %365 {strides = array<i32>} : memref<27x288xbf16, #tpu.memory_space<vmem>>, vector<1x288xbf16>,
    %c2_158 = arith.constant 2 : index
    %c2_159 = arith.constant 2 : index
    %366 = vector.load %arg5[%c2_158, %c2_159] : memref<3x326xbf16, #tpu.memory_space<vmem>>, vector<1x288xbf16>
    %367 = vector.shape_cast %366 : vector<1x288xbf16> to vector<288xbf16>
    %c20_160 = arith.constant 20 : index
    %c0_161 = arith.constant 0 : index
    %368 = vector.load %arg6[%c20_160, %c0_161] : memref<27x288xbf16, #tpu.memory_space<vmem>>, vector<1x288xbf16>
    %369 = vector.shape_cast %368 : vector<1x288xbf16> to vector<288xbf16>
    %370 = vector.shape_cast %367 : vector<288xbf16> to vector<1x288xbf16>
    tpu.vector_store %arg6[%c20_160, %c0_161], %370 {strides = array<i32>} : memref<27x288xbf16, #tpu.memory_space<vmem>>, vector<1x288xbf16>,
    %c2_162 = arith.constant 2 : index
    %c18_163 = arith.constant 18 : index
    %371 = vector.load %arg5[%c2_162, %c18_163] : memref<3x326xbf16, #tpu.memory_space<vmem>>, vector<1x288xbf16>
    %372 = vector.shape_cast %371 : vector<1x288xbf16> to vector<288xbf16>
    %c21 = arith.constant 21 : index
    %c0_164 = arith.constant 0 : index
    %373 = vector.load %arg6[%c21, %c0_164] : memref<27x288xbf16, #tpu.memory_space<vmem>>, vector<1x288xbf16>
    %374 = vector.shape_cast %373 : vector<1x288xbf16> to vector<288xbf16>
    %375 = vector.shape_cast %372 : vector<288xbf16> to vector<1x288xbf16>
    tpu.vector_store %arg6[%c21, %c0_164], %375 {strides = array<i32>} : memref<27x288xbf16, #tpu.memory_space<vmem>>, vector<1x288xbf16>,
    %c2_165 = arith.constant 2 : index
    %c19_166 = arith.constant 19 : index
    %376 = vector.load %arg5[%c2_165, %c19_166] : memref<3x326xbf16, #tpu.memory_space<vmem>>, vector<1x288xbf16>
    %377 = vector.shape_cast %376 : vector<1x288xbf16> to vector<288xbf16>
    %c22 = arith.constant 22 : index
    %c0_167 = arith.constant 0 : index
    %378 = vector.load %arg6[%c22, %c0_167] : memref<27x288xbf16, #tpu.memory_space<vmem>>, vector<1x288xbf16>
    %379 = vector.shape_cast %378 : vector<1x288xbf16> to vector<288xbf16>
    %380 = vector.shape_cast %377 : vector<288xbf16> to vector<1x288xbf16>
    tpu.vector_store %arg6[%c22, %c0_167], %380 {strides = array<i32>} : memref<27x288xbf16, #tpu.memory_space<vmem>>, vector<1x288xbf16>,
    %c2_168 = arith.constant 2 : index
    %c20_169 = arith.constant 20 : index
    %381 = vector.load %arg5[%c2_168, %c20_169] : memref<3x326xbf16, #tpu.memory_space<vmem>>, vector<1x288xbf16>
    %382 = vector.shape_cast %381 : vector<1x288xbf16> to vector<288xbf16>
    %c23 = arith.constant 23 : index
    %c0_170 = arith.constant 0 : index
    %383 = vector.load %arg6[%c23, %c0_170] : memref<27x288xbf16, #tpu.memory_space<vmem>>, vector<1x288xbf16>
    %384 = vector.shape_cast %383 : vector<1x288xbf16> to vector<288xbf16>
    %385 = vector.shape_cast %382 : vector<288xbf16> to vector<1x288xbf16>
    tpu.vector_store %arg6[%c23, %c0_170], %385 {strides = array<i32>} : memref<27x288xbf16, #tpu.memory_space<vmem>>, vector<1x288xbf16>,
    %c2_171 = arith.constant 2 : index
    %c36_172 = arith.constant 36 : index
    %386 = vector.load %arg5[%c2_171, %c36_172] : memref<3x326xbf16, #tpu.memory_space<vmem>>, vector<1x288xbf16>
    %387 = vector.shape_cast %386 : vector<1x288xbf16> to vector<288xbf16>
    %c24 = arith.constant 24 : index
    %c0_173 = arith.constant 0 : index
    %388 = vector.load %arg6[%c24, %c0_173] : memref<27x288xbf16, #tpu.memory_space<vmem>>, vector<1x288xbf16>
    %389 = vector.shape_cast %388 : vector<1x288xbf16> to vector<288xbf16>
    %390 = vector.shape_cast %387 : vector<288xbf16> to vector<1x288xbf16>
    tpu.vector_store %arg6[%c24, %c0_173], %390 {strides = array<i32>} : memref<27x288xbf16, #tpu.memory_space<vmem>>, vector<1x288xbf16>,
    %c2_174 = arith.constant 2 : index
    %c37_175 = arith.constant 37 : index
    %391 = vector.load %arg5[%c2_174, %c37_175] : memref<3x326xbf16, #tpu.memory_space<vmem>>, vector<1x288xbf16>
    %392 = vector.shape_cast %391 : vector<1x288xbf16> to vector<288xbf16>
    %c25 = arith.constant 25 : index
    %c0_176 = arith.constant 0 : index
    %393 = vector.load %arg6[%c25, %c0_176] : memref<27x288xbf16, #tpu.memory_space<vmem>>, vector<1x288xbf16>
    %394 = vector.shape_cast %393 : vector<1x288xbf16> to vector<288xbf16>
    %395 = vector.shape_cast %392 : vector<288xbf16> to vector<1x288xbf16>
    tpu.vector_store %arg6[%c25, %c0_176], %395 {strides = array<i32>} : memref<27x288xbf16, #tpu.memory_space<vmem>>, vector<1x288xbf16>,
    %c2_177 = arith.constant 2 : index
    %c38_178 = arith.constant 38 : index
    %396 = vector.load %arg5[%c2_177, %c38_178] : memref<3x326xbf16, #tpu.memory_space<vmem>>, vector<1x288xbf16>
    %397 = vector.shape_cast %396 : vector<1x288xbf16> to vector<288xbf16>
    %c26 = arith.constant 26 : index
    %c0_179 = arith.constant 0 : index
    %398 = vector.load %arg6[%c26, %c0_179] : memref<27x288xbf16, #tpu.memory_space<vmem>>, vector<1x288xbf16>
    %399 = vector.shape_cast %398 : vector<1x288xbf16> to vector<288xbf16>
    %400 = vector.shape_cast %397 : vector<288xbf16> to vector<1x288xbf16>
    tpu.vector_store %arg6[%c26, %c0_179], %400 {strides = array<i32>} : memref<27x288xbf16, #tpu.memory_space<vmem>>, vector<1x288xbf16>,
    %c0_180 = arith.constant 0 : index
    %c0_181 = arith.constant 0 : index
    %401 = vector.load %arg2[%c0_180, %c0_181] : memref<8x27xbf16, #tpu.memory_space<vmem>>, vector<8x27xbf16>
    %c0_182 = arith.constant 0 : index
    %c0_183 = arith.constant 0 : index
    %402 = vector.load %arg6[%c0_182, %c0_183] : memref<27x288xbf16, #tpu.memory_space<vmem>>, vector<27x288xbf16>
    %cst_184 = arith.constant dense<0.000000e+00> : vector<8x288xf32>
    %403 = tpu.matmul %401, %402, %cst_184 {dimension_numbers = #tpu.dot_dimension_numbers<[1], [0], [0], [1], [0, 0, 1, 1], [], []>} : vector<8x27xbf16>, vector<27x288xbf16>, vector<8x288xf32> -> vector<8x288xf32>
    %c0_185 = arith.constant 0 : index
    %c0_186 = arith.constant 0 : index
    %404 = vector.load %arg3[%c0_185, %c0_186] : memref<8x1xf32, #tpu.memory_space<vmem>>, vector<8x1xf32>
    %405 = vector.broadcast %404 : vector<8x1xf32> to vector<8x288xf32>
    %406 = arith.addf %403, %405 : vector<8x288xf32>
    %cst_187 = arith.constant 0.000000e+00 : f32
    %407 = vector.broadcast %cst_187 : f32 to vector<8x288xf32>
    %408 = arith.maximumf %406, %407 : vector<8x288xf32>
    %409 = vector.extract_strided_slice %408 {offsets = [0, 0], sizes = [8, 16], strides = [1, 1]} : vector<8x288xf32> to vector<8x16xf32>
    %c0_188 = arith.constant 0 : index
    %c0_189 = arith.constant 0 : index
    %c0_190 = arith.constant 0 : index
    %c0_191 = arith.constant 0 : index
    %410 = vector.load %arg4[%c0_188, %c0_189, %c0_190, %c0_191] : memref<1x8x16x16xf32, #tpu.memory_space<vmem>>, vector<1x8x1x16xf32>
    %411 = vector.shape_cast %410 : vector<1x8x1x16xf32> to vector<8x16xf32>
    %412 = vector.shape_cast %409 : vector<8x16xf32> to vector<1x8x1x16xf32>
    tpu.vector_store %arg4[%c0_188, %c0_189, %c0_190, %c0_191], %412 {strides = array<i32>} : memref<1x8x16x16xf32, #tpu.memory_space<vmem>>, vector<1x8x1x16xf32>,
    %413 = vector.extract_strided_slice %408 {offsets = [0, 18], sizes = [8, 16], strides = [1, 1]} : vector<8x288xf32> to vector<8x16xf32>
    %c0_192 = arith.constant 0 : index
    %c0_193 = arith.constant 0 : index
    %c1_194 = arith.constant 1 : index
    %c0_195 = arith.constant 0 : index
    %414 = vector.load %arg4[%c0_192, %c0_193, %c1_194, %c0_195] : memref<1x8x16x16xf32, #tpu.memory_space<vmem>>, vector<1x8x1x16xf32>
    %415 = vector.shape_cast %414 : vector<1x8x1x16xf32> to vector<8x16xf32>
    %416 = vector.shape_cast %413 : vector<8x16xf32> to vector<1x8x1x16xf32>
    tpu.vector_store %arg4[%c0_192, %c0_193, %c1_194, %c0_195], %416 {strides = array<i32>} : memref<1x8x16x16xf32, #tpu.memory_space<vmem>>, vector<1x8x1x16xf32>,
    %417 = vector.extract_strided_slice %408 {offsets = [0, 36], sizes = [8, 16], strides = [1, 1]} : vector<8x288xf32> to vector<8x16xf32>
    %c0_196 = arith.constant 0 : index
    %c0_197 = arith.constant 0 : index
    %c2_198 = arith.constant 2 : index
    %c0_199 = arith.constant 0 : index
    %418 = vector.load %arg4[%c0_196, %c0_197, %c2_198, %c0_199] : memref<1x8x16x16xf32, #tpu.memory_space<vmem>>, vector<1x8x1x16xf32>
    %419 = vector.shape_cast %418 : vector<1x8x1x16xf32> to vector<8x16xf32>
    %420 = vector.shape_cast %417 : vector<8x16xf32> to vector<1x8x1x16xf32>
    tpu.vector_store %arg4[%c0_196, %c0_197, %c2_198, %c0_199], %420 {strides = array<i32>} : memref<1x8x16x16xf32, #tpu.memory_space<vmem>>, vector<1x8x1x16xf32>,
    %421 = vector.extract_strided_slice %408 {offsets = [0, 54], sizes = [8, 16], strides = [1, 1]} : vector<8x288xf32> to vector<8x16xf32>
    %c0_200 = arith.constant 0 : index
    %c0_201 = arith.constant 0 : index
    %c3_202 = arith.constant 3 : index
    %c0_203 = arith.constant 0 : index
    %422 = vector.load %arg4[%c0_200, %c0_201, %c3_202, %c0_203] : memref<1x8x16x16xf32, #tpu.memory_space<vmem>>, vector<1x8x1x16xf32>
    %423 = vector.shape_cast %422 : vector<1x8x1x16xf32> to vector<8x16xf32>
    %424 = vector.shape_cast %421 : vector<8x16xf32> to vector<1x8x1x16xf32>
    tpu.vector_store %arg4[%c0_200, %c0_201, %c3_202, %c0_203], %424 {strides = array<i32>} : memref<1x8x16x16xf32, #tpu.memory_space<vmem>>, vector<1x8x1x16xf32>,
    %425 = vector.extract_strided_slice %408 {offsets = [0, 72], sizes = [8, 16], strides = [1, 1]} : vector<8x288xf32> to vector<8x16xf32>
    %c0_204 = arith.constant 0 : index
    %c0_205 = arith.constant 0 : index
    %c4_206 = arith.constant 4 : index
    %c0_207 = arith.constant 0 : index
    %426 = vector.load %arg4[%c0_204, %c0_205, %c4_206, %c0_207] : memref<1x8x16x16xf32, #tpu.memory_space<vmem>>, vector<1x8x1x16xf32>
    %427 = vector.shape_cast %426 : vector<1x8x1x16xf32> to vector<8x16xf32>
    %428 = vector.shape_cast %425 : vector<8x16xf32> to vector<1x8x1x16xf32>
    tpu.vector_store %arg4[%c0_204, %c0_205, %c4_206, %c0_207], %428 {strides = array<i32>} : memref<1x8x16x16xf32, #tpu.memory_space<vmem>>, vector<1x8x1x16xf32>,
    %429 = vector.extract_strided_slice %408 {offsets = [0, 90], sizes = [8, 16], strides = [1, 1]} : vector<8x288xf32> to vector<8x16xf32>
    %c0_208 = arith.constant 0 : index
    %c0_209 = arith.constant 0 : index
    %c5_210 = arith.constant 5 : index
    %c0_211 = arith.constant 0 : index
    %430 = vector.load %arg4[%c0_208, %c0_209, %c5_210, %c0_211] : memref<1x8x16x16xf32, #tpu.memory_space<vmem>>, vector<1x8x1x16xf32>
    %431 = vector.shape_cast %430 : vector<1x8x1x16xf32> to vector<8x16xf32>
    %432 = vector.shape_cast %429 : vector<8x16xf32> to vector<1x8x1x16xf32>
    tpu.vector_store %arg4[%c0_208, %c0_209, %c5_210, %c0_211], %432 {strides = array<i32>} : memref<1x8x16x16xf32, #tpu.memory_space<vmem>>, vector<1x8x1x16xf32>,
    %433 = vector.extract_strided_slice %408 {offsets = [0, 108], sizes = [8, 16], strides = [1, 1]} : vector<8x288xf32> to vector<8x16xf32>
    %c0_212 = arith.constant 0 : index
    %c0_213 = arith.constant 0 : index
    %c6_214 = arith.constant 6 : index
    %c0_215 = arith.constant 0 : index
    %434 = vector.load %arg4[%c0_212, %c0_213, %c6_214, %c0_215] : memref<1x8x16x16xf32, #tpu.memory_space<vmem>>, vector<1x8x1x16xf32>
    %435 = vector.shape_cast %434 : vector<1x8x1x16xf32> to vector<8x16xf32>
    %436 = vector.shape_cast %433 : vector<8x16xf32> to vector<1x8x1x16xf32>
    tpu.vector_store %arg4[%c0_212, %c0_213, %c6_214, %c0_215], %436 {strides = array<i32>} : memref<1x8x16x16xf32, #tpu.memory_space<vmem>>, vector<1x8x1x16xf32>,
    %437 = vector.extract_strided_slice %408 {offsets = [0, 126], sizes = [8, 16], strides = [1, 1]} : vector<8x288xf32> to vector<8x16xf32>
    %c0_216 = arith.constant 0 : index
    %c0_217 = arith.constant 0 : index
    %c7_218 = arith.constant 7 : index
    %c0_219 = arith.constant 0 : index
    %438 = vector.load %arg4[%c0_216, %c0_217, %c7_218, %c0_219] : memref<1x8x16x16xf32, #tpu.memory_space<vmem>>, vector<1x8x1x16xf32>
    %439 = vector.shape_cast %438 : vector<1x8x1x16xf32> to vector<8x16xf32>
    %440 = vector.shape_cast %437 : vector<8x16xf32> to vector<1x8x1x16xf32>
    tpu.vector_store %arg4[%c0_216, %c0_217, %c7_218, %c0_219], %440 {strides = array<i32>} : memref<1x8x16x16xf32, #tpu.memory_space<vmem>>, vector<1x8x1x16xf32>,
    %441 = vector.extract_strided_slice %408 {offsets = [0, 144], sizes = [8, 16], strides = [1, 1]} : vector<8x288xf32> to vector<8x16xf32>
    %c0_220 = arith.constant 0 : index
    %c0_221 = arith.constant 0 : index
    %c8_222 = arith.constant 8 : index
    %c0_223 = arith.constant 0 : index
    %442 = vector.load %arg4[%c0_220, %c0_221, %c8_222, %c0_223] : memref<1x8x16x16xf32, #tpu.memory_space<vmem>>, vector<1x8x1x16xf32>
    %443 = vector.shape_cast %442 : vector<1x8x1x16xf32> to vector<8x16xf32>
    %444 = vector.shape_cast %441 : vector<8x16xf32> to vector<1x8x1x16xf32>
    tpu.vector_store %arg4[%c0_220, %c0_221, %c8_222, %c0_223], %444 {strides = array<i32>} : memref<1x8x16x16xf32, #tpu.memory_space<vmem>>, vector<1x8x1x16xf32>,
    %445 = vector.extract_strided_slice %408 {offsets = [0, 162], sizes = [8, 16], strides = [1, 1]} : vector<8x288xf32> to vector<8x16xf32>
    %c0_224 = arith.constant 0 : index
    %c0_225 = arith.constant 0 : index
    %c9_226 = arith.constant 9 : index
    %c0_227 = arith.constant 0 : index
    %446 = vector.load %arg4[%c0_224, %c0_225, %c9_226, %c0_227] : memref<1x8x16x16xf32, #tpu.memory_space<vmem>>, vector<1x8x1x16xf32>
    %447 = vector.shape_cast %446 : vector<1x8x1x16xf32> to vector<8x16xf32>
    %448 = vector.shape_cast %445 : vector<8x16xf32> to vector<1x8x1x16xf32>
    tpu.vector_store %arg4[%c0_224, %c0_225, %c9_226, %c0_227], %448 {strides = array<i32>} : memref<1x8x16x16xf32, #tpu.memory_space<vmem>>, vector<1x8x1x16xf32>,
    %449 = vector.extract_strided_slice %408 {offsets = [0, 180], sizes = [8, 16], strides = [1, 1]} : vector<8x288xf32> to vector<8x16xf32>
    %c0_228 = arith.constant 0 : index
    %c0_229 = arith.constant 0 : index
    %c10_230 = arith.constant 10 : index
    %c0_231 = arith.constant 0 : index
    %450 = vector.load %arg4[%c0_228, %c0_229, %c10_230, %c0_231] : memref<1x8x16x16xf32, #tpu.memory_space<vmem>>, vector<1x8x1x16xf32>
    %451 = vector.shape_cast %450 : vector<1x8x1x16xf32> to vector<8x16xf32>
    %452 = vector.shape_cast %449 : vector<8x16xf32> to vector<1x8x1x16xf32>
    tpu.vector_store %arg4[%c0_228, %c0_229, %c10_230, %c0_231], %452 {strides = array<i32>} : memref<1x8x16x16xf32, #tpu.memory_space<vmem>>, vector<1x8x1x16xf32>,
    %453 = vector.extract_strided_slice %408 {offsets = [0, 198], sizes = [8, 16], strides = [1, 1]} : vector<8x288xf32> to vector<8x16xf32>
    %c0_232 = arith.constant 0 : index
    %c0_233 = arith.constant 0 : index
    %c11_234 = arith.constant 11 : index
    %c0_235 = arith.constant 0 : index
    %454 = vector.load %arg4[%c0_232, %c0_233, %c11_234, %c0_235] : memref<1x8x16x16xf32, #tpu.memory_space<vmem>>, vector<1x8x1x16xf32>
    %455 = vector.shape_cast %454 : vector<1x8x1x16xf32> to vector<8x16xf32>
    %456 = vector.shape_cast %453 : vector<8x16xf32> to vector<1x8x1x16xf32>
    tpu.vector_store %arg4[%c0_232, %c0_233, %c11_234, %c0_235], %456 {strides = array<i32>} : memref<1x8x16x16xf32, #tpu.memory_space<vmem>>, vector<1x8x1x16xf32>,
    %457 = vector.extract_strided_slice %408 {offsets = [0, 216], sizes = [8, 16], strides = [1, 1]} : vector<8x288xf32> to vector<8x16xf32>
    %c0_236 = arith.constant 0 : index
    %c0_237 = arith.constant 0 : index
    %c12_238 = arith.constant 12 : index
    %c0_239 = arith.constant 0 : index
    %458 = vector.load %arg4[%c0_236, %c0_237, %c12_238, %c0_239] : memref<1x8x16x16xf32, #tpu.memory_space<vmem>>, vector<1x8x1x16xf32>
    %459 = vector.shape_cast %458 : vector<1x8x1x16xf32> to vector<8x16xf32>
    %460 = vector.shape_cast %457 : vector<8x16xf32> to vector<1x8x1x16xf32>
    tpu.vector_store %arg4[%c0_236, %c0_237, %c12_238, %c0_239], %460 {strides = array<i32>} : memref<1x8x16x16xf32, #tpu.memory_space<vmem>>, vector<1x8x1x16xf32>,
    %461 = vector.extract_strided_slice %408 {offsets = [0, 234], sizes = [8, 16], strides = [1, 1]} : vector<8x288xf32> to vector<8x16xf32>
    %c0_240 = arith.constant 0 : index
    %c0_241 = arith.constant 0 : index
    %c13_242 = arith.constant 13 : index
    %c0_243 = arith.constant 0 : index
    %462 = vector.load %arg4[%c0_240, %c0_241, %c13_242, %c0_243] : memref<1x8x16x16xf32, #tpu.memory_space<vmem>>, vector<1x8x1x16xf32>
    %463 = vector.shape_cast %462 : vector<1x8x1x16xf32> to vector<8x16xf32>
    %464 = vector.shape_cast %461 : vector<8x16xf32> to vector<1x8x1x16xf32>
    tpu.vector_store %arg4[%c0_240, %c0_241, %c13_242, %c0_243], %464 {strides = array<i32>} : memref<1x8x16x16xf32, #tpu.memory_space<vmem>>, vector<1x8x1x16xf32>,
    %465 = vector.extract_strided_slice %408 {offsets = [0, 252], sizes = [8, 16], strides = [1, 1]} : vector<8x288xf32> to vector<8x16xf32>
    %c0_244 = arith.constant 0 : index
    %c0_245 = arith.constant 0 : index
    %c14_246 = arith.constant 14 : index
    %c0_247 = arith.constant 0 : index
    %466 = vector.load %arg4[%c0_244, %c0_245, %c14_246, %c0_247] : memref<1x8x16x16xf32, #tpu.memory_space<vmem>>, vector<1x8x1x16xf32>
    %467 = vector.shape_cast %466 : vector<1x8x1x16xf32> to vector<8x16xf32>
    %468 = vector.shape_cast %465 : vector<8x16xf32> to vector<1x8x1x16xf32>
    tpu.vector_store %arg4[%c0_244, %c0_245, %c14_246, %c0_247], %468 {strides = array<i32>} : memref<1x8x16x16xf32, #tpu.memory_space<vmem>>, vector<1x8x1x16xf32>,
    %469 = vector.extract_strided_slice %408 {offsets = [0, 270], sizes = [8, 16], strides = [1, 1]} : vector<8x288xf32> to vector<8x16xf32>
    %c0_248 = arith.constant 0 : index
    %c0_249 = arith.constant 0 : index
    %c15_250 = arith.constant 15 : index
    %c0_251 = arith.constant 0 : index
    %470 = vector.load %arg4[%c0_248, %c0_249, %c15_250, %c0_251] : memref<1x8x16x16xf32, #tpu.memory_space<vmem>>, vector<1x8x1x16xf32>
    %471 = vector.shape_cast %470 : vector<1x8x1x16xf32> to vector<8x16xf32>
    %472 = vector.shape_cast %469 : vector<8x16xf32> to vector<1x8x1x16xf32>
    tpu.vector_store %arg4[%c0_248, %c0_249, %c15_250, %c0_251], %472 {strides = array<i32>} : memref<1x8x16x16xf32, #tpu.memory_space<vmem>>, vector<1x8x1x16xf32>,
    return
  }
  func.func @transform_0(%arg0: i32) -> (i32, i32, i32, i32) {
    %c0_i32 = arith.constant 0 : i32
    %c0_i32_0 = arith.constant 0 : i32
    %c0_i32_1 = arith.constant 0 : i32
    %c0_i32_2 = arith.constant 0 : i32
    return %arg0, %c0_i32, %c0_i32_0, %c0_i32_1 : i32, i32, i32, i32
  }
  func.func @transform_1(%arg0: i32) -> (i32, i32) {
    %c0_i32 = arith.constant 0 : i32
    %c0_i32_0 = arith.constant 0 : i32
    %c0_i32_1 = arith.constant 0 : i32
    return %c0_i32, %c0_i32_0 : i32, i32
  }
  func.func @transform_2(%arg0: i32) -> (i32, i32) {
    %c0_i32 = arith.constant 0 : i32
    %c0_i32_0 = arith.constant 0 : i32
    %c0_i32_1 = arith.constant 0 : i32
    return %c0_i32, %c0_i32_0 : i32, i32
  }
  func.func @transform_3(%arg0: i32) -> (i32, i32, i32, i32) {
    %c0_i32 = arith.constant 0 : i32
    %c0_i32_0 = arith.constant 0 : i32
    %c0_i32_1 = arith.constant 0 : i32
    %c0_i32_2 = arith.constant 0 : i32
    return %arg0, %c0_i32, %c0_i32_0, %c0_i32_1 : i32, i32, i32, i32
  }
}

</mosaic_0001>

<bundles_post_ra>
// kernel: feature_extractor_forward.1
= control target key start
LH: loop header
LB: loop body
LE: loop exit
PB: predicated region body
PF: predicated region fallthrough
CT: control target
= control target key end

     0   :  { %s3296_s12 = smov 0   ;;  %s4894_s0 = inlined_call_operand.vmem [shape: bf16[2,3,16,16], index: 0, kind: input, shape index: {}]   ;;  %s4895_s1 = inlined_call_operand.vmem [shape: bf16[8,27], index: 1, kind: input, shape index: {}]   ;;  %s4896_s2 = inlined_call_operand.vmem [shape: f32[8,1], index: 2, kind: input, shape index: {}]   ;;  %s4897_s3 = inlined_call_operand.vmem [shape: f32[2,8,16,16], index: 3, kind: output, shape index: {}]  }
   0x1 LB: > { %s3022_s13 = sadd.s32 4294967295, %s3234_s12   ;;  %p3026_p0 = scmp.ge.s32.totalorder %s3234_s12, 1  ;;  %s3234_s12 = sphi %s3296_s12, %s13_s12  }
   0x2   : > { %p137_p1 = scmp.lt.s32.totalorder %s3234_s12, 3 }
   0x4   : > { %p138_p2 = pnand %p3026_p0, %p137_p1 }
   0x5   : > { %p161_p3 = scmp.lt.s32.totalorder (!%p138_p2), %s3022_s13, 1  ;;  %vm172_vm0 = vcmask (!%p138_p2), 1041408   ;;  %vm175_vm1 = vcmask (!%p138_p2), 1043458   ;;  %vm173_vm2 = vsmask.f32 (!%p138_p2), 1280  ;;  %vm179_vm5 = vcmask (!%p138_p2), 570372  }
   0x6   : > { %141 = sbr.rel (%p138_p2) target bundleno = 1161 (0x489), region = 32  ;;  %vm4924_vm3 = vsmask.f32 (!%p138_p2), 3328  ;;  %vm174_vm4 = vmand (!%p138_p2), %vm172_vm0, %vm173_vm2  ;;  %vm4898_vm6 = vsmask.f32 (!%p138_p2), 5376  ;;  %v199_v2 = vlaneseq (!%p138_p2)  ;;  %s3237_s18 = smov (!%p138_p2), 19  }
   0x7   : > { %v3236_v0 = vmov (!%p138_p2), 1983009808   ;;  %vm177_vm7 = vmand (!%p138_p2), %vm175_vm1, %vm4924_vm3  ;;  %v183_v3 = vld [vmem:[#allocation2] sm:$0x3f] (!%p138_p2)  ;;  %s3238_s19 = smov (!%p138_p2), 55   ;;  %s3239_s20 = smov (!%p138_p2), 37  }
   0x8   : > { %v197_v1 = vunpack.c.l.s4 (!%p138_p2), %v3236_v0  ;;  %vm178_vm8 = vmor (!%p138_p2), %vm177_vm7, %vm174_vm4  ;;  %v3313_v6 = vshrl.u32 (!%p138_p2), %v199_v2, 7  ;;  %s3240_s21 = smov (!%p138_p2), 73   ;;  %s3241_s22 = smov (!%p138_p2), 91   ;;  %vm206_vm11 = vcmask (!%p138_p2), 278680   ;;  %vm207_vm12 = vsmask.f32 (!%p138_p2), 256 }
   0x9   : > { %vm181_vm9 = vmand (!%p138_p2), %vm179_vm5, %vm4898_vm6  ;;  %s3242_s23 = smov (!%p138_p2), 109   ;;  %s3243_s24 = smov (!%p138_p2), 127   ;;  %vm220_vm14 = vcmask (!%p138_p2), 426280   ;;  %vm230_vm0 = vcmask (!%p138_p2), 573880   ;;  %vm591_vm1 = vcmask (!%p138_p2), 279705   ;;  %vm4905_vm7 = vcmask (!%p138_p2), 721480  }
   0xa   : > { %vm182_vm10 = vmor (!%p138_p2), %vm181_vm9, %vm178_vm8  ;;  %v198_v5 = vunpack.c.0.s8 (!%p138_p2), %v197_v1  ;;  %s3244_s25 = smov (!%p138_p2), 17   ;;  %s3245_s26 = smov (!%p138_p2), 35   ;;  %vm603_vm8 = vcmask (!%p138_p2), 427305  }
   0xb   : > { %v184_v7 = vsel (!%p138_p2), %vm182_vm10, 0, %v183_v3  ;;  %s3246_s27 = smov (!%p138_p2), 53   ;;  %s3247_s28 = smov (!%p138_p2), 71   ;;  %vm208_vm13 = vmand (!%p138_p2), %vm206_vm11, %vm207_vm12 }
   0xc   : > { %185 = vst [vmem:[#allocation2] sm:$0x3f] (!%p138_p2), %v184_v7  ;;  %v3316_v13 = vsub.s32 (!%p138_p2), %v198_v5, %v3313_v6  ;;  %s3248_s29 = smov (!%p138_p2), 89   ;;  %s3249_s30 = smov (!%p138_p2), 107   ;;  %vm221_vm15 = vmand (!%p138_p2), %vm220_vm14, %vm207_vm12 }
   0xd   : > { %s5115_s13 = smov (!%p161_p3, %s3022_s13), 1  ;;  %s3250_s4 = smov 125   ;;  %vm231_vm4 = vmand %vm230_vm0, %vm207_vm12 }
   0xe   : > { %s3103_s14 = smul.u32 24, %s5115_s13  ;;  %s3251_s5 = smov 15   ;;  %vm592_vm5 = vmand %vm591_vm1, %vm173_vm2 }
   0xf   : > { %s3252_s6 = smov 33   ;;  %vm241_vm9 = vmand %vm4905_vm7, %vm207_vm12  ;;  %s3253_s7 = smov 126  }
  0x10   : > { %s165_s17 = scalar_lea.vmem %s4894_s0, %s3103_s14  ;;  %vm604_vm10 = vmand %vm603_vm8, %vm173_vm2  ;;  %vm621_vm8 = vcmask 722505   ;;  %s3254_s8 = smov 92  }
  0x11   : > { %v3079_v4 = vld [vmem:[%s165_s17] sm:$0xff]   ;;  %v3090_v10 = vld [vmem:[%s165_s17 + $0x8] sm:$0xff]   ;;  %v3091_v14 = vld [vmem:[%s165_s17 + $0x10] sm:$0xff]   ;;  %s3255_s9 = smov 110   ;;  %s3256_s10 = smov 108  }
  0x12   : > { %v3080_v8 = vunpack.c.l.bf16 %v3079_v4  ;;  %v3081_v9 = vunpack.c.h.bf16 %v3079_v4  ;;  %v3084_v17 = vunpack.c.l.bf16 %v3090_v10  ;;  %v3085_v18 = vunpack.c.h.bf16 %v3090_v10  ;;  %vm622_vm6 = vmand %vm621_vm8, %vm173_vm2  ;;  %s3257_s11 = smov 90  }
  0x13   : > { %v3088_v20 = vunpack.c.l.bf16 %v3091_v14  ;;  %v3089_v21 = vunpack.c.h.bf16 %v3091_v14  ;;  %vm4914_vm8 = vcmask 1039360  }
  0x14   : > { %v190_v11 = vmul.f32 0.017429193, %v3080_v8  ;;  %v191_v12 = vmul.f32 0.017429193, %v3081_v9  ;;  %v396_v23 = vmul.f32 0.017507004, %v3084_v17 }
  0x15   : > { %v397_v24 = vmul.f32 0.017507004, %v3085_v18  ;;  %v574_v27 = vmul.f32 0.017124753, %v3088_v20  ;;  %v575_v28 = vmul.f32 0.017124753, %v3089_v21 }
  0x16   : > { %v192_v15 = vadd.f32 -1.8044444, %v190_v11  ;;  %v193_v16 = vadd.f32 -1.8044444, %v191_v12  ;;  %v398_v30 = vadd.f32 -2.0357144, %v396_v23 }
  0x17   : > { %v3321_v31 = vadd.f32 -2.0357144, %v397_v24  ;;  %v576_v33 = vadd.f32 -2.117904, %v574_v27  ;;  %v3324_v34 = vadd.f32 -2.117904, %v575_v28 }
  0x18   : > { %v194_v19 = vpack.c.bf16 %v193_v16, %v192_v15  ;;  %v3036_v38 = vpack.c.bf16 %v193_v16, %v193_v16  ;;  %v209_v21 = vld [vmem:[#allocation2] sm:$0x1] }
  0x19   : > { %v400_v36 = vpack.c.bf16 %v3321_v31, %v398_v30  ;;  %v578_v39 = vpack.c.bf16 %v3324_v34, %v576_v33  ;;  %v3049_v62 = vpack.c.bf16 %v3321_v31, %v3321_v31  ;;  %v3058_v63 = vpack.c.bf16 %v3324_v34, %v3324_v34 }
  0x1a   : > { %v202_v22 = vrot.slane %v194_v19, %v3316_v13  ;;  %v301_v42 = vrot.slane %v3036_v38, %v3316_v13 }
  0x1b   : > { %v408_v41 = vrot.slane %v400_v36, %v3316_v13  ;;  %v586_v43 = vrot.slane %v578_v39, %v3316_v13  ;;  %v493_v1 = vrot.slane %v3049_v62, %v3316_v13  ;;  %v678_v2 = vrot.slane %v3058_v63, %v3316_v13 }
  0x1c   : > { %203 = vrot.lane.b32.xlu0 %v202_v22, %s3237_s18  ;;  %v213_v25 = vshrl.u32 %v202_v22, 16  ;;  %v3031_v26 = vrot.slane %v202_v22, 9  ;;  %v245_v32 = vcombine.high %v202_v22, %v202_v22  ;;  %v311_v46 = vshrl.u32 %v301_v42, 16 }
  0x1d   : > { %v410_v44 = vshll.u32 %v408_v41, 16  ;;  %v587_v45 = vrot.slane %v586_v43, 7  ;;  %v597_v47 = vshrl.u32 %v586_v43, 16  ;;  %v3038_v49 = vrot.slane %v301_v42, 9 }
  0x1e   : > { %227 = vrot.lane.b32.xlu1 %v3031_v26, %s3238_s19  ;;  %v3032_v29 = vrot.slane %v213_v25, 9  ;;  %v255_v35 = vshrl.u32 %v245_v32, 16  ;;  %v3034_v37 = vrot.slane %v245_v32, 9  ;;  %v3039_v51 = vrot.slane %v311_v46, 9 }
  0x1f   : > { %v599_v48 = vrot.slane %v597_v47, 7  ;;  %v3045_v50 = vrot.slane %v410_v44, 9  ;;  %v3046_v52 = vrot.slane %v408_v41, 9  ;;  %v445_v53 = vcombine.high %v408_v41, %v408_v41 }
  0x20   : > { %217 = vrot.lane.b32.xlu0 %v213_v25, %s3239_s20  ;;  %v3035_v40 = vrot.slane %v255_v35, 9  ;;  %v343_v54 = vcombine.high %v301_v42, %v301_v42  ;;  %v626_v55 = vcombine.high %v586_v43, %v586_v43  ;;  %v495_v3 = vshll.u32 %v493_v1, 16 }
  0x21   : > { %v447_v56 = vshll.u32 %v445_v53, 16  ;;  %v3048_v0 = vrot.slane %v445_v53, 9  ;;  %v679_v4 = vrot.slane %v678_v2, 7  ;;  %v689_v5 = vshrl.u32 %v678_v2, 16 }
  0x22   : > { %237 = vrot.lane.b32.xlu1 %v3032_v29, %s3240_s21  ;;  %v627_v57 = vrot.slane %v626_v55, 7  ;;  %v353_v58 = vshrl.u32 %v343_v54, 16  ;;  %v637_v59 = vshrl.u32 %v626_v55, 16  ;;  %v3050_v8 = vrot.slane %v495_v3, 9 }
  0x23   : > { %v3047_v61 = vrot.slane %v447_v56, 9  ;;  %v691_v7 = vrot.slane %v689_v5, 7  ;;  %v3041_v9 = vrot.slane %v343_v54, 9  ;;  %v3051_v10 = vrot.slane %v493_v1, 9 }
  0x24   : > { %246 = vrot.lane.b32.xlu0 %v245_v32, %s3241_s22  ;;  %v639_v60 = vrot.slane %v637_v59, 7  ;;  %v529_v11 = vcombine.high %v493_v1, %v493_v1  ;;  %v3042_v12 = vrot.slane %v353_v58, 9  ;;  %v718_v14 = vcombine.high %v678_v2, %v678_v2 }
  0x26   : > { %259 = vrot.lane.b32.xlu1 %v255_v35, %s3242_s23  ;;  %v531_v15 = vshll.u32 %v529_v11, 16  ;;  %v719_v16 = vrot.slane %v718_v14, 7  ;;  %v729_v17 = vshrl.u32 %v718_v14, 16  ;;  %v3053_v20 = vrot.slane %v529_v11, 9  ;;  %v593_v35 = vld [vmem:[#allocation2] sm:$0x2] }
  0x28   : > { %269 = vrot.lane.b32.xlu0 %v3034_v37, %s3243_s24  ;;  %v731_v18 = vrot.slane %v729_v17, 7  ;;  %v3052_v19 = vrot.slane %v531_v15, 9 }
  0x2a   : > { %286 = vrot.lane.b32.xlu1 %v3035_v40, %s3244_s25 }
  0x2c   : > { %302 = vrot.lane.b32.xlu0 %v301_v42, %s3245_s26 }
  0x2e   : > { %412 = vrot.lane.b32.xlu1 %v410_v44, %s3237_s18 }
  0x30   : > { %588 = vrot.lane.b32.xlu0 %v587_v45, %s3237_s18  ;;  %s3077_s18 = sshll.u32 %s5115_s13, 7 }
  0x32   : > { %315 = vrot.lane.b32.xlu1 %v311_v46, %s3246_s27 }
  0x34   : > { %420 = vrot.lane.b32.xlu0 %v408_v41, %s3239_s20 }
  0x36   : > { %600 = vrot.lane.b32.xlu1 %v599_v48, %s3239_s20 }
  0x38   : > { %325 = vrot.lane.b32.xlu0 %v3038_v49, %s3247_s28 }
  0x3a   : > { %429 = vrot.lane.b32.xlu1 %v3045_v50, %s3238_s19 }
  0x3c   : > { %608 = vrot.lane.b32.xlu0 %v586_v43, %s3238_s19  ;;  %s3263_s19 = smov 114  }
  0x3e   : > { %335 = vrot.lane.b32.xlu1 %v3039_v51, %s3248_s29 }
  0x40   : > { %438 = vrot.lane.b32.xlu0 %v3046_v52, %s3240_s21 }
  0x42   : > { %618 = vrot.lane.b32.xlu1 %v597_v47, %s3240_s21  ;;  %s4060_s21 = scalar_lea.vmem %s4897_s3, %s3077_s18 }
  0x44   : > { %344 = vrot.lane.b32.xlu0 %v343_v54, %s3249_s30 }
  0x46   : > { %449 = vrot.lane.b32.xlu1 %v447_v56, %s3241_s22 }
  0x48   : > { %628 = vrot.lane.b32.xlu0 %v627_v57, %s3241_s22 }
  0x4a   : > { %357 = vrot.lane.b32.xlu1 %v353_v58, %s3250_s4 }
  0x4c   : > { %456 = vrot.lane.b32.xlu0 %v445_v53, %s3242_s23 }
  0x4e   : > { %640 = vrot.lane.b32.xlu1 %v639_v60, %s3242_s23 }
  0x50   : > { %465 = vrot.lane.b32.xlu0 %v3047_v61, %s3243_s24 }
  0x52   : > { %648 = vrot.lane.b32.xlu1 %v626_v55, %s3243_s24 }
  0x54   : > { %479 = vrot.lane.b32.xlu0 %v3048_v0, %s3244_s25 }
  0x56   : > { %663 = vrot.lane.b32.xlu1 %v637_v59, %s3244_s25  ;;  %s3267_s25 = smov 20  }
  0x58   : > { %497 = vrot.lane.b32.xlu0 %v495_v3, %s3245_s26 }
  0x5a   : > { %680 = vrot.lane.b32.xlu1 %v679_v4, %s3245_s26  ;;  %s3268_s26 = smov 112  }
  0x5c   : > { %504 = vrot.lane.b32.xlu0 %v493_v1, %s3246_s27 }
  0x5e   : > { %692 = vrot.lane.b32.xlu1 %v691_v7, %s3246_s27  ;;  %s3269_s27 = smov 94  }
  0x60   : > { %513 = vrot.lane.b32.xlu0 %v3050_v8, %s3247_s28 }
  0x62   : > { %700 = vrot.lane.b32.xlu1 %v678_v2, %s3247_s28  ;;  %s3270_s28 = smov 76  }
  0x64   : > { %373 = vrot.lane.b32.xlu0 %v3041_v9, %s3251_s5 }
  0x66   : > { %522 = vrot.lane.b32.xlu1 %v3051_v10, %s3248_s29 }
  0x68   : > { %710 = vrot.lane.b32.xlu0 %v689_v5, %s3248_s29  ;;  %s3271_s29 = smov 2  }
  0x6a   : > { %383 = vrot.lane.b32.xlu1 %v3042_v12, %s3252_s6 }
  0x6c   : > { %533 = vrot.lane.b32.xlu0 %v531_v15, %s3249_s30 }
  0x6e   : > { %720 = vrot.lane.b32.xlu1 %v719_v16, %s3249_s30  ;;  %s3272_s30 = smov 58  }
  0x70   : > { %540 = vrot.lane.b32.xlu0 %v529_v11, %s3250_s4 }
  0x72   : > { %732 = vrot.lane.b32.xlu1 %v731_v18, %s3250_s4  ;;  %s3273_s4 = smov 40  }
  0x74   : > { %553 = vrot.lane.b32.xlu0 %v3052_v19, %s3251_s5 }
  0x76   : > { %745 = vrot.lane.b32.xlu1 %v718_v14, %s3251_s5  ;;  %s3274_s5 = smov 22  }
  0x78   : > { %562 = vrot.lane.b32.xlu0 %v3053_v20, %s3252_s6 }
  0x7a   : > { %755 = vrot.lane.b32.xlu1 %v729_v17, %s3252_s6  ;;  %s3275_s6 = smov 4  }
  0x8e   : > { %v204_v22 = vpop.permute.xlu0 %203 }
  0x8f   : > { %v210_v23 = vsel %vm208_vm13, %v204_v22, %v209_v21  ;;  %vm4899_vm13 = vcmask 869080  }
  0x90   : > { %211 = vst [vmem:[#allocation2] sm:$0x1] %v210_v23  ;;  %v228_v24 = vpop.permute.xlu1 %227  ;;  %vm250_vm1 = vmand %vm4899_vm13, %vm207_vm12 }
  0x92   : > { %v218_v25 = vpop.permute.xlu0 %217 }
  0x94   : > { %v238_v26 = vpop.permute.xlu1 %237 }
  0x96   : > { %v247_v27 = vpop.permute.xlu0 %246 }
  0x97   : > { %v222_v28 = vld [vmem:[#allocation2] sm:$0x1] }
  0x98   : > { %v223_v29 = vsel %vm221_vm15, %v218_v25, %v222_v28  ;;  %v260_v30 = vpop.permute.xlu1 %259  ;;  %vm611_vm15 = vcmask 574905  }
  0x99   : > { %224 = vst [vmem:[#allocation2] sm:$0x1] %v223_v29 }
  0x9a   : > { %v3380_v31 = vpop.permute.xlu0 %269 }
  0x9b   : > { %v271_v63 = vrot.slane %v3380_v31, 6 }
  0x9c   : > { %v3382_v32 = vpop.permute.xlu1 %286 }
  0x9d   : > { %v273_v0 = vsel %vm4914_vm8, %v271_v63, %v3380_v31 }
  0x9e   : > { %v3386_v33 = vpop.permute.xlu0 %302 }
  0xa0   : > { %v232_v34 = vld [vmem:[#allocation2] sm:$0x1]  ;;  %v3389_v36 = vpop.permute.xlu1 %412 }
  0xa1   : > { %v233_v37 = vsel %vm231_vm4, %v228_v24, %v232_v34  ;;  %vm612_vm4 = vmand %vm611_vm15, %vm173_vm2  ;;  %vm4902_vm15 = vcmask 116738  }
  0xa2   : > { %234 = vst [vmem:[#allocation2] sm:$0x1] %v233_v37  ;;  %v589_v38 = vpop.permute.xlu0 %588 }
  0xa3   : > { %v594_v39 = vsel %vm592_vm5, %v589_v38, %v593_v35  ;;  %vm4900_vm5 = vcmask 1016680  }
  0xa4   : > { %595 = vst [vmem:[#allocation2] sm:$0x2] %v594_v39  ;;  %v3391_v40 = vpop.permute.xlu1 %315 }
  0xa6   : > { %v3393_v41 = vpop.permute.xlu0 %420 }
  0xa8   : > { %v601_v43 = vpop.permute.xlu1 %600 }
  0xa9   : > { %v242_v42 = vld [vmem:[#allocation2] sm:$0x1] }
  0xaa   : > { %v243_v44 = vsel %vm241_vm9, %v238_v26, %v242_v42  ;;  %v3398_v47 = vpop.permute.xlu0 %325  ;;  %vm263_vm9 = vmand %vm4900_vm5, %vm207_vm12 }
  0xab   : > { %244 = vst [vmem:[#allocation2] sm:$0x1] %v243_v44  ;;  %v605_v45 = vld [vmem:[#allocation2] sm:$0x2] }
  0xac   : > { %v606_v46 = vsel %vm604_vm10, %v601_v43, %v605_v45  ;;  %v3400_v48 = vpop.permute.xlu1 %429  ;;  %vm4901_vm10 = vcmask 1041400  }
  0xad   : > { %607 = vst [vmem:[#allocation2] sm:$0x2] %v606_v46 }
  0xae   : > { %v609_v50 = vpop.permute.xlu0 %608 }
  0xb0   : > { %v3405_v54 = vpop.permute.xlu1 %335 }
  0xb2   : > { %v251_v49 = vld [vmem:[#allocation2] sm:$0x1]  ;;  %v3407_v55 = vpop.permute.xlu0 %438 }
  0xb3   : > { %v252_v51 = vsel %vm250_vm1, %v247_v27, %v251_v49  ;;  %vm4903_vm1 = vsmask.f32 2304 }
  0xb4   : > { %253 = vst [vmem:[#allocation2] sm:$0x1] %v252_v51  ;;  %v613_v52 = vld [vmem:[#allocation2] sm:$0x2]  ;;  %v619_v57 = vpop.permute.xlu1 %618  ;;  %vm279_vm13 = vmand %vm4902_vm15, %vm4903_vm1  ;;  %vm4922_vm15 = vsmask.f32 7938 }
  0xb5   : > { %v614_v53 = vsel %vm612_vm4, %v609_v50, %v613_v52  ;;  %vm276_vm4 = vmand %vm4901_vm10, %vm207_vm12 }
  0xb6   : > { %615 = vst [vmem:[#allocation2] sm:$0x2] %v614_v53  ;;  %v3414_v61 = vpop.permute.xlu0 %344  ;;  %vm280_vm5 = vmor %vm279_vm13, %vm276_vm4  ;;  %vm643_vm13 = vcmask 1017705  }
  0xb7   : > { %vm416_vm4 = vmand %vm206_vm11, %vm4922_vm15 }
  0xb8   : > { %v3418_v62 = vpop.permute.xlu1 %449 }
  0xba   : > { %v629_v2 = vpop.permute.xlu0 %628 }
  0xbb   : > { %v264_v56 = vld [vmem:[#allocation2] sm:$0x1] }
  0xbc   : > { %v265_v58 = vsel %vm263_vm9, %v260_v30, %v264_v56  ;;  %vm631_vm9 = vcmask 870105   ;;  %v3424_v4 = vpop.permute.xlu1 %357 }
  0xbd   : > { %266 = vst [vmem:[#allocation2] sm:$0x1] %v265_v58  ;;  %v623_v59 = vld [vmem:[#allocation2] sm:$0x2]  ;;  %vm632_vm10 = vmand %vm631_vm9, %vm173_vm2  ;;  %vm4912_vm9 = vcmask 409880  }
  0xbe   : > { %v624_v60 = vsel %vm622_vm6, %v619_v57, %v623_v59  ;;  %vm4904_vm6 = vcmask 262280   ;;  %vm306_vm11 = vmand %vm4912_vm9, %vm207_vm12  ;;  %v3442_v25 = vpop.permute.xlu0 %456 }
  0xbf   : > { %625 = vst [vmem:[#allocation2] sm:$0x2] %v624_v60  ;;  %vm290_vm1 = vmand %vm4904_vm6, %vm207_vm12  ;;  %vm655_vm6 = vcmask 117763  }
  0xc0   : > { %v641_v8 = vpop.permute.xlu1 %640 }
  0xc2   : > { %v3449_v29 = vpop.permute.xlu0 %465 }
  0xc4   : > { %v281_v1 = vld [vmem:[#allocation2] sm:$0x5]  ;;  %v649_v15 = vpop.permute.xlu1 %648 }
  0xc5   : > { %v282_v3 = vsel %vm280_vm5, %v273_v0, %v281_v1  ;;  %vm644_vm5 = vmand %vm643_vm13, %vm173_vm2  ;;  %v650_v17 = vrot.slane %v649_v15, 6 }
  0xc6   : > { %283 = vst [vmem:[#allocation2] sm:$0x5] %v282_v3  ;;  %v633_v5 = vld [vmem:[#allocation2] sm:$0x2]  ;;  %vm656_vm13 = vmand %vm655_vm6, %vm4924_vm3  ;;  %vm666_vm6 = vcmask 263305   ;;  %v3455_v34 = vpop.permute.xlu0 %479 }
  0xc7   : > { %v634_v7 = vsel %vm632_vm10, %v629_v2, %v633_v5  ;;  %vm653_vm10 = vcmask 1042425   ;;  %v651_v20 = vsel %vm4914_vm8, %v650_v17, %v649_v15 }
  0xc8   : > { %635 = vst [vmem:[#allocation2] sm:$0x2] %v634_v7  ;;  %vm654_vm7 = vmand %vm653_vm10, %vm173_vm2  ;;  %v664_v28 = vpop.permute.xlu1 %663 }
  0xc9   : > { %vm667_vm10 = vmand %vm666_vm6, %vm173_vm2  ;;  %vm4906_vm6 = vcmask 852680  }
  0xca   : > { %v3462_v42 = vpop.permute.xlu0 %497 }
  0xcc   : > { %v681_v37 = vpop.permute.xlu1 %680 }
  0xcd   : > { %v291_v9 = vld [vmem:[#allocation2 + $0x2] sm:$0x1]  ;;  %v417_v10 = vld [vmem:[#allocation2] sm:$0x1] }
  0xce   : > { %v292_v11 = vsel %vm290_vm1, %v3382_v32, %v291_v9  ;;  %v418_v12 = vsel %vm416_vm4, %v3389_v36, %v417_v10  ;;  %vm423_vm1 = vmand %vm220_vm14, %vm4922_vm15  ;;  %v3469_v46 = vpop.permute.xlu0 %504 }
  0xcf   : > { %293 = vst [vmem:[#allocation2 + $0x2] sm:$0x1] %v292_v11  ;;  %419 = vst [vmem:[#allocation2] sm:$0x1] %v418_v12  ;;  %v645_v14 = vld [vmem:[#allocation2] sm:$0x2] }
  0xd0   : > { %v646_v16 = vsel %vm644_vm5, %v641_v8, %v645_v14  ;;  %vm657_vm4 = vmor %vm656_vm13, %vm654_vm7  ;;  %vm4911_vm5 = vcmask 557480   ;;  %vm683_vm13 = vcmask 410905   ;;  %v693_v45 = vpop.permute.xlu1 %692 }
  0xd1   : > { %647 = vst [vmem:[#allocation2] sm:$0x2] %v646_v16  ;;  %vm319_vm14 = vmand %vm4911_vm5, %vm207_vm12  ;;  %vm4913_vm5 = vcmask 245880  }
  0xd2   : > { %vm432_vm7 = vmand %vm230_vm0, %vm4922_vm15  ;;  %v3475_v51 = vpop.permute.xlu0 %513 }
  0xd3   : > { %vm377_vm9 = vmand %vm4913_vm5, %vm207_vm12  ;;  %vm386_vm5 = vcmask 393480  }
  0xd6   : > { %v307_v18 = vld [vmem:[#allocation2 + $0x2] sm:$0x1]  ;;  %v424_v19 = vld [vmem:[#allocation2] sm:$0x1]  ;;  %v374_v60 = vpop.permute.xlu0 %373 }
  0xd7   : > { %v308_v21 = vsel %vm306_vm11, %v3386_v33, %v307_v18  ;;  %v425_v22 = vsel %vm423_vm1, %v3393_v41, %v424_v19  ;;  %vm4907_vm11 = vcmask 705080   ;;  %vm4955_vm1 = vcmask 721480  }
  0xd8   : > { %309 = vst [vmem:[#allocation2 + $0x2] sm:$0x1] %v308_v21  ;;  %426 = vst [vmem:[#allocation2] sm:$0x1] %v425_v22  ;;  %v658_v23 = vld [vmem:[#allocation2] sm:$0xa] }
  0xd9   : > { %v659_v24 = vsel %vm657_vm4, %v651_v20, %v658_v23  ;;  %vm329_vm0 = vmand %vm4907_vm11, %vm207_vm12  ;;  %vm4909_vm11 = vcmask 1041384  }
  0xda   : > { %660 = vst [vmem:[#allocation2] sm:$0xa] %v659_v24  ;;  %vm441_vm4 = vmand %vm4955_vm1, %vm4922_vm15  ;;  %vm4956_vm1 = vcmask 869080   ;;  %v711_v1 = vpop.permute.xlu0 %710 }
  0xdf   : > { %v320_v26 = vld [vmem:[#allocation2 + $0x2] sm:$0x1]  ;;  %v433_v27 = vld [vmem:[#allocation2] sm:$0x1] }
  0xe0   : > { %v321_v30 = vsel %vm319_vm14, %v3391_v40, %v320_v26  ;;  %v434_v31 = vsel %vm432_vm7, %v3400_v48, %v433_v27  ;;  %vm684_vm14 = vmand %vm683_vm13, %vm173_vm2 }
  0xe1   : > { %322 = vst [vmem:[#allocation2 + $0x2] sm:$0x1] %v321_v30  ;;  %435 = vst [vmem:[#allocation2] sm:$0x1] %v434_v31  ;;  %v668_v32 = vld [vmem:[#allocation2 + $0x2] sm:$0x2] }
  0xe2   : > { %v669_v33 = vsel %vm667_vm10, %v664_v28, %v668_v32  ;;  %vm339_vm7 = vmand %vm4906_vm6, %vm207_vm12  ;;  %vm695_vm10 = vcmask 558505  }
  0xe3   : > { %670 = vst [vmem:[#allocation2 + $0x2] sm:$0x2] %v669_v33  ;;  %vm452_vm13 = vmand %vm4956_vm1, %vm4922_vm15  ;;  %vm703_vm1 = vcmask 706105  }
  0xe8   : > { %v330_v35 = vld [vmem:[#allocation2 + $0x2] sm:$0x1]  ;;  %v442_v36 = vld [vmem:[#allocation2] sm:$0x1] }
  0xe9   : > { %v331_v38 = vsel %vm329_vm0, %v3398_v47, %v330_v35  ;;  %v443_v39 = vsel %vm441_vm4, %v3407_v55, %v442_v36  ;;  %vm696_vm0 = vmand %vm695_vm10, %vm173_vm2  ;;  %vm4908_vm4 = vcmask 1000280   ;;  %vm4957_vm10 = vcmask 1016680  }
  0xea   : > { %332 = vst [vmem:[#allocation2 + $0x2] sm:$0x1] %v331_v38  ;;  %444 = vst [vmem:[#allocation2] sm:$0x1] %v443_v39  ;;  %v685_v40 = vld [vmem:[#allocation2 + $0x2] sm:$0x2] }
  0xeb   : > { %v686_v41 = vsel %vm684_vm14, %v681_v37, %v685_v40  ;;  %vm348_vm14 = vmand %vm4908_vm4, %vm207_vm12 }
  0xec   : > { %687 = vst [vmem:[#allocation2 + $0x2] sm:$0x2] %v686_v41  ;;  %vm459_vm6 = vmand %vm4957_vm10, %vm4922_vm15  ;;  %vm4960_vm10 = vsmask.f32 2304 }
  0xf1   : > { %v340_v43 = vld [vmem:[#allocation2 + $0x2] sm:$0x1]  ;;  %v453_v44 = vld [vmem:[#allocation2] sm:$0x1] }
  0xf2   : > { %v341_v47 = vsel %vm339_vm7, %v3405_v54, %v340_v43  ;;  %v454_v48 = vsel %vm452_vm13, %v3418_v62, %v453_v44  ;;  %vm704_vm7 = vmand %vm703_vm1, %vm173_vm2  ;;  %v701_v54 = vpop.permute.xlu1 %700  ;;  %vm4910_vm13 = vcmask 100354  }
  0xf3   : > { %342 = vst [vmem:[#allocation2 + $0x2] sm:$0x1] %v341_v47  ;;  %455 = vst [vmem:[#allocation2] sm:$0x1] %v454_v48  ;;  %v697_v49 = vld [vmem:[#allocation2 + $0x2] sm:$0x2] }
  0xf4   : > { %v698_v50 = vsel %vm696_vm0, %v693_v45, %v697_v49  ;;  %vm3484_vm0 = vmand %vm4909_vm11, %vm207_vm12  ;;  %vm4915_vm11 = vsmask.f32 7946 }
  0xf5   : > { %699 = vst [vmem:[#allocation2 + $0x2] sm:$0x2] %v698_v50  ;;  %vm366_vm1 = vmand %vm4910_vm13, %vm4960_vm10  ;;  %vm4961_vm10 = vcmask 1041400  }
  0xf6   : > { %v3490_v62 = vpop.permute.xlu1 %522  ;;  %vm367_vm4 = vmor %vm366_vm1, %vm3484_vm0  ;;  %vm4964_vm0 = vcmask 116738  }
  0xf7   : > { %vm3500_vm13 = vmand %vm4961_vm10, %vm4922_vm15 }
  0xf8   : > { %vm472_vm1 = vmand %vm4964_vm0, %vm4915_vm11  ;;  %vm4965_vm0 = vcmask 262280  }
  0xfa   : > { %v349_v52 = vld [vmem:[#allocation2 + $0x2] sm:$0x1]  ;;  %v460_v53 = vld [vmem:[#allocation2] sm:$0x1]  ;;  %v384_v3 = vpop.permute.xlu1 %383 }
  0xfb   : > { %v350_v55 = vsel %vm348_vm14, %v3414_v61, %v349_v52  ;;  %v461_v56 = vsel %vm459_vm6, %v3442_v25, %v460_v53  ;;  %v359_v61 = vrot.slane %v3424_v4, 6  ;;  %vm360_vm6 = vcmask 1022976  }
  0xfc   : > { %351 = vst [vmem:[#allocation2 + $0x2] sm:$0x1] %v350_v55  ;;  %462 = vst [vmem:[#allocation2] sm:$0x1] %v461_v56  ;;  %v705_v57 = vld [vmem:[#allocation2 + $0x2] sm:$0x2] }
  0xfd   : > { %v706_v59 = vsel %vm704_vm7, %v701_v54, %v705_v57  ;;  %vm713_vm14 = vcmask 853705   ;;  %v361_v0 = vsel %vm360_vm6, %v359_v61, %v3424_v4  ;;  %v467_v4 = vrot.slane %v3449_v29, 6 }
  0xfe   : > { %707 = vst [vmem:[#allocation2 + $0x2] sm:$0x2] %v706_v59  ;;  %vm714_vm7 = vmand %vm713_vm14, %vm173_vm2  ;;  %vm723_vm14 = vcmask 1001305   ;;  %v721_v9 = vpop.permute.xlu1 %720 }
  0xff   : > { %v468_v10 = vsel %vm4914_vm8, %v467_v4, %v3449_v29  ;;  %vm724_vm10 = vmand %vm723_vm14, %vm173_vm2  ;;  %vm748_vm14 = vcmask 246905  }
 0x102   : > { %v733_v17 = vpop.permute.xlu1 %732 }
 0x103   : > { %v368_v63 = vld [vmem:[#allocation2 + $0x2] sm:$0x5]  ;;  %v734_v19 = vrot.slane %v733_v17, 6 }
 0x104   : > { %v369_v2 = vsel %vm367_vm4, %v361_v0, %v368_v63  ;;  %vm473_vm4 = vmor %vm472_vm1, %vm3500_vm13  ;;  %vm739_vm13 = vcmask 101379  }
 0x105   : > { %370 = vst [vmem:[#allocation2 + $0x2] sm:$0x5] %v369_v2  ;;  %v715_v7 = vld [vmem:[#allocation2 + $0x2] sm:$0x2]  ;;  %vm482_vm1 = vmand %vm4965_vm0, %vm4922_vm15  ;;  %v735_v22 = vsel %vm360_vm6, %v734_v19, %v733_v17 }
 0x106   : > { %v716_v8 = vsel %vm714_vm7, %v711_v1, %v715_v7  ;;  %vm737_vm7 = vcmask 1042409   ;;  %vm740_vm11 = vmand %vm739_vm13, %vm4924_vm3  ;;  %v746_v28 = vpop.permute.xlu1 %745 }
 0x107   : > { %717 = vst [vmem:[#allocation2 + $0x2] sm:$0x2] %v716_v8  ;;  %vm738_vm8 = vmand %vm737_vm7, %vm173_vm2 }
 0x108   : > { %vm749_vm13 = vmand %vm748_vm14, %vm173_vm2  ;;  %vm4969_vm14 = vcmask 852680  }
 0x10a   : > { %v756_v33 = vpop.permute.xlu1 %755 }
 0x10c   : > { %v474_v11 = vld [vmem:[#allocation2] sm:$0x5]  ;;  %v378_v12 = vld [vmem:[#allocation2 + $0x4] sm:$0x1] }
 0x10d   : > { %v475_v14 = vsel %vm473_vm4, %v468_v10, %v474_v11  ;;  %v379_v15 = vsel %vm377_vm9, %v374_v60, %v378_v12  ;;  %vm387_vm9 = vmand %vm386_vm5, %vm207_vm12 }
 0x10e   : > { %476 = vst [vmem:[#allocation2] sm:$0x5] %v475_v14  ;;  %380 = vst [vmem:[#allocation2 + $0x4] sm:$0x1] %v379_v15  ;;  %v725_v16 = vld [vmem:[#allocation2 + $0x2] sm:$0x2] }
 0x10f   : > { %v726_v18 = vsel %vm724_vm10, %v721_v9, %v725_v16  ;;  %vm741_vm4 = vmor %vm740_vm11, %vm738_vm8  ;;  %vm4966_vm10 = vcmask 409880   ;;  %vm758_vm8 = vcmask 394505   ;;  %vm4967_vm11 = vcmask 557480  }
 0x110   : > { %727 = vst [vmem:[#allocation2 + $0x2] sm:$0x2] %v726_v18  ;;  %vm500_vm7 = vmand %vm4966_vm10, %vm4922_vm15 }
 0x111   : > { %vm507_vm0 = vmand %vm4967_vm11, %vm4922_vm15  ;;  %vm4974_vm11 = vsmask.f32 5376 }
 0x112   : > { %vm3542_vm10 = vmand %vm4969_vm14, %vm4922_vm15  ;;  %vm4979_vm14 = vcmask 1000280  }
 0x115   : > { %v483_v20 = vld [vmem:[#allocation2 + $0x2] sm:$0x1]  ;;  %v388_v21 = vld [vmem:[#allocation2 + $0x4] sm:$0x1] }
 0x116   : > { %v484_v23 = vsel %vm482_vm1, %v3455_v34, %v483_v20  ;;  %v389_v24 = vsel %vm387_vm9, %v384_v3, %v388_v21  ;;  %vm759_vm1 = vmand %vm758_vm8, %vm173_vm2  ;;  %vm4968_vm9 = vcmask 705080  }
 0x117   : > { %485 = vst [vmem:[#allocation2 + $0x2] sm:$0x1] %v484_v23  ;;  %390 = vst [vmem:[#allocation2 + $0x4] sm:$0x1] %v389_v24  ;;  %v742_v25 = vld [vmem:[#allocation2 + $0x2] sm:$0xa] }
 0x118   : > { %v743_v26 = vsel %vm741_vm4, %v735_v22, %v742_v25  ;;  %vm516_vm4 = vmand %vm4968_vm9, %vm4922_vm15  ;;  %v534_v22 = vpop.permute.xlu0 %533  ;;  %v4975_v25 = vmov 0 }
 0x119   : > { %744 = vst [vmem:[#allocation2 + $0x2] sm:$0xa] %v743_v26  ;;  %v1493_v26 = vld [vmem:[#allocation3 + $0x18] sm:$0x22] }
 0x11e   : > { %v501_v27 = vld [vmem:[#allocation2 + $0x2] sm:$0x1] }
 0x11f   : > { %v502_v29 = vsel %vm500_vm7, %v3462_v42, %v501_v27  ;;  %vm4917_vm7 = vcmask 1041409  }
 0x120   : > { %503 = vst [vmem:[#allocation2 + $0x2] sm:$0x1] %v502_v29  ;;  %v750_v30 = vld [vmem:[#allocation2 + $0x4] sm:$0x2]  ;;  %vm3559_vm8 = vmand %vm4917_vm7, %vm173_vm2 }
 0x121   : > { %v751_v31 = vsel %vm749_vm13, %v746_v28, %v750_v30  ;;  %vm4916_vm13 = vcmask 1045509   ;;  %v4977_v30 = vmov 0 }
 0x122   : > { %752 = vst [vmem:[#allocation2 + $0x4] sm:$0x2] %v751_v31  ;;  %v1496_v31 = vld [vmem:[#allocation3 + $0x20] sm:$0x2] }
 0x127   : > { %v508_v32 = vld [vmem:[#allocation2 + $0x2] sm:$0x1] }
 0x128   : > { %v509_v34 = vsel %vm507_vm0, %v3469_v46, %v508_v32  ;;  %vm874_vm0 = vmand %vm4916_vm13, %vm4974_vm11  ;;  %vm4983_vm11 = vsmask.f32 7946  ;;  %vm4985_vm13 = vcmask 245880  }
 0x129   : > { %510 = vst [vmem:[#allocation2 + $0x2] sm:$0x1] %v509_v34  ;;  %v760_v35 = vld [vmem:[#allocation2 + $0x4] sm:$0x2]  ;;  %vm3571_vm9 = vmor %vm874_vm0, %vm3559_vm8  ;;  %vm4984_vm0 = vcmask 100354  }
 0x12a   : > { %v761_v36 = vsel %vm759_vm1, %v756_v33, %v760_v35  ;;  %vm4919_vm1 = vcmask 254977   ;;  %v4976_v25 = vsel %vm3571_vm9, 4294967295, %v4975_v25  ;;  %vm556_vm7 = vmand %vm4985_vm13, %vm4922_vm15 }
 0x12b   : > { %762 = vst [vmem:[#allocation2 + $0x4] sm:$0x2] %v761_v36 }
 0x130   : > { %v517_v37 = vld [vmem:[#allocation2 + $0x2] sm:$0x1] }
 0x131   : > { %v518_v38 = vsel %vm516_vm4, %v3475_v51, %v517_v37  ;;  %vm3578_vm4 = vmand %vm4919_vm1, %vm173_vm2  ;;  %vm4982_vm2 = vcmask 1041384  }
 0x132   : > { %519 = vst [vmem:[#allocation2 + $0x2] sm:$0x1] %v518_v38  ;;  %v1614_v39 = vld [vmem:[#allocation2] sm:$0x2a]  ;;  %v4978_v30 = vsel %vm3578_vm4, 4294967295, %v4977_v30  ;;  %vm545_vm8 = vmand %vm4982_vm2, %vm4922_vm15 }
 0x133   : > { %v1538_v40 = vld [vmem:[#allocation2] sm:$0x2a]  ;;  %v1630_v42 = vrot.slane %v1614_v39, %v3316_v13  ;;  %v1616_v47 = vcombine.low %v1614_v39, %v1614_v39  ;;  %vm565_vm2 = vmand %vm386_vm5, %vm4922_vm15  ;;  %vm4920_vm5 = vcmask 1040384  }
 0x134   : > { %v1688_v41 = vld [vmem:[#allocation2] sm:$0x2a]  ;;  %v1547_v43 = vrot.slane %v1538_v40, %v3316_v13  ;;  %v1540_v44 = vcombine.high %v1538_v40, %v1538_v40  ;;  %vm783_vm13 = vmand %vm4920_vm5, %vm207_vm12  ;;  %vm4992_vm5 = vsmask.f32 2304 }
 0x135   : > { %v1573_v45 = vld [vmem:[#allocation2] sm:$0x2a]  ;;  %v1690_v48 = vcombine.high %v1688_v41, %v1688_v41  ;;  %1633 = vrot.lane.b32.xlu1 %v1630_v42, %s3242_s23  ;;  %v1623_v61 = vrot.slane %v1616_v47, %v3316_v13  ;;  %v1697_v63 = vrot.slane %v1688_v41, %v3316_v13 }
 0x136   : > { %v1499_v46 = vld [vmem:[#allocation2] sm:$0x2a]  ;;  %v1575_v49 = vcombine.high %v1573_v45, %v1573_v45  ;;  %v1582_v50 = vrot.slane %v1573_v45, %v3316_v13  ;;  %v1555_v51 = vrot.slane %v1547_v43, 7  ;;  %v1554_v53 = vrot.slane %v1540_v44, %v3316_v13  ;;  %v541_v44 = vpop.permute.xlu0 %540 }
 0x137   : > { %v1725_v52 = vld [vmem:[#allocation2] sm:$0x2a]  ;;  %v1501_v54 = vcombine.high %v1499_v46, %v1499_v46  ;;  %v1704_v55 = vrot.slane %v1690_v48, %v3316_v13  ;;  %v1508_v10 = vrot.slane %v1499_v46, %v3316_v13  ;;  %v542_v46 = vrot.slane %v541_v44, 6 }
 0x138   : > { %v1589_v56 = vrot.slane %v1575_v49, %v3316_v13  ;;  %v1647_v57 = vld [vmem:[#allocation2] sm:$0x2a]  ;;  %1557 = vrot.lane.b32.xlu0 %v1555_v51, %s3253_s7  ;;  %v1556_v59 = vrot.slane %v1554_v53, 7  ;;  %v1727_v60 = vcombine.high %v1725_v52, %v1725_v52  ;;  %v1591_v0 = vshll.u32 %v1582_v50, 16 }
 0x139   : > { %v526_v2 = vld [vmem:[#allocation2 + $0x2] sm:$0x1]  ;;  %v1515_v3 = vrot.slane %v1501_v54, %v3316_v13  ;;  %v1734_v5 = vrot.slane %v1725_v52, %v3316_v13  ;;  %v1649_v8 = vcombine.high %v1647_v57, %v1647_v57  ;;  %v3064_v9 = vrot.slane %v1704_v55, 9  ;;  %v1474_v17 = vld [vmem:[#allocation2] sm:$0x2a] }
 0x13a   : > { %v1595_v1 = vshll.u32 %v1589_v56, 16  ;;  %1559 = vrot.lane.b32.xlu1 %v1556_v59, %s3253_s7  ;;  %v1741_v7 = vrot.slane %v1727_v60, %v3316_v13  ;;  %v527_v4 = vsel %vm3542_vm10, %v3490_v62, %v526_v2  ;;  %v1656_v15 = vrot.slane %v1647_v57, %v3316_v13  ;;  %vm3585_vm10 = vmand %vm4979_vm14, %vm4922_vm15  ;;  %v554_v50 = vpop.permute.xlu0 %553 }
 0x13b   : > { %528 = vst [vmem:[#allocation2 + $0x2] sm:$0x1] %v527_v4  ;;  %v1663_v16 = vrot.slane %v1649_v8, %v3316_v13  ;;  %v3063_v62 = vrot.slane %v1697_v63, 9  ;;  %v1593_v18 = vrot.slane %v1591_v0, 7  ;;  %v1520_v19 = vshll.u32 %v1515_v3, 16  ;;  %vm546_vm14 = vmand %vm4984_vm0, %vm4983_vm11 }
 0x13c   : > { %1631 = vrot.lane.b32.xlu0 %v1623_v61, %s3242_s23  ;;  %v1597_v12 = vrot.slane %v1595_v1, 7  ;;  %v1748_v14 = vshll.u32 %v1741_v7, 16  ;;  %v1743_v20 = vshll.u32 %v1734_v5, 16  ;;  %v1517_v23 = vshll.u32 %v1508_v10, 16 }
 0x13d   : > { %v1669_v21 = vshll.u32 %v1663_v16, 16  ;;  %v1476_v24 = vcombine.high %v1474_v17, %v1474_v17  ;;  %v1665_v29 = vshll.u32 %v1656_v15, 16  ;;  %v1483_v32 = vrot.slane %v1474_v17, %v3316_v13 }
 0x13e   : > { %1711 = vrot.lane.b32.xlu1 %v3064_v9, %s3254_s8  ;;  %v3157_v27 = vpack.i.bf16 %v1597_v12, %v1593_v18  ;;  %v3066_v28 = vrot.slane %v1748_v14, 9  ;;  %v3152_v35 = vpack.i.bf16 %v1520_v19, %v1517_v23  ;;  %v3065_v36 = vrot.slane %v1743_v20, 9  ;;  %v563_v53 = vpop.permute.xlu0 %562 }
 0x13f   : > { %v1490_v34 = vrot.slane %v1476_v24, %v3316_v13  ;;  %v1671_v37 = vrot.slane %v1669_v21, 6  ;;  %v1494_v38 = vsel %vm3571_vm9, %v1483_v32, %v1493_v26  ;;  %v1667_v43 = vrot.slane %v1665_v29, 6  ;;  %v793_v32 = vld [vmem:[#allocation3 + $0x8] sm:$0x1] }
 0x140   : > { %1709 = vrot.lane.b32.xlu0 %v3063_v62, %s3254_s8  ;;  %1495 = vst [vmem:[#allocation3 + $0x18] sm:$0x22] %v1494_v38  ;;  %v3167_v42 = vpack.i.bf16 %v3066_v28, %v3065_v36  ;;  %v543_v47 = vsel %vm360_vm6, %v542_v46, %v541_v44  ;;  %vm4918_vm6 = vcmask 1044484   ;;  %vm5001_vm9 = vcmask 1043459  }
 0x141   : > { %v1497_v40 = vsel %vm3578_vm4, %v1490_v34, %v1496_v31  ;;  %v3162_v45 = vpack.i.bf16 %v1671_v37, %v1667_v43  ;;  %v4988_v31 = vmov 0 }
 0x142   : > { %3158 = vrot.lane.b32.xlu1 %v3157_v27, %s3255_s9  ;;  %v537_v39 = vld [vmem:[#allocation2 + $0x2] sm:$0x1]  ;;  %1498 = vst [vmem:[#allocation3 + $0x20] sm:$0x2] %v1497_v40  ;;  %v788_v27 = vld [vmem:[#allocation3] sm:$0x11] }
 0x143   : > { %v538_v41 = vsel %vm3585_vm10, %v534_v22, %v537_v39  ;;  %vm547_vm10 = vmor %vm546_vm14, %vm545_vm8  ;;  %vm4921_vm8 = vcmask 253952  }
 0x144   : > { %3153 = vrot.lane.b32.xlu0 %v3152_v35, %s3243_s24  ;;  %539 = vst [vmem:[#allocation2 + $0x2] sm:$0x1] %v538_v41  ;;  %vm3644_vm14 = vmand %vm4921_vm8, %vm207_vm12  ;;  %vm4923_vm12 = vcmask 257027  }
 0x145   : > { %v4989_v31 = vsel %vm3644_vm14, 4294967295, %v4988_v31 }
 0x146   : > { %3168 = vrot.lane.b32.xlu1 %v3167_v42, %s3241_s22 }
 0x148   : > { %3163 = vrot.lane.b32.xlu0 %v3162_v45, %s3256_s10 }
 0x14b   : > { %v548_v48 = vld [vmem:[#allocation2 + $0x2] sm:$0x5] }
 0x14c   : > { %v549_v49 = vsel %vm547_vm10, %v543_v47, %v548_v48  ;;  %vm3700_vm10 = vmand %vm4923_vm12, %vm4924_vm3  ;;  %vm1054_vm12 = vsmask.f32 7424 }
 0x14d   : > { %550 = vst [vmem:[#allocation2 + $0x2] sm:$0x5] %v549_v49  ;;  %vm4995_vm3 = vmmov %vm4992_vm5 }
 0x154   : > { %v557_v52 = vld [vmem:[#allocation2 + $0x4] sm:$0x1] }
 0x155   : > { %v558_v51 = vsel %vm556_vm7, %v554_v50, %v557_v52  ;;  %vm785_vm7 = vsmask.f32 4352 }
 0x156   : > { %559 = vst [vmem:[#allocation2 + $0x4] sm:$0x1] %v558_v51  ;;  %vm786_vm11 = vmand %vm4918_vm6, %vm785_vm7  ;;  %vm4929_vm7 = vcmask 1042434   ;;  %vm963_vm6 = vsmask.f32 6400 }
 0x157   : > { %vm3637_vm0 = vmor %vm786_vm11, %vm783_vm13  ;;  %vm3259_vm13 = vmmov 0   ;;  %vm4928_vm11 = vcmask 1046534  }
 0x158   : > { %vm3720_vm1 = vmand %vm4928_vm11, %vm963_vm6  ;;  %vm5004_vm6 = vcmask 1047559  }
 0x159   : > { %vm1055_vm11 = vmand %vm5004_vm6, %vm1054_vm12  ;;  %vm4935_vm12 = vcmask 891904  }
 0x15d   : > { %v566_v54 = vld [vmem:[#allocation2 + $0x4] sm:$0x1] }
 0x15e   : > { %v567_v55 = vsel %vm565_vm2, %v563_v53, %v566_v54  ;;  %vm4925_vm2 = vcmask 256002  }
 0x15f   : > { %568 = vst [vmem:[#allocation2 + $0x4] sm:$0x1] %v567_v55  ;;  %vm3709_vm8 = vmand %vm4925_vm2, %vm4992_vm5  ;;  %vm4933_vm5 = vcmask 1043456   ;;  %vm5000_vm2 = vsmask.f32 3328 }
 0x160   : > { %vm3726_vm15 = vmand %vm5001_vm9, %vm5000_vm2 }
 0x161   : > { %vm3748_vm2 = vmor %vm1055_vm11, %vm3726_vm15  ;;  %vm5013_vm11 = vcmask 257027   ;;  %vm5021_vm15 = vcmask 1040384  }
 0x166   : > { %v932_v56 = vld [vmem:[#allocation2] sm:$0x15] }
 0x167   : > { %v1113_v57 = vld [vmem:[#allocation2] sm:$0x15]  ;;  %v948_v58 = vrot.slane %v932_v56, %v3316_v13  ;;  %v934_v4 = vcombine.low %v932_v56, %v932_v56 }
 0x168   : > { %v1122_v59 = vrot.slane %v1113_v57, %v3316_v13  ;;  %v3611_v60 = vld [vmem:[#allocation2] sm:$0x15]  ;;  %v1115_v2 = vcombine.high %v1113_v57, %v1113_v57 }
 0x169   : > { %v1441_v61 = vld [vmem:[#allocation2] sm:$0x15]  ;;  %951 = vrot.lane.b32.xlu1 %v948_v58, %s3242_s23  ;;  %v1305_v0 = vrot.slane %v3611_v60, %v3316_v13  ;;  %v941_v14 = vrot.slane %v934_v4, %v3316_v13  ;;  %v1291_v42 = vcombine.low %v3611_v60, %v3611_v60 }
 0x16a   : > { %v841_v63 = vld [vmem:[#allocation2] sm:$0x15]  ;;  %1130 = vrot.lane.b32.xlu0 %v1122_v59, %s3257_s11  ;;  %v1450_v1 = vrot.slane %v1441_v61, %v3316_v13  ;;  %v1443_v5 = vcombine.high %v1441_v61, %v1441_v61  ;;  %v1129_v7 = vrot.slane %v1115_v2, %v3316_v13 }
 0x16b   : > { %v850_v3 = vrot.slane %v841_v63, %v3316_v13  ;;  %v843_v9 = vcombine.high %v841_v63, %v841_v63  ;;  %v1021_v10 = vld [vmem:[#allocation2] sm:$0x15]  ;;  %v1298_v53 = vrot.slane %v1291_v42, %v3316_v13 }
 0x16c   : > { %v1030_v11 = vrot.slane %v1021_v10, %v3316_v13  ;;  %v1457_v12 = vrot.slane %v1443_v5, %v3316_v13  ;;  %v1023_v16 = vcombine.high %v1021_v10, %v1021_v10  ;;  %v1398_v17 = vld [vmem:[#allocation2] sm:$0x15] }
 0x16d   : > { %1308 = vrot.lane.b32.xlu1 %v1305_v0, %s3242_s23  ;;  %v858_v8 = vrot.slane %v850_v3, 7  ;;  %v857_v15 = vrot.slane %v843_v9, %v3316_v13  ;;  %v763_v18 = vld [vmem:[#allocation2] sm:$0x15]  ;;  %v1407_v21 = vrot.slane %v1398_v17, %v3316_v13  ;;  %v1400_v22 = vcombine.high %v1398_v17, %v1398_v17 }
 0x16e   : > { %1458 = vrot.lane.b32.xlu0 %v1450_v1, %s3257_s11  ;;  %v1038_v62 = vrot.slane %v1030_v11, 5  ;;  %v1037_v20 = vrot.slane %v1023_v16, %v3316_v13  ;;  %v1213_v23 = vld [vmem:[#allocation2] sm:$0x15]  ;;  %v765_v24 = vcombine.high %v763_v18, %v763_v18  ;;  %v772_v33 = vrot.slane %v763_v18, %v3316_v13 }
 0x16f   : > { %v859_v19 = vrot.slane %v857_v15, 7  ;;  %v1222_v28 = vrot.slane %v1213_v23, %v3316_v13  ;;  %v1215_v29 = vcombine.high %v1213_v23, %v1213_v23  ;;  %v1416_v35 = vshrl.u32 %v1407_v21, 16  ;;  %v1172_v37 = vld [vmem:[#allocation2] sm:$0x15] }
 0x170   : > { %v1039_v34 = vrot.slane %v1037_v20, 5  ;;  %v1414_v36 = vrot.slane %v1400_v22, %v3316_v13  ;;  %v779_v38 = vrot.slane %v765_v24, %v3316_v13  ;;  %v1363_v39 = vld [vmem:[#allocation2] sm:$0x15]  ;;  %v789_v40 = vsel %vm3637_vm0, %v772_v33, %v788_v27 }
 0x171   : > { %1132 = vrot.lane.b32.xlu1 %v1129_v7, %s3257_s11  ;;  %790 = vst [vmem:[#allocation3] sm:$0x11] %v789_v40  ;;  %v1174_v43 = vcombine.high %v1172_v37, %v1172_v37  ;;  %v1230_v45 = vrot.slane %v1222_v28, 7  ;;  %v1229_v46 = vrot.slane %v1215_v29, %v3316_v13  ;;  %v1365_v47 = vcombine.high %v1363_v39, %v1363_v39  ;;  %v1248_v48 = vld [vmem:[#allocation2] sm:$0x15] }
 0x172   : > { %860 = vrot.lane.b32.xlu0 %v858_v8, %s3253_s7  ;;  %v794_v41 = vsel %vm3644_vm14, %v779_v38, %v793_v32  ;;  %v1421_v44 = vshrl.u32 %v1414_v36, 16  ;;  %v1181_v50 = vrot.slane %v1172_v37, %v3316_v13  ;;  %v1250_v52 = vcombine.high %v1248_v48, %v1248_v48  ;;  %v1322_v56 = vld [vmem:[#allocation2] sm:$0x15] }
 0x173   : > { %795 = vst [vmem:[#allocation3 + $0x8] sm:$0x1] %v794_v41  ;;  %v1188_v49 = vrot.slane %v1174_v43, %v3316_v13  ;;  %v1231_v51 = vrot.slane %v1229_v46, 7  ;;  %v1379_v54 = vrot.slane %v1365_v47, %v3316_v13  ;;  %v1372_v55 = vrot.slane %v1363_v39, %v3316_v13  ;;  %v884_v57 = vld [vmem:[#allocation2] sm:$0x15] }
 0x174   : > { %v1257_v58 = vrot.slane %v1248_v48, %v3316_v13  ;;  %v1190_v60 = vshrl.u32 %v1181_v50, 16  ;;  %v1264_v61 = vrot.slane %v1250_v52, %v3316_v13  ;;  %v1324_v63 = vcombine.high %v1322_v56, %v1322_v56  ;;  %v796_v3 = vld [vmem:[#allocation2] sm:$0x15]  ;;  %v1768_v48 = vld [vmem:[#allocation2] sm:$0x2a] }
 0x175   : > { %1460 = vrot.lane.b32.xlu1 %v1457_v12, %s3257_s11  ;;  %v1194_v59 = vshrl.u32 %v1188_v49, 16  ;;  %v1381_v0 = vrot.slane %v1379_v54, 5  ;;  %v1380_v1 = vrot.slane %v1372_v55, 5  ;;  %v886_v2 = vcombine.high %v884_v57, %v884_v57  ;;  %v1065_v5 = vld [vmem:[#allocation2] sm:$0x15] }
 0x176   : > { %949 = vrot.lane.b32.xlu0 %v941_v14, %s3242_s23  ;;  %v974_v7 = vld [vmem:[#allocation2] sm:$0x15]  ;;  %v1266_v8 = vshrl.u32 %v1257_v58, 16  ;;  %v1331_v4 = vrot.slane %v1322_v56, %v3316_v13  ;;  %v1192_v10 = vrot.slane %v1190_v60, 7  ;;  %v1270_v11 = vshrl.u32 %v1264_v61, 16 }
 0x177   : > { %v1196_v9 = vrot.slane %v1194_v59, 7  ;;  %v1338_v12 = vrot.slane %v1324_v63, %v3316_v13  ;;  %v900_v14 = vrot.slane %v886_v2, %v3316_v13  ;;  %v798_v15 = vcombine.high %v796_v3, %v796_v3  ;;  %v1644_v58 = vld [vmem:[#allocation3 + $0x20] sm:$0x8] }
 0x178   : > { %v1067_v16 = vcombine.high %v1065_v5, %v1065_v5  ;;  %v976_v17 = vcombine.high %v974_v7, %v974_v7  ;;  %v1272_v18 = vrot.slane %v1270_v11, 6  ;;  %v1340_v21 = vshrl.u32 %v1331_v4, 16 }
 0x179   : > { %862 = vrot.lane.b32.xlu1 %v859_v19, %s3253_s7  ;;  %v1268_v19 = vrot.slane %v1266_v8, 6  ;;  %v1344_v20 = vshrl.u32 %v1338_v12, 16  ;;  %v906_v22 = vshll.u32 %v900_v14, 16  ;;  %v812_v23 = vrot.slane %v798_v15, %v3316_v13  ;;  %v1722_v12 = vld [vmem:[#allocation3 + $0x2c] sm:$0x1] }
 0x17a   : > { %1040 = vrot.lane.b32.xlu0 %v1038_v62, %s3254_s8  ;;  %v893_v62 = vrot.slane %v884_v57, %v3316_v13  ;;  %v1081_v24 = vrot.slane %v1067_v16, %v3316_v13  ;;  %v990_v27 = vrot.slane %v976_v17, %v3316_v13  ;;  %v805_v29 = vrot.slane %v796_v3, %v3316_v13  ;;  %v1567_v15 = vld [vmem:[#allocation3 + $0x18] sm:$0x44] }
 0x17b   : > { %v1074_v32 = vrot.slane %v1065_v5, %v3316_v13  ;;  %v983_v33 = vrot.slane %v974_v7, %v3316_v13  ;;  %v908_v36 = vrot.slane %v906_v22, 7  ;;  %v817_v37 = vshll.u32 %v812_v23, 16 }
 0x17c   : > { %v902_v28 = vshll.u32 %v893_v62, 16  ;;  %v1087_v38 = vshll.u32 %v1081_v24, 16  ;;  %v996_v39 = vshll.u32 %v990_v27, 16  ;;  %v814_v41 = vshll.u32 %v805_v29, 16 }
 0x17d   : > { %1042 = vrot.lane.b32.xlu1 %v1039_v34, %s3254_s8  ;;  %v1346_v34 = vrot.slane %v1344_v20, 5  ;;  %v1083_v42 = vshll.u32 %v1074_v32, 16  ;;  %v992_v43 = vshll.u32 %v983_v33, 16  ;;  %v3258_v54 = vmov 0.0   ;;  %v1641_v20 = vld [vmem:[#allocation3 + $0x18] sm:$0x88] }
 0x17e   : > { %1425 = vrot.lane.b32.xlu0 %v1416_v35, %s3241_s22  ;;  %v1342_v35 = vrot.slane %v1340_v21, 5  ;;  %v904_v40 = vrot.slane %v902_v28, 7  ;;  %v1089_v46 = vrot.slane %v1087_v38, 5  ;;  %v998_v47 = vrot.slane %v996_v39, 6  ;;  %3095 = vmatprep.subr.bf16.mxu1 %v3258_v54  ;;  %v1719_v39 = vld [vmem:[#allocation3 + $0x24] sm:$0x11] }
 0x17f   : > { %v1085_v49 = vrot.slane %v1083_v42, 5  ;;  %v994_v50 = vrot.slane %v992_v43, 6  ;;  %v1777_v56 = vrot.slane %v1768_v48, %v3316_v13  ;;  %v4990_v57 = vmov 0  ;;  %3099 = vmatprep.mubr.msk.bf16.mxu1 %vm3259_vm13, %v3258_v54  ;;  %vm3715_vm13 = vmand %vm4929_vm7, %vm4995_vm3 }
 0x180   : > { %v4991_v57 = vsel %vm3700_vm10, 4294967295, %v4990_v57  ;;  %v4993_v61 = vmov 0  ;;  %v3260_v3 = vmov 0   ;;  %vm4930_vm3 = vcmask 1031168   ;;  %vm3740_vm9 = vmor %vm3720_vm1, %vm3715_vm13 }
 0x181   : > { %1427 = vrot.lane.b32.xlu1 %v1421_v44, %s3241_s22  ;;  %v3177_v44 = vpack.i.bf16 %v908_v36, %v904_v40  ;;  %v3187_v52 = vpack.i.bf16 %v1089_v46, %v1085_v49  ;;  %v4994_v61 = vsel %vm3709_vm8, 4294967295, %v4993_v61  ;;  %1894 = vmatprep.mubr.bf16.mxu0 %v3260_v3  ;;  %vm4934_vm7 = vsmask.f32 7950  ;;  %v971_v49 = vld [vmem:[#allocation3 + $0x8] sm:$0x4] }
 0x182   : > { %1232 = vrot.lane.b32.xlu0 %v1230_v45, %s3253_s7  ;;  %v3172_v45 = vpack.i.bf16 %v817_v37, %v814_v41  ;;  %v5005_v14 = vmov 0  ;;  %vm5009_vm1 = vsmask.f32 7946  ;;  %vm5010_vm13 = vcmask 256002  }
 0x183   : > { %3192 = vset.pattern.permute.xlu0 %v3260_v3  ;;  %v5006_v14 = vsel %vm3740_vm9, 4294967295, %v5005_v14  ;;  %vm3754_vm6 = vmand %vm5010_vm13, %vm5009_vm1  ;;  %v5011_v22 = vmov 0  ;;  %v5014_v28 = vmov 0  ;;  %vm5016_vm1 = vsmask.f32 7938 }
 0x184   : > { %v5012_v22 = vsel %vm3754_vm6, 4294967295, %v5011_v22  ;;  %vm5017_vm13 = vcmask 253952   ;;  %v5026_v38 = vmov 0 }
 0x185   : > { %1234 = vrot.lane.b32.xlu1 %v1231_v51, %s3253_s7  ;;  %v3182_v51 = vpack.i.bf16 %v998_v47, %v994_v50 }
 0x186   : > { %1306 = vrot.lane.b32.xlu0 %v1298_v53, %s3242_s23  ;;  %v1770_v53 = vcombine.high %v1768_v48, %v1768_v48  ;;  %s3265_s23 = smov 56  }
 0x188   : > { %v1784_v55 = vrot.slane %v1770_v53, %v3316_v13 }
 0x189   : > { %1384 = vrot.lane.b32.xlu1 %v1381_v0, %s3254_s8  ;;  %v1570_v0 = vld [vmem:[#allocation3 + $0x20] sm:$0x4] }
 0x18a   : > { %1382 = vrot.lane.b32.xlu0 %v1380_v1, %s3254_s8 }
 0x18d   : > { %1199 = vrot.lane.b32.xlu1 %v1196_v9, %s3243_s24 }
 0x18e   : > { %1197 = vrot.lane.b32.xlu0 %v1192_v10, %s3243_s24  ;;  %v1810_v10 = vld [vmem:[%s4896_s2] sm:$0xff] }
 0x191   : > { %1275 = vrot.lane.b32.xlu1 %v1272_v18, %s3255_s9 }
 0x192   : > { %1273 = vrot.lane.b32.xlu0 %v1268_v19, %s3255_s9  ;;  %v5007_v19 = vmov 0 }
 0x193   : > { %v5008_v19 = vsel %vm3748_vm2, 4294967295, %v5007_v19 }
 0x195   : > { %1349 = vrot.lane.b32.xlu1 %v1346_v34, %s3256_s10 }
 0x196   : > { %1347 = vrot.lane.b32.xlu0 %v1342_v35, %s3256_s10 }
 0x199   : > { %3178 = vrot.lane.b32.xlu1 %v3177_v44, %s3255_s9 }
 0x19a   : > { %3173 = vrot.lane.b32.xlu0 %v3172_v45, %s3243_s24  ;;  %s3266_s24 = smov 38  }
 0x19d   : > { %3188 = vrot.lane.b32.xlu1 %v3187_v52, %s3241_s22  ;;  %s3264_s22 = smov 74  }
 0x19e   : > { %3183 = vrot.lane.b32.xlu0 %v3182_v51, %s3256_s10 }
 0x1a1   : > { %1787 = vrot.lane.b32.xlu1 %v1784_v55, %s3257_s11 }
 0x1a2   : > { %1785 = vrot.lane.b32.xlu0 %v1777_v56, %s3257_s11 }
 0x1a6   : > { %1813 = vperm.xlu0 %3192, %v1810_v10  }
 0x1a7   : > { %v1634_v59 = vpop.permute.xlu1 %1633 }
 0x1a8   : > { %v1645_v60 = vsel %vm3700_vm10, %v1634_v59, %v1644_v58  ;;  %v1636_v16 = vrot.slane %v1634_v59, 4  ;;  %vm3772_vm10 = vmand %vm5017_vm13, %vm5016_vm1  ;;  %vm5025_vm13 = vcmask 1043459  }
 0x1a9   : > { %1646 = vst [vmem:[#allocation3 + $0x20] sm:$0x8] %v1645_v60 }
 0x1aa   : > { %v1558_v63 = vpop.permute.xlu0 %1557 }
 0x1ab   : > { %v1561_v8 = vrot.slane %v1558_v63, 4 }
 0x1ac   : > { %v1560_v5 = vpop.permute.xlu1 %1559 }
 0x1ad   : > { %v1562_v4 = vrot.slane %v1560_v5, 4  ;;  %v1571_v9 = vsel %vm3709_vm8, %v1560_v5, %v1570_v0  ;;  %vm5037_vm8 = vcmask 752640  }
 0x1ae   : > { %1572 = vst [vmem:[#allocation3 + $0x20] sm:$0x4] %v1571_v9  ;;  %v1632_v11 = vpop.permute.xlu0 %1631 }
 0x1af   : > { %v1563_v17 = vsel %vm4933_vm5, %v1561_v8, %v1562_v4  ;;  %v1635_v62 = vrot.slane %v1632_v11, 4 }
 0x1b0   : > { %v1564_v18 = vsel %vm4930_vm3, %v1558_v63, %v1563_v17  ;;  %v1712_v21 = vpop.permute.xlu1 %1711  ;;  %vm3765_vm3 = vmand %vm5013_vm11, %vm4934_vm7  ;;  %v1535_v63 = vld [vmem:[#allocation3 + $0x20] sm:$0x2] }
 0x1b1   : > { %v1637_v23 = vsel %vm4933_vm5, %v1635_v62, %v1636_v16  ;;  %v1723_v24 = vsel %vm3644_vm14, %v1712_v21, %v1722_v12  ;;  %v1568_v27 = vsel %vm3740_vm9, %v1564_v18, %v1567_v15  ;;  %v5015_v28 = vsel %vm3765_vm3, 4294967295, %v5014_v28  ;;  %vm5020_vm11 = vmmov %vm5016_vm1 }
 0x1b2   : > { %v1638_v29 = vsel %vm4935_vm12, %v1632_v11, %v1637_v23  ;;  %1724 = vst [vmem:[#allocation3 + $0x2c] sm:$0x1] %v1723_v24  ;;  %v1710_v33 = vpop.permute.xlu0 %1709  ;;  %1569 = vst [vmem:[#allocation3 + $0x18] sm:$0x44] %v1568_v27  ;;  %v1714_v35 = vrot.slane %v1712_v21, 4  ;;  %vm5034_vm12 = vcmask 1042434  }
 0x1b3   : > { %v1642_v34 = vsel %vm3748_vm2, %v1638_v29, %v1641_v20  ;;  %vm3780_vm7 = vmand %vm5021_vm15, %vm5020_vm11  ;;  %v1713_v37 = vrot.slane %v1710_v33, 4  ;;  %vm5024_vm1 = vsmask.f32 7950  ;;  %vm5028_vm5 = vsmask.f32 7942 }
 0x1b4   : > { %vm3786_vm4 = vmand %vm5025_vm13, %vm5024_vm1  ;;  %1643 = vst [vmem:[#allocation3 + $0x18] sm:$0x88] %v1642_v34  ;;  %v3159_v40 = vpop.permute.xlu1 %3158  ;;  %vm5029_vm2 = vcmask 254977   ;;  %vm5032_vm15 = vcmask 1043456   ;;  %vm5033_vm11 = vsmask.f32 7946 }
 0x1b5   : > { %v5027_v38 = vsel %vm3786_vm4, 4294967295, %v5026_v38  ;;  %vm3792_vm9 = vmand %vm5029_vm2, %vm5028_vm5  ;;  %v1715_v42 = vsel %vm5032_vm15, %v1713_v37, %v1714_v35  ;;  %v1611_v43 = vld [vmem:[#allocation3 + $0x20] sm:$0x4]  ;;  %v3161_v44 = vunpack.i.h.bf16 %v3159_v40  ;;  %v3160_v45 = vunpack.i.l.bf16 %v3159_v40  ;;  %v1685_v23 = vld [vmem:[#allocation3 + $0x20] sm:$0x8] }
 0x1b6   : > { %vm3799_vm1 = vmand %vm5034_vm12, %vm5033_vm11  ;;  %vm922_vm13 = vsmask.f32 7958  ;;  %v1716_v47 = vsel %vm5037_vm8, %v1710_v33, %v1715_v42  ;;  %v3154_v48 = vpop.permute.xlu0 %3153  ;;  %vm5038_vm5 = vsmask.f32 7962  ;;  %vm5039_vm2 = vcmask 1046534  }
 0x1b7   : > { %vm3806_vm4 = vmand %vm5039_vm2, %vm5038_vm5  ;;  %v1720_v50 = vsel %vm3637_vm0, %v1716_v47, %v1719_v39  ;;  %v1603_v52 = vrot.slane %v3161_v44, 4  ;;  %v1612_v51 = vsel %vm3754_vm6, %v3161_v44, %v1611_v43  ;;  %v1602_v53 = vrot.slane %v3160_v45, 4  ;;  %v1532_v39 = vld [vmem:[#allocation3 + $0x18] sm:$0x22] }
 0x1b8   : > { %vm5042_vm12 = vsmask.f32 7942  ;;  %vm5043_vm11 = vcmask 1041409   ;;  %vm1103_vm8 = vsmask.f32 7966  ;;  %v3156_v56 = vunpack.i.h.bf16 %v3154_v48  ;;  %v3169_v59 = vpop.permute.xlu1 %3168 }
 0x1b9   : > { %vm3816_vm14 = vmand %vm5043_vm11, %vm5042_vm12  ;;  %1721 = vst [vmem:[#allocation3 + $0x24] sm:$0x11] %v1720_v50  ;;  %v3155_v58 = vunpack.i.l.bf16 %v3154_v48  ;;  %vm5046_vm5 = vcmask 1045509   ;;  %v1604_v0 = vsel %vm5032_vm15, %v1602_v53, %v1603_v52  ;;  %vm4950_vm6 = vcmask 744448   ;;  %v1765_v1 = vld [vmem:[#allocation3 + $0x2c] sm:$0x1] }
 0x1ba   : > { %1613 = vst [vmem:[#allocation3 + $0x20] sm:$0x4] %v1612_v51  ;;  %vm3822_vm2 = vmand %vm5046_vm5, %vm922_vm13  ;;  %v3171_v2 = vunpack.i.h.bf16 %v3169_v59  ;;  %v3170_v3 = vunpack.i.l.bf16 %v3169_v59  ;;  %v1608_v7 = vld [vmem:[#allocation3 + $0x18] sm:$0x44]  ;;  %vm5051_vm13 = vsmask.f32 7954  ;;  %v3164_v10 = vpop.permute.xlu0 %3163  ;;  %v1536_v12 = vsel %vm3792_vm9, %v3156_v56, %v1535_v63 }
 0x1bb   : > { %vm3831_vm12 = vmor %vm3806_vm4, %vm3799_vm1  ;;  %vm5052_vm11 = vcmask 1044484   ;;  %v1527_v4 = vrot.slane %v3156_v56, 4  ;;  %v1526_v9 = vrot.slane %v3155_v58, 4  ;;  %vm5055_vm15 = vcmask 900096   ;;  %1537 = vst [vmem:[#allocation3 + $0x20] sm:$0x2] %v1536_v12 }
 0x1bc   : > { %vm3837_vm5 = vmand %vm5052_vm11, %vm5051_vm13  ;;  %v1605_v11 = vsel %vm5055_vm15, %v3160_v45, %v1604_v0  ;;  %v1757_v15 = vrot.slane %v3171_v2, 4  ;;  %v1766_v16 = vsel %vm3772_vm10, %v3171_v2, %v1765_v1  ;;  %v1756_v17 = vrot.slane %v3170_v3, 4  ;;  %v1682_v47 = vld [vmem:[#allocation3 + $0x18] sm:$0x88]  ;;  %v1144_v56 = vld [vmem:[#allocation3 + $0x14] sm:$0x1] }
 0x1bd   : > { %v3166_v62 = vunpack.i.h.bf16 %v3164_v10  ;;  %vm3850_vm4 = vmor %vm3822_vm2, %vm3816_vm14  ;;  %vm5058_vm1 = vcmask 1047559   ;;  %vm5061_vm11 = vcmask 1043456   ;;  %1767 = vst [vmem:[#allocation3 + $0x2c] sm:$0x1] %v1766_v16  ;;  %v3165_v24 = vunpack.i.l.bf16 %v3164_v10  ;;  %v1147_v63 = vld [vmem:[#allocation2] sm:$0x15] }
 0x1be   : > { %vm3856_vm13 = vmand %vm5058_vm1, %vm1103_vm8  ;;  %v1528_v21 = vsel %vm5061_vm11, %v1526_v9, %v1527_v4  ;;  %v1609_v27 = vsel %vm3831_vm12, %v1605_v11, %v1608_v7  ;;  %vm5064_vm8 = vcmask 1039360   ;;  %vm4948_vm15 = vcmask 883712   ;;  %v1141_v2 = vld [vmem:[#allocation3 + $0xc] sm:$0x11]  ;;  %v881_v16 = vld [vmem:[#allocation3 + $0x8] sm:$0x2] }
 0x1bf   : > { %vm3867_vm14 = vmor %vm3837_vm5, %vm3780_vm7  ;;  %v1529_v33 = vsel %vm5064_vm8, %v3155_v58, %v1528_v21  ;;  %v1677_v35 = vrot.slane %v3166_v62, 4  ;;  %v1686_v37 = vsel %vm3765_vm3, %v3166_v62, %v1685_v23  ;;  %1610 = vst [vmem:[#allocation3 + $0x18] sm:$0x44] %v1609_v27  ;;  %v1676_v36 = vrot.slane %v3165_v24, 4 }
 0x1c0   : > { %vm5065_vm2 = vmmov %vm5061_vm11  ;;  %1687 = vst [vmem:[#allocation3 + $0x20] sm:$0x8] %v1686_v37  ;;  %v1533_v42 = vsel %vm3850_vm4, %v1529_v33, %v1532_v39  ;;  %vm5066_vm7 = vnez %v5027_v38  ;;  %v5067_v43 = vmov 0  ;;  %v1762_v44 = vld [vmem:[#allocation3 + $0x24] sm:$0x11]  ;;  %vm5071_vm11 = vnez %v4989_v31 }
 0x1c1   : > { %v1758_v34 = vsel %vm5065_vm2, %v1756_v17, %v1757_v15  ;;  %vm3882_vm5 = vmor %vm3856_vm13, %vm5066_vm7  ;;  %1534 = vst [vmem:[#allocation3 + $0x18] sm:$0x22] %v1533_v42  ;;  %vm5070_vm13 = vnez %v4994_v61  ;;  %vm4949_vm8 = vcmask 736256   ;;  %v1149_v7 = vcombine.high %v1147_v63, %v1147_v63  ;;  %v966_v15 = vld [vmem:[#allocation3] sm:$0x44] }
 0x1c2   : > { %v1759_v40 = vsel %vm4950_vm6, %v3170_v3, %v1758_v34  ;;  %v5068_v43 = vsel %vm3882_vm5, 4294967295, %v5067_v43  ;;  %vm5069_vm1 = vmmov %vm5065_vm2  ;;  %v1062_v39 = vld [vmem:[#allocation3 + $0x8] sm:$0x8]  ;;  %v1156_v42 = vrot.slane %v1147_v63, %v3316_v13  ;;  %vm5079_vm6 = vnez %v4976_v25 }
 0x1c3   : > { %v1763_v45 = vsel %vm3867_vm14, %v1759_v40, %v1762_v44  ;;  %v1678_v46 = vsel %vm5069_vm1, %v1676_v36, %v1677_v35  ;;  %vm5072_vm2 = vmmov %vm5069_vm1  ;;  %v1163_v62 = vrot.slane %v1149_v7, %v3316_v13  ;;  %v876_v40 = vld [vmem:[#allocation3] sm:$0x22] }
 0x1c4   : > { %1764 = vst [vmem:[#allocation3 + $0x24] sm:$0x11] %v1763_v45  ;;  %v1679_v48 = vsel %vm4948_vm15, %v3165_v24, %v1678_v46  ;;  %vm5073_vm7 = vmmov %vm5069_vm1  ;;  %vm5074_vm1 = vcmask 891904   ;;  %vm5076_vm15 = vnez %v4978_v30 }
 0x1c5   : > { %v1683_v38 = vsel %vm3882_vm5, %v1679_v48, %v1682_v47  ;;  %vm5081_vm5 = vnez %v5008_v19  ;;  %vm5082_vm3 = vmmov %vm5073_vm7 }
 0x1c6   : > { %1684 = vst [vmem:[#allocation3 + $0x18] sm:$0x88] %v1683_v38 }
 0x1db   : > { %v952_v50 = vpop.permute.xlu1 %951 }
 0x1dc   : > { %v1131_v52 = vpop.permute.xlu0 %1130  ;;  %v972_v51 = vsel %vm5070_vm13, %v952_v50, %v971_v49  ;;  %v954_v10 = vrot.slane %v952_v50, 4 }
 0x1dd   : > { %973 = vst [vmem:[#allocation3 + $0x8] sm:$0x4] %v972_v51  ;;  %v1134_v60 = vrot.slane %v1131_v52, 4  ;;  %v1438_v51 = vld [vmem:[#allocation3 + $0x20] sm:$0x1] }
 0x1df   : > { %v3894_v53 = vpop.permute.xlu1 %1308 }
 0x1e0   : > { %v3896_v55 = vpop.permute.xlu0 %1458 }
 0x1e3   : > { %v1133_v58 = vpop.permute.xlu1 %1132 }
 0x1e4   : > { %v861_v59 = vpop.permute.xlu0 %860  ;;  %v1135_v0 = vrot.slane %v1133_v58, 4  ;;  %v1145_v1 = vsel %vm5071_vm11, %v1133_v58, %v1144_v56 }
 0x1e5   : > { %1146 = vst [vmem:[#allocation3 + $0x14] sm:$0x1] %v1145_v1  ;;  %v864_v27 = vrot.slane %v861_v59, 4 }
 0x1e6   : > { %v1136_v3 = vsel %vm5072_vm2, %v1134_v60, %v1135_v0  ;;  %vm5075_vm2 = vnez %v5006_v14 }
 0x1e7   : > { %v3901_v8 = vpop.permute.xlu1 %1460  ;;  %v1138_v9 = vsel %vm4949_vm8, %v1131_v52, %v1136_v3  ;;  %vm5078_vm8 = vnez %v4991_v57  ;;  %v1057_v52 = vld [vmem:[#allocation3] sm:$0x88]  ;;  %v1435_v3 = vld [vmem:[#allocation3 + $0x18] sm:$0x11] }
 0x1e8   : > { %v950_v4 = vpop.permute.xlu0 %949  ;;  %v1142_v12 = vsel %vm3637_vm0, %v1138_v9, %v1141_v2 }
 0x1e9   : > { %v953_v11 = vrot.slane %v950_v4, 4  ;;  %1143 = vst [vmem:[#allocation3 + $0xc] sm:$0x11] %v1142_v12  ;;  %v1463_v12 = vrot.slane %v3901_v8, 4 }
 0x1eb   : > { %v955_v17 = vsel %vm5073_vm7, %v953_v11, %v954_v10  ;;  %v863_v21 = vpop.permute.xlu1 %862 }
 0x1ec   : > { %v957_v20 = vsel %vm5074_vm1, %v950_v4, %v955_v17  ;;  %v1041_v23 = vpop.permute.xlu0 %1040  ;;  %v1169_v24 = vld [vmem:[#allocation3 + $0x14] sm:$0x1]  ;;  %v865_v34 = vrot.slane %v863_v21, 4  ;;  %v882_v35 = vsel %vm5076_vm15, %v863_v21, %v881_v16  ;;  %vm5077_vm1 = vcmask 1031168   ;;  %v1210_v21 = vld [vmem:[#allocation3 + $0x14] sm:$0x2] }
 0x1ed   : > { %v967_v33 = vsel %vm5075_vm2, %v957_v20, %v966_v15  ;;  %v1170_v37 = vsel %vm3772_vm10, %v1163_v62, %v1169_v24  ;;  %883 = vst [vmem:[#allocation3 + $0x8] sm:$0x2] %v882_v35  ;;  %v1044_v47 = vrot.slane %v1041_v23, 4  ;;  %v1462_v15 = vrot.slane %v3896_v55, 4 }
 0x1ee   : > { %968 = vst [vmem:[#allocation3] sm:$0x44] %v967_v33  ;;  %1171 = vst [vmem:[#allocation3 + $0x14] sm:$0x1] %v1170_v37  ;;  %v866_v36 = vsel %vm5073_vm7, %v864_v27, %v865_v34  ;;  %v1207_v37 = vld [vmem:[#allocation3 + $0xc] sm:$0x22] }
 0x1ef   : > { %v868_v44 = vsel %vm5077_vm1, %v861_v59, %v866_v36  ;;  %v1043_v45 = vpop.permute.xlu1 %1042  ;;  %vm5080_vm1 = vcmask 752640  }
 0x1f0   : > { %v1426_v46 = vpop.permute.xlu0 %1425  ;;  %v1045_v48 = vrot.slane %v1043_v45, 4  ;;  %v1063_v38 = vsel %vm5078_vm8, %v1043_v45, %v1062_v39  ;;  %v877_v49 = vsel %vm5079_vm6, %v868_v44, %v876_v40  ;;  %v1166_v50 = vld [vmem:[#allocation3 + $0xc] sm:$0x11]  ;;  %v1286_v39 = vld [vmem:[#allocation3 + $0x14] sm:$0x4] }
 0x1f1   : > { %1064 = vst [vmem:[#allocation3 + $0x8] sm:$0x8] %v1063_v38  ;;  %878 = vst [vmem:[#allocation3] sm:$0x22] %v877_v49  ;;  %v1167_v13 = vsel %vm3867_vm14, %v1156_v42, %v1166_v50  ;;  %v1429_v0 = vrot.slane %v1426_v46, 4 }
 0x1f2   : > { %v1046_v56 = vsel %vm5073_vm7, %v1044_v47, %v1045_v48  ;;  %1168 = vst [vmem:[#allocation3 + $0xc] sm:$0x11] %v1167_v13  ;;  %vm5083_vm7 = vcmask 744448   ;;  %v1283_v48 = vld [vmem:[#allocation3 + $0xc] sm:$0x44] }
 0x1f3   : > { %v1048_v58 = vsel %vm5080_vm1, %v1041_v23, %v1046_v56  ;;  %v1428_v59 = vpop.permute.xlu1 %1427  ;;  %vm5086_vm1 = vcmask 1039360   ;;  %v1360_v50 = vld [vmem:[#allocation3 + $0x14] sm:$0x8] }
 0x1f4   : > { %v3926_v60 = vpop.permute.xlu0 %1232  ;;  %v1058_v63 = vsel %vm5081_vm5, %v1048_v58, %v1057_v52  ;;  %v1430_v1 = vrot.slane %v1428_v59, 4  ;;  %v1439_v2 = vsel %vm5071_vm11, %v1428_v59, %v1438_v51  ;;  %vm5084_vm11 = vmmov %vm5082_vm3 }
 0x1f5   : > { %1059 = vst [vmem:[#allocation3] sm:$0x88] %v1058_v63  ;;  %1440 = vst [vmem:[#allocation3 + $0x20] sm:$0x1] %v1439_v2  ;;  %v1464_v62 = vsel %vm5084_vm11, %v1462_v15, %v1463_v12  ;;  %v1236_v49 = vrot.slane %v3926_v60, 4 }
 0x1f6   : > { %v1431_v7 = vsel %vm5082_vm3, %v1429_v0, %v1430_v1  ;;  %vm5088_vm11 = vmmov %vm5082_vm3  ;;  %v1357_v12 = vld [vmem:[#allocation3 + $0xc] sm:$0x88] }
 0x1f7   : > { %v1432_v4 = vsel %vm5083_vm7, %v1426_v46, %v1431_v7  ;;  %v1235_v9 = vpop.permute.xlu1 %1234  ;;  %vm5087_vm7 = vmmov %vm5082_vm3 }
 0x1f8   : > { %v3934_v10 = vpop.permute.xlu0 %1306  ;;  %v1436_v11 = vsel %vm3637_vm0, %v1432_v4, %v1435_v3  ;;  %vm5085_vm0 = vcmask 736256   ;;  %v1237_v36 = vrot.slane %v1235_v9, 4  ;;  %v1311_v4 = vrot.slane %v3894_v53, 4 }
 0x1f9   : > { %1437 = vst [vmem:[#allocation3 + $0x18] sm:$0x11] %v1436_v11  ;;  %v1465_v34 = vsel %vm5085_vm0, %v3896_v55, %v1464_v62  ;;  %v1310_v52 = vrot.slane %v3934_v10, 4  ;;  %vm5089_vm0 = vcmask 900096  }
 0x1fa   : > { %v1238_v13 = vsel %vm5088_vm11, %v1236_v49, %v1237_v36  ;;  %vm5097_vm11 = vcmask 752640  }
 0x1fb   : > { %v3940_v31 = vpop.permute.xlu1 %1384 }
 0x1fc   : > { %v3942_v16 = vpop.permute.xlu0 %1382  ;;  %v1471_v17 = vld [vmem:[#allocation3 + $0x20] sm:$0x1]  ;;  %v1387_v56 = vrot.slane %v3940_v31, 4 }
 0x1fd   : > { %v1472_v20 = vsel %vm3772_vm10, %v3901_v8, %v1471_v17  ;;  %v1386_v58 = vrot.slane %v3942_v16, 4 }
 0x1fe   : > { %1473 = vst [vmem:[#allocation3 + $0x20] sm:$0x1] %v1472_v20 }
 0x1ff   : > { %v1200_v26 = vpop.permute.xlu1 %1199 }
 0x200   : > { %v1198_v23 = vpop.permute.xlu0 %1197  ;;  %v1202_v24 = vrot.slane %v1200_v26, 4  ;;  %v1211_v27 = vsel %vm5076_vm15, %v1200_v26, %v1210_v21  ;;  %v1468_v35 = vld [vmem:[#allocation3 + $0x18] sm:$0x11] }
 0x201   : > { %v1201_v33 = vrot.slane %v1198_v23, 4  ;;  %1212 = vst [vmem:[#allocation3 + $0x14] sm:$0x2] %v1211_v27  ;;  %v1469_v40 = vsel %vm3867_vm14, %v1465_v34, %v1468_v35  ;;  %v929_v35 = vld [vmem:[#allocation3 + $0x8] sm:$0x2] }
 0x202   : > { %1470 = vst [vmem:[#allocation3 + $0x18] sm:$0x11] %v1469_v40 }
 0x203   : > { %v1203_v8 = vsel %vm5082_vm3, %v1201_v33, %v1202_v24  ;;  %v1276_v44 = vpop.permute.xlu1 %1275 }
 0x204   : > { %v1204_v42 = vsel %vm5086_vm1, %v1198_v23, %v1203_v8  ;;  %v1274_v45 = vpop.permute.xlu0 %1273  ;;  %v1278_v47 = vrot.slane %v1276_v44, 4  ;;  %v1287_v55 = vsel %vm5070_vm13, %v1276_v44, %v1286_v39  ;;  %vm5090_vm13 = vmmov %vm5082_vm3  ;;  %vm5091_vm3 = vcmask 1031168   ;;  %v838_v8 = vld [vmem:[#allocation3 + $0x8] sm:$0x1] }
 0x205   : > { %v1208_v46 = vsel %vm5079_vm6, %v1204_v42, %v1207_v37  ;;  %v1277_v38 = vrot.slane %v1274_v45, 4  ;;  %1288 = vst [vmem:[#allocation3 + $0x14] sm:$0x4] %v1287_v55  ;;  %v1239_v14 = vsel %vm5091_vm3, %v3926_v60, %v1238_v13  ;;  %v1110_v13 = vld [vmem:[#allocation3 + $0x8] sm:$0x8]  ;;  %vm5102_vm3 = vcmask 1039360  }
 0x206   : > { %1209 = vst [vmem:[#allocation3 + $0xc] sm:$0x22] %v1208_v46 }
 0x207   : > { %v1279_v51 = vsel %vm5087_vm7, %v1277_v38, %v1278_v47  ;;  %v1350_v59 = vpop.permute.xlu1 %1349 }
 0x208   : > { %v1280_v61 = vsel %vm5089_vm0, %v1274_v45, %v1279_v51  ;;  %v1348_v63 = vpop.permute.xlu0 %1347  ;;  %v1245_v0 = vld [vmem:[#allocation3 + $0x14] sm:$0x2]  ;;  %v1352_v2 = vrot.slane %v1350_v59, 4  ;;  %v1361_v3 = vsel %vm5078_vm8, %v1350_v59, %v1360_v50  ;;  %vm5094_vm8 = vcmask 883712  }
 0x209   : > { %v1284_v1 = vsel %vm5075_vm2, %v1280_v61, %v1283_v48  ;;  %v1351_v7 = vrot.slane %v1348_v63, 4  ;;  %v1246_v11 = vsel %vm3792_vm9, %v1235_v9, %v1245_v0  ;;  %1362 = vst [vmem:[#allocation3 + $0x14] sm:$0x8] %v1361_v3  ;;  %vm5092_vm2 = vmmov %vm5087_vm7  ;;  %vm5095_vm7 = vnez %v5012_v22  ;;  %v834_v61 = vld [vmem:[#allocation3] sm:$0x11] }
 0x20a   : > { %1285 = vst [vmem:[#allocation3 + $0xc] sm:$0x44] %v1284_v1  ;;  %1247 = vst [vmem:[#allocation3 + $0x14] sm:$0x2] %v1246_v11  ;;  %v1312_v17 = vsel %vm5092_vm2, %v1310_v52, %v1311_v4  ;;  %v925_v52 = vld [vmem:[#allocation3] sm:$0x22] }
 0x20b   : > { %v1353_v15 = vsel %vm5090_vm13, %v1351_v7, %v1352_v2  ;;  %vm5093_vm1 = vmmov %vm5092_vm2  ;;  %v3179_v20 = vpop.permute.xlu1 %3178  ;;  %vm5100_vm13 = vcmask 900096   ;;  %vm1849_vm2 = vcmask 1044480  }
 0x20c   : > { %v1388_v57 = vsel %vm5093_vm1, %v1386_v58, %v1387_v56  ;;  %v1354_v62 = vsel %vm5094_vm8, %v1348_v63, %v1353_v15  ;;  %v3174_v21 = vpop.permute.xlu0 %3173  ;;  %v1319_v23 = vld [vmem:[#allocation3 + $0x14] sm:$0x4]  ;;  %v3181_v24 = vunpack.i.h.bf16 %v3179_v20  ;;  %v3180_v27 = vunpack.i.l.bf16 %v3179_v20  ;;  %vm5098_vm0 = vmmov %vm5093_vm1  ;;  %v1798_v56 = vld [vmem:[#allocation3 + $0x2c] sm:$0x2] }
 0x20d   : > { %v1242_v26 = vld [vmem:[#allocation3 + $0xc] sm:$0x22]  ;;  %v1358_v9 = vsel %vm5081_vm5, %v1354_v62, %v1357_v12  ;;  %v3176_v33 = vunpack.i.h.bf16 %v3174_v21  ;;  %v1320_v60 = vsel %vm5095_vm7, %v3894_v53, %v1319_v23  ;;  %v3175_v37 = vunpack.i.l.bf16 %v3174_v21  ;;  %v1106_v62 = vld [vmem:[#allocation3] sm:$0x88]  ;;  %vm5106_vm8 = vmmov %vm5098_vm0 }
 0x20e   : > { %v1243_v34 = vsel %vm3850_vm4, %v1239_v14, %v1242_v26  ;;  %1359 = vst [vmem:[#allocation3 + $0xc] sm:$0x88] %v1358_v9  ;;  %1321 = vst [vmem:[#allocation3 + $0x14] sm:$0x4] %v1320_v60  ;;  %v914_v39 = vrot.slane %v3181_v24, 4  ;;  %v930_v19 = vsel %vm3792_vm9, %v3181_v24, %v929_v35  ;;  %v913_v40 = vrot.slane %v3180_v27, 4 }
 0x20f   : > { %1244 = vst [vmem:[#allocation3 + $0xc] sm:$0x22] %v1243_v34  ;;  %v824_v36 = vrot.slane %v3176_v33, 4  ;;  %vm5096_vm5 = vcmask 891904   ;;  %v1389_v44 = vsel %vm5097_vm11, %v3942_v16, %v1388_v57  ;;  %931 = vst [vmem:[#allocation3 + $0x8] sm:$0x2] %v930_v19  ;;  %v839_v53 = vsel %vm3772_vm10, %v3176_v33, %v838_v8  ;;  %v3189_v46 = vpop.permute.xlu1 %3188 }
 0x210   : > { %v1313_v42 = vsel %vm5096_vm5, %v3934_v10, %v1312_v17  ;;  %v823_v45 = vrot.slane %v3175_v37, 4  ;;  %v3184_v47 = vpop.permute.xlu0 %3183  ;;  %v1395_v48 = vld [vmem:[#allocation3 + $0x14] sm:$0x8]  ;;  %v915_v41 = vsel %vm5098_vm0, %v913_v40, %v914_v39  ;;  %840 = vst [vmem:[#allocation3 + $0x8] sm:$0x1] %v839_v53  ;;  %v3191_v38 = vunpack.i.h.bf16 %v3189_v46  ;;  %vm5101_vm10 = vmmov %vm5098_vm0 }
 0x211   : > { %v1316_v55 = vld [vmem:[#allocation3 + $0xc] sm:$0x44]  ;;  %v3190_v49 = vunpack.i.l.bf16 %v3189_v46  ;;  %v3186_v50 = vunpack.i.h.bf16 %v3184_v47  ;;  %vm5099_vm9 = vnez %v5015_v28  ;;  %v917_v32 = vsel %vm5100_vm13, %v3180_v27, %v915_v41  ;;  %v1795_v57 = vld [vmem:[#allocation3 + $0x24] sm:$0x22]  ;;  %v1014_v33 = vld [vmem:[#allocation3] sm:$0x44] }
 0x212   : > { %v1317_v10 = vsel %vm3831_vm12, %v1313_v42, %v1316_v55  ;;  %v1396_v16 = vsel %vm5099_vm9, %v3940_v31, %v1395_v48  ;;  %v826_v51 = vsel %vm5101_vm10, %v823_v45, %v824_v36  ;;  %v926_v58 = vsel %vm3850_vm4, %v917_v32, %v925_v52  ;;  %v1018_v31 = vld [vmem:[#allocation3 + $0x8] sm:$0x4]  ;;  %v1801_v19 = vld [vmem:[%s4895_s1] sm:$0xf] }
 0x213   : > { %1318 = vst [vmem:[#allocation3 + $0xc] sm:$0x44] %v1317_v10  ;;  %1397 = vst [vmem:[#allocation3 + $0x14] sm:$0x8] %v1396_v16  ;;  %v827_v59 = vsel %vm5102_vm3, %v3175_v37, %v826_v51  ;;  %v1095_v63 = vrot.slane %v3191_v38, 4  ;;  %v1111_v0 = vsel %vm5099_vm9, %v3191_v38, %v1110_v13  ;;  %v1094_v2 = vrot.slane %v3190_v49, 4  ;;  %v1788_v18 = vpop.permute.xlu1 %1787 }
 0x214   : > { %927 = vst [vmem:[#allocation3] sm:$0x22] %v926_v58  ;;  %v835_v1 = vsel %vm3867_vm14, %v827_v59, %v834_v61  ;;  %1112 = vst [vmem:[#allocation3 + $0x8] sm:$0x8] %v1111_v0  ;;  %v1004_v3 = vrot.slane %v3186_v50, 4  ;;  %v1019_v7 = vsel %vm5095_vm7, %v3186_v50, %v1018_v31  ;;  %v1786_v4 = vpop.permute.xlu0 %1785  ;;  %v3185_v12 = vunpack.i.l.bf16 %v3184_v47 }
 0x215   : > { %v1392_v11 = vld [vmem:[#allocation3 + $0xc] sm:$0x88]  ;;  %836 = vst [vmem:[#allocation3] sm:$0x11] %v835_v1  ;;  %1020 = vst [vmem:[#allocation3 + $0x8] sm:$0x4] %v1019_v7  ;;  %v1799_v28 = vsel %vm5076_vm15, %v1788_v18, %v1798_v56  ;;  %vm5103_vm4 = vnez %v5068_v43 }
 0x216   : > { %v1790_v15 = vrot.slane %v1788_v18, 4  ;;  %v1789_v14 = vrot.slane %v1786_v4, 4  ;;  %v1393_v29 = vsel %vm5103_vm4, %v1389_v44, %v1392_v11  ;;  %vm5104_vm14 = vmmov %vm5098_vm0  ;;  %1800 = vst [vmem:[#allocation3 + $0x2c] sm:$0x2] %v1799_v28  ;;  %vm5105_vm1 = vcmask 744448  }
 0x217   : > { %v1096_v17 = vsel %vm5104_vm14, %v1094_v2, %v1095_v63  ;;  %1394 = vst [vmem:[#allocation3 + $0xc] sm:$0x88] %v1393_v29  ;;  %v1003_v20 = vrot.slane %v3185_v12, 4  ;;  %vm5107_vm15 = vcmask 736256   ;;  %vm5108_vm7 = vmmov %vm5098_vm0  ;;  %vm1850_vm5 = vcmask 1045504  }
 0x218   : > { %v1098_v22 = vsel %vm5105_vm1, %v3190_v49, %v1096_v17  ;;  %v1791_v21 = vsel %vm5106_vm8, %v1789_v14, %v1790_v15  ;;  %v3261_v24 = vmov 65535   ;;  %vm5109_vm11 = vcmask 883712  }
 0x219   : > { %v1107_v30 = vsel %vm5103_vm4, %v1098_v22, %v1106_v62  ;;  %v1792_v26 = vsel %vm5107_vm15, %v1786_v4, %v1791_v21  ;;  %v1005_v23 = vsel %vm5108_vm7, %v1003_v20, %v1004_v3  ;;  %v1851_v27 = vsel %vm1849_vm2, 4294967295, %v3261_v24 }
 0x21a   : > { %1108 = vst [vmem:[#allocation3] sm:$0x88] %v1107_v30  ;;  %v1796_v9 = vsel %vm5079_vm6, %v1792_v26, %v1795_v57  ;;  %v1007_v34 = vsel %vm5109_vm11, %v3185_v12, %v1005_v23  ;;  %v1852_v35 = vsel %vm1850_vm5, %v1851_v27, 0  ;;  %vm1845_vm6 = vcmask 220160  }
 0x21b   : > { %1797 = vst [vmem:[#allocation3 + $0x24] sm:$0x22] %v1796_v9  ;;  %v1015_v60 = vsel %vm3831_vm12, %v1007_v34, %v1014_v33  ;;  %v4040_v10 = vsub.s32 0, %v3313_v6  ;;  %vm2004_vm12 = vcmask 122880   ;;  %vm2384_vm0 = vcmask 15360  }
 0x21c   : > { %1016 = vst [vmem:[#allocation3] sm:$0x44] %v1015_v60  ;;  %v3220_v43 = vld [vmem:[#allocation3 + $0x8] ss:$12 sps:$4 sm:$0xff]   ;;  %vm2829_vm9 = vcmask 31744  }
 0x21d   : > { %v3223_v37 = vld [vmem:[#allocation3 + $0x20] ss:$12 sps:$4 sm:$0x3f]   ;;  %3096 = vmatpush3.bf16.msra.mxu1 %v3220_v43  ;;  %v4086_v43 = vsub.s32 1, %v3313_v6 }
 0x21e   : > { %3097 = vmatprep.subr.bf16.mxu1 %v3258_v54  ;;  %v1860_v39 = vand.u32 %v3223_v37, %v1852_v35  ;;  %v3262_v54 = vmov 1966171168  }
 0x21f   : > { %v1949_v44 = vunpack.c.l.s4 %v3262_v54 }
 0x221   : > { %3098 = vmatpush3.bf16.msra.mxu1 %v1860_v39  ;;  %v1950_v53 = vunpack.c.0.s8 %v1949_v44 }
 0x222   : > { %v3225_v25 = vld [vmem:[#allocation3 + $0x1c] ss:$12 sps:$4 sm:$0x3f]   ;;  %v3227_v40 = vld [vmem:[#allocation3 + $0x18] ss:$12 sps:$4 sm:$0x3f]  }
 0x223   : > { %v3221_v8 = vld [vmem:[#allocation3 + $0x4] ss:$12 sps:$4 sm:$0xff]   ;;  %v3224_v36 = vld [vmem:[#allocation3] ss:$12 sps:$4 sm:$0xff]   ;;  %v1857_v5 = vand.u32 %v3225_v25, %v1852_v35  ;;  %v1854_v42 = vand.u32 %v3227_v40, %v1852_v35  ;;  %v4033_v48 = vsub.s32 %v1950_v53, %v3313_v6 }
 0x224   : > { %1862 = vmatprep.subr.bf16.mxu0 %v3221_v8  ;;  %3100 = vmatmul.mubr.msk.bf16.vlgmr.msra.gmra.mrb[0].mxu1 %vm1845_vm6, %v1801_v19 }
 0x225   : > { %1863 = vmatpush1.bf16.msra.mxu0 %v3224_v36  ;;  %v1814_v45 = vpop.permute.xlu0 %1813 }
 0x226   : > { %1864 = vmatprep.subr.bf16.mxu0 %v1857_v5 }
 0x229   : > { %1865 = vmatpush1.bf16.msra.mxu0 %v1854_v42 }
 0x22c   : > { %3073 = vmatmul.mubr.msk.bf16.vlgmr.msra.gmra.mrb[0].mxu0 %vm1845_vm6, %v1801_v19 }
 0x2f7   : > { %v1937_v46 = vpop.f32.mrb[0].mxu1 }
 0x2f8   : > { %v1938_v47 = vadd.f32 %v1937_v46, %v1814_v45  ;;  %v3101_v55 = vpop.f32.mrb[1].mxu1 }
 0x2f9   : > { %v1940_v41 = vpop.f32.mrb[2].mxu1 }
 0x2fa   : > { %v4035_v38 = vmax.f32 %v1938_v47, 0.0  ;;  %v3102_v49 = vpop.f32.mrb[3].mxu1 }
 0x2fc   : > { %v2854_v50 = vcombine.high %v4035_v38, %v4035_v38  ;;  %v2861_v16 = vrot.slane %v4035_v38, %v4033_v48 }
 0x2fe   : > { %v2877_v32 = vrot.slane %v2861_v16, %v4033_v48  ;;  %v2869_v52 = vcombine.high %v2861_v16, %v2861_v16  ;;  %v2868_v51 = vrot.slane %v2854_v50, %v4033_v48 }
 0x2ff   : > { %v1896_v13 = vpop.f32.mrb[0].mxu0 }
 0x300   : > { %v1897_v56 = vadd.f32 %v1896_v13, %v1814_v45  ;;  %v1898_v58 = vpop.f32.mrb[1].mxu0  ;;  %v2906_v61 = vrot.slane %v2877_v32, %v4040_v10  ;;  %v2891_v59 = vrot.slane %v2869_v52, %v4033_v48  ;;  %v2899_v63 = vcombine.high %v2877_v32, %v2877_v32 }
 0x301   : > { %v1899_v0 = vadd.f32 %v1898_v58, %v1814_v45  ;;  %v1900_v31 = vpop.f32.mrb[2].mxu0  ;;  %v2870_v1 = vcombine.high %v2868_v51, %v2868_v51  ;;  %v4052_v11 = vrot.slane %v2868_v51, %v4033_v48 }
 0x302   : > { %v1943_v2 = vmax.f32 %v1897_v56, 0.0  ;;  %2935 = vrot.lane.b32.xlu0 %v2906_v61, %s3263_s19  ;;  %v2910_v3 = vrot.slane %v2891_v59, %v4040_v10  ;;  %v1901_v7 = vpop.f32.mrb[3].mxu0  ;;  %v2901_v18 = vcombine.high %v2891_v59, %v2891_v59  ;;  %v2914_v28 = vrot.slane %v2899_v63, %v4040_v10 }
 0x303   : > { %v1944_v4 = vmax.f32 %v1899_v0, 0.0  ;;  %v4065_v57 = vrot.slane %v2870_v1, %v4033_v48  ;;  %v2922_v26 = vrot.slane %v4052_v11, %v4040_v10  ;;  %v2900_v19 = vcombine.high %v4052_v11, %v4052_v11 }
 0x304   : > { %v1947_v12 = vcombine.high %v1943_v2, %v1943_v2  ;;  %v1954_v15 = vrot.slane %v1943_v2, %v4033_v48  ;;  %2937 = vrot.lane.b32.xlu1 %v2910_v3, %s3263_s19  ;;  %v2918_v17 = vrot.slane %v2901_v18, %v4040_v10 }
 0x305   : > { %v2409_v14 = vcombine.high %v1944_v4, %v1944_v4  ;;  %v2416_v29 = vrot.slane %v1944_v4, %v4033_v48  ;;  %v2238_v21 = vcombine.low %v1943_v2, %v1944_v4  ;;  %v2239_v23 = vcombine.high %v1943_v2, %v1944_v4 }
 0x306   : > { %v1961_v22 = vrot.slane %v1947_v12, %v4033_v48  ;;  %v1962_v62 = vcombine.high %v1954_v15, %v1954_v15  ;;  %v1970_v20 = vrot.slane %v1954_v15, %v4033_v48  ;;  %2939 = vrot.lane.b32.xlu0 %v2914_v28, %s3263_s19  ;;  %v2926_v6 = vrot.slane %v4065_v57, %v4040_v10 }
 0x307   : > { %v4071_v30 = vrot.slane %v2409_v14, %v4033_v48  ;;  %v2424_v34 = vcombine.high %v2416_v29, %v2416_v29  ;;  %v2246_v60 = vrot.slane %v2238_v21, %v4033_v48  ;;  %v2253_v35 = vrot.slane %v2239_v23, %v4033_v48 }
 0x308   : > { %v1963_v9 = vcombine.high %v1961_v22, %v1961_v22  ;;  %v4076_v24 = vrot.slane %v1961_v22, %v4033_v48  ;;  %v1984_v27 = vrot.slane %v1962_v62, %v4033_v48  ;;  %v4079_v33 = vcombine.high %v1970_v20, %v1970_v20  ;;  %2005 = vst.msk [vmem:[%s4060_s21] sm:$0x1] %vm2004_vm12, %v1970_v20 }
 0x309   : > { %2941 = vrot.lane.b32.xlu1 %v2918_v17, %s3263_s19  ;;  %v4108_v40 = vrot.slane %v2416_v29, %v4033_v48  ;;  %v4111_v8 = vrot.slane %v2246_v60, %v4033_v48  ;;  %v4114_v36 = vrot.slane %v2253_v35, %v4033_v48  ;;  %v4124_v5 = vrot.slane %v1970_v20, %v4040_v10 }
 0x30a   : > { %v4090_v37 = vrot.slane %v1963_v9, %v4033_v48  ;;  %v1993_v39 = vcombine.high %v4076_v24, %v4076_v24  ;;  %v1994_v25 = vcombine.high %v1984_v27, %v1984_v27  ;;  %2006 = vst.msk [vmem:[%s4060_s21 + $0x10] sm:$0x1] %vm2004_vm12, %v1984_v27  ;;  %2007 = vst.msk [vmem:[%s4060_s21 + $0x20] sm:$0x1] %vm2004_vm12, %v4079_v33  ;;  %2943 = vrot.lane.b32.xlu0 %v2922_v26, %s3263_s19 }
 0x30b   : > { %2009 = vst.msk [vmem:[%s4060_s21 + $0x40] sm:$0x1] %vm2004_vm12, %v4076_v24  ;;  %v2683_v42 = vcombine.low %v1944_v4, %v4035_v38  ;;  %v2684_v54 = vcombine.high %v1944_v4, %v4035_v38  ;;  %v2902_v53 = vcombine.high %v4065_v57, %v4065_v57  ;;  %v4135_v45 = vrot.slane %v1984_v27, %v4040_v10 }
 0x30c   : > { %2008 = vst.msk [vmem:[%s4060_s21 + $0x30] sm:$0x1] %vm2004_vm12, %v1994_v25  ;;  %2010 = vst.msk [vmem:[%s4060_s21 + $0x50] sm:$0x1] %vm2004_vm12, %v4090_v37  ;;  %v4130_v44 = vrot.slane %v1994_v25, %v4040_v10  ;;  %v4138_v46 = vrot.slane %v2424_v34, %v4033_v48  ;;  %v4142_v47 = vrot.slane %v4090_v37, %v4040_v10 }
 0x30d   : > { %2011 = vst.msk [vmem:[%s4060_s21 + $0x60] sm:$0x1] %vm2004_vm12, %v1993_v39  ;;  %2945 = vrot.lane.b32.xlu1 %v2926_v6, %s3263_s19  ;;  %v2691_v55 = vrot.slane %v2683_v42, %v4033_v48  ;;  %v2698_v41 = vrot.slane %v2684_v54, %v4033_v48  ;;  %v2291_v38 = vrot.slane %v4111_v8, %v4040_v10 }
 0x30e   : > { %2077 = vrot.lane.b32.xlu0 %v4124_v5, %s3254_s8  ;;  %v2323_v49 = vrot.slane %v4114_v36, %v4040_v10  ;;  %v2454_v50 = vcombine.high %v4108_v40, %v4108_v40  ;;  %v2439_v16 = vrot.slane %v4071_v30, %v4033_v48  ;;  %v2254_v32 = vcombine.high %v2246_v60, %v2246_v60 }
 0x30f   : > { %v4158_v52 = vcombine.high %v4111_v8, %v4111_v8  ;;  %v4163_v51 = vrot.slane %v2691_v55, %v4033_v48  ;;  %v4166_v13 = vrot.slane %v2698_v41, %v4033_v48  ;;  %v2255_v56 = vcombine.high %v2253_v35, %v2253_v35 }
 0x310   : > { %v4170_v58 = vcombine.high %v4114_v36, %v4114_v36  ;;  %v4173_v61 = vrot.slane %v2454_v50, %v4040_v10  ;;  %v4176_v59 = vrot.slane %v2439_v16, %v4040_v10  ;;  %v4179_v63 = vrot.slane %v2254_v32, %v4033_v48 }
 0x311   : > { %2045 = vrot.lane.b32.xlu1 %v4124_v5, %s3255_s9  ;;  %v2311_v0 = vrot.slane %v4158_v52, %v4086_v43  ;;  %v2736_v31 = vrot.slane %v4163_v51, %v4040_v10  ;;  %v2768_v1 = vrot.slane %v4166_v13, %v4040_v10  ;;  %v4190_v2 = vrot.slane %v2255_v56, %v4033_v48 }
 0x312   : > { %2109 = vrot.lane.b32.xlu0 %v4124_v5, %s3264_s22  ;;  %v2343_v3 = vrot.slane %v4170_v58, %v4086_v43  ;;  %v2303_v7 = vrot.slane %v4179_v63, %v4086_v43  ;;  %v2456_v18 = vcombine.high %v4138_v46, %v4138_v46  ;;  %v2425_v4 = vcombine.high %v4071_v30, %v4071_v30 }
 0x313   : > { %v2740_v12 = vrot.slane %v4163_v51, %v4086_v43  ;;  %v2335_v15 = vrot.slane %v4190_v2, %v4086_v43  ;;  %v2772_v28 = vrot.slane %v4166_v13, %v4086_v43  ;;  %v4209_v14 = vrot.slane %v1993_v39, %v4040_v10 }
 0x314   : > { %v2699_v29 = vcombine.high %v2691_v55, %v2691_v55  ;;  %v4212_v17 = vrot.slane %v2456_v18, %v4040_v10  ;;  %v2453_v22 = vrot.slane %v2425_v4, %v4033_v48  ;;  %v4217_v62 = vcombine.high %v4163_v51, %v4163_v51 }
 0x315   : > { %2047 = vrot.lane.b32.xlu1 %v4135_v45, %s3255_s9  ;;  %v2299_v20 = vrot.slane %v4179_v63, %v4040_v10  ;;  %v2700_v30 = vcombine.high %v2698_v41, %v2698_v41  ;;  %v2307_v26 = vrot.slane %v4158_v52, %v4040_v10  ;;  %v4230_v23 = vcombine.high %v4166_v13, %v4166_v13 }
 0x316   : > { %2141 = vrot.lane.b32.xlu0 %v4124_v5, %s3265_s23  ;;  %v4224_v21 = vrot.slane %v2699_v29, %v4033_v48  ;;  %v4233_v9 = vrot.slane %v2453_v22, %v4040_v10  ;;  %v2752_v27 = vrot.slane %v4217_v62, %v4040_v10  ;;  %v2331_v34 = vrot.slane %v4190_v2, %v4040_v10 }
 0x317   : > { %v2339_v60 = vrot.slane %v4170_v58, %v4040_v10  ;;  %v4246_v39 = vrot.slane %v2700_v30, %v4033_v48  ;;  %v2784_v25 = vrot.slane %v4230_v23, %v4040_v10  ;;  %v2455_v6 = vcombine.high %v2439_v16, %v2439_v16 }
 0x318   : > { %v2744_v35 = vrot.slane %v4224_v21, %v4040_v10  ;;  %v1995_v42 = vcombine.high %v4090_v37, %v4090_v37  ;;  %v2748_v54 = vrot.slane %v4224_v21, %v4086_v43  ;;  %v2756_v55 = vrot.slane %v4217_v62, %v4086_v43 }
 0x319   : > { %2079 = vrot.lane.b32.xlu1 %v4135_v45, %s3254_s8  ;;  %v4258_v41 = vcombine.high %v4179_v63, %v4179_v63  ;;  %v2776_v48 = vrot.slane %v4246_v39, %v4040_v10  ;;  %v4265_v50 = vrot.slane %v2455_v6, %v4040_v10  ;;  %v4271_v16 = vcombine.high %v4190_v2, %v4190_v2 }
 0x31a   : > { %2173 = vrot.lane.b32.xlu0 %v4124_v5, %s3266_s24  ;;  %2012 = vst.msk [vmem:[%s4060_s21 + $0x70] sm:$0x1] %vm2004_vm12, %v1995_v42  ;;  %v4276_v32 = vrot.slane %v1995_v42, %v4040_v10  ;;  %v2457_v4 = vcombine.high %v2453_v22, %v2453_v22  ;;  %v4292_v42 = vcombine.high %v4224_v21, %v4224_v21 }
 0x31b   : > { %v2319_v56 = vrot.slane %v4258_v41, %v4086_v43  ;;  %v2351_v29 = vrot.slane %v4271_v16, %v4086_v43  ;;  %v4299_v22 = vcombine.high %v4246_v39, %v4246_v39  ;;  %v4305_v18 = vrot.slane %v2900_v19, %v4040_v10 }
 0x31c   : > { %v4295_v37 = vrot.slane %v2457_v4, %v4040_v10  ;;  %v4311_v6 = vrot.slane %v2902_v53, %v4040_v10  ;;  %v2764_v4 = vrot.slane %v4292_v42, %v4086_v43  ;;  %v2760_v30 = vrot.slane %v4292_v42, %v4040_v10 }
 0x31d   : > { %2111 = vrot.lane.b32.xlu1 %v4135_v45, %s3264_s22  ;;  %v2796_v11 = vrot.slane %v4299_v22, %v4086_v43  ;;  %v2792_v19 = vrot.slane %v4299_v22, %v4040_v10  ;;  %v2461_v57 = vrot.slane %v4108_v40, %v4040_v10  ;;  %v2327_v40 = vrot.slane %v4114_v36, %v4086_v43 }
 0x31e   : > { %2205 = vrot.lane.b32.xlu0 %v4124_v5, %s3267_s25  ;;  %v2295_v5 = vrot.slane %v4111_v8, %v4086_v43  ;;  %v2465_v53 = vrot.slane %v4138_v46, %v4040_v10 }
 0x321   : > { %2143 = vrot.lane.b32.xlu1 %v4135_v45, %s3265_s23 }
 0x322   : > { %2490 = vrot.lane.b32.xlu0 %v2461_v57, %s3268_s26 }
 0x325   : > { %2175 = vrot.lane.b32.xlu1 %v4135_v45, %s3266_s24 }
 0x326   : > { %2522 = vrot.lane.b32.xlu0 %v2461_v57, %s3269_s27 }
 0x329   : > { %2207 = vrot.lane.b32.xlu1 %v4135_v45, %s3267_s25  ;;  %v2024_v45 = vrot.slane %v4079_v33, %v4040_v10 }
 0x32a   : > { %2554 = vrot.lane.b32.xlu0 %v2461_v57, %s3270_s28 }
 0x32d   : > { %2354 = vrot.lane.b32.xlu1 %v2295_v5, %s3271_s29  ;;  %v2032_v5 = vrot.slane %v4076_v24, %v4040_v10 }
 0x32e   : > { %2586 = vrot.lane.b32.xlu0 %v2461_v57, %s3272_s30 }
 0x331   : > { %2370 = vrot.lane.b32.xlu1 %v2327_v40, %s3271_s29 }
 0x332   : > { %2618 = vrot.lane.b32.xlu0 %v2461_v57, %s3273_s4 }
 0x335   : > { %2492 = vrot.lane.b32.xlu1 %v2465_v53, %s3268_s26 }
 0x336   : > { %2650 = vrot.lane.b32.xlu0 %v2461_v57, %s3274_s5 }
 0x339   : > { %2524 = vrot.lane.b32.xlu1 %v2465_v53, %s3269_s27 }
 0x33a   : > { %2049 = vrot.lane.b32.xlu0 %v2024_v45, %s3255_s9 }
 0x33d   : > { %2556 = vrot.lane.b32.xlu1 %v2465_v53, %s3270_s28 }
 0x33e   : > { %2053 = vrot.lane.b32.xlu0 %v2032_v5, %s3255_s9 }
 0x341   : > { %2588 = vrot.lane.b32.xlu1 %v2465_v53, %s3272_s30 }
 0x342   : > { %2081 = vrot.lane.b32.xlu0 %v2024_v45, %s3254_s8 }
 0x345   : > { %2620 = vrot.lane.b32.xlu1 %v2465_v53, %s3273_s4 }
 0x346   : > { %2085 = vrot.lane.b32.xlu0 %v2032_v5, %s3254_s8 }
 0x349   : > { %2652 = vrot.lane.b32.xlu1 %v2465_v53, %s3274_s5 }
 0x34a   : > { %2113 = vrot.lane.b32.xlu0 %v2024_v45, %s3264_s22 }
 0x34d   : > { %2797 = vrot.lane.b32.xlu1 %v2736_v31, %s3275_s6 }
 0x34e   : > { %2117 = vrot.lane.b32.xlu0 %v2032_v5, %s3264_s22 }
 0x351   : > { %2813 = vrot.lane.b32.xlu1 %v2768_v1, %s3275_s6 }
 0x352   : > { %2145 = vrot.lane.b32.xlu0 %v2024_v45, %s3265_s23 }
 0x355   : > { %2051 = vrot.lane.b32.xlu1 %v4130_v44, %s3255_s9 }
 0x356   : > { %2149 = vrot.lane.b32.xlu0 %v2032_v5, %s3265_s23 }
 0x359   : > { %2055 = vrot.lane.b32.xlu1 %v4142_v47, %s3255_s9 }
 0x35a   : > { %2177 = vrot.lane.b32.xlu0 %v2024_v45, %s3266_s24 }
 0x35d   : > { %2083 = vrot.lane.b32.xlu1 %v4130_v44, %s3254_s8 }
 0x35e   : > { %2181 = vrot.lane.b32.xlu0 %v2032_v5, %s3266_s24 }
 0x361   : > { %2087 = vrot.lane.b32.xlu1 %v4142_v47, %s3254_s8 }
 0x362   : > { %2209 = vrot.lane.b32.xlu0 %v2024_v45, %s3267_s25 }
 0x365   : > { %2115 = vrot.lane.b32.xlu1 %v4130_v44, %s3264_s22 }
 0x366   : > { %2213 = vrot.lane.b32.xlu0 %v2032_v5, %s3267_s25 }
 0x369   : > { %2119 = vrot.lane.b32.xlu1 %v4142_v47, %s3264_s22 }
 0x36a   : > { %2352 = vrot.lane.b32.xlu0 %v2291_v38, %s3271_s29 }
 0x36d   : > { %2147 = vrot.lane.b32.xlu1 %v4130_v44, %s3265_s23 }
 0x36e   : > { %2368 = vrot.lane.b32.xlu0 %v2323_v49, %s3271_s29 }
 0x371   : > { %2151 = vrot.lane.b32.xlu1 %v4142_v47, %s3265_s23 }
 0x372   : > { %2494 = vrot.lane.b32.xlu0 %v4173_v61, %s3268_s26 }
 0x374   : > { %v2936_v24 = vpop.permute.xlu0 %2935 }
 0x375   : > { %2179 = vrot.lane.b32.xlu1 %v4130_v44, %s3266_s24  ;;  %2959 = vst.msk [vmem:[%s4060_s21 + $0xf] sm:$0x1] %vm2004_vm12, %v2936_v24 }
 0x376   : > { %v2938_v33 = vpop.permute.xlu1 %2937  ;;  %2498 = vrot.lane.b32.xlu0 %v4176_v59, %s3268_s26 }
 0x377   : > { %2960 = vst.msk [vmem:[%s4060_s21 + $0x1f] sm:$0x1] %vm2004_vm12, %v2938_v33 }
 0x378   : > { %v2940_v8 = vpop.permute.xlu0 %2939 }
 0x379   : > { %2183 = vrot.lane.b32.xlu1 %v4142_v47, %s3266_s24  ;;  %2961 = vst.msk [vmem:[%s4060_s21 + $0x2f] sm:$0x1] %vm2004_vm12, %v2940_v8 }
 0x37a   : > { %2526 = vrot.lane.b32.xlu0 %v4173_v61, %s3269_s27 }
 0x37b   : > { %v2942_v36 = vpop.permute.xlu1 %2941 }
 0x37c   : > { %2962 = vst.msk [vmem:[%s4060_s21 + $0x3f] sm:$0x1] %vm2004_vm12, %v2942_v36  ;;  %v2944_v46 = vpop.permute.xlu0 %2943 }
 0x37d   : > { %2211 = vrot.lane.b32.xlu1 %v4130_v44, %s3267_s25  ;;  %2963 = vst.msk [vmem:[%s4060_s21 + $0x4f] sm:$0x1] %vm2004_vm12, %v2944_v46 }
 0x37e   : > { %2530 = vrot.lane.b32.xlu0 %v4176_v59, %s3269_s27 }
 0x37f   : > { %v2946_v38 = vpop.permute.xlu1 %2945 }
 0x380   : > { %2964 = vst.msk [vmem:[%s4060_s21 + $0x5f] sm:$0x1] %vm2004_vm12, %v2946_v38  ;;  %v2078_v49 = vpop.permute.xlu0 %2077 }
 0x381   : > { %2215 = vrot.lane.b32.xlu1 %v4142_v47, %s3267_s25  ;;  %2101 = vst.msk [vmem:[%s4060_s21 + $0x2] sm:$0x1] %vm2004_vm12, %v2078_v49 }
 0x382   : > { %2558 = vrot.lane.b32.xlu0 %v4173_v61, %s3270_s28 }
 0x383   : > { %v2046_v44 = vpop.permute.xlu1 %2045 }
 0x384   : > { %2069 = vst.msk [vmem:[%s4060_s21 + $0x1] sm:$0x1] %vm2004_vm12, %v2046_v44  ;;  %v2110_v31 = vpop.permute.xlu0 %2109 }
 0x385   : > { %2358 = vrot.lane.b32.xlu1 %v2303_v7, %s3271_s29  ;;  %2133 = vst.msk [vmem:[%s4060_s21 + $0x3] sm:$0x1] %vm2004_vm12, %v2110_v31 }
 0x386   : > { %2562 = vrot.lane.b32.xlu0 %v4176_v59, %s3270_s28 }
 0x387   : > { %v2048_v47 = vpop.permute.xlu1 %2047 }
 0x388   : > { %2070 = vst.msk [vmem:[%s4060_s21 + $0x11] sm:$0x1] %vm2004_vm12, %v2048_v47  ;;  %v2142_v1 = vpop.permute.xlu0 %2141 }
 0x389   : > { %2362 = vrot.lane.b32.xlu1 %v2311_v0, %s3271_s29  ;;  %2165 = vst.msk [vmem:[%s4060_s21 + $0x4] sm:$0x1] %vm2004_vm12, %v2142_v1 }
 0x38a   : > { %2590 = vrot.lane.b32.xlu0 %v4173_v61, %s3272_s30 }
 0x38b   : > { %v2080_v7 = vpop.permute.xlu1 %2079 }
 0x38c   : > { %2102 = vst.msk [vmem:[%s4060_s21 + $0x12] sm:$0x1] %vm2004_vm12, %v2080_v7  ;;  %v2174_v57 = vpop.permute.xlu0 %2173 }
 0x38d   : > { %2374 = vrot.lane.b32.xlu1 %v2335_v15, %s3271_s29  ;;  %2197 = vst.msk [vmem:[%s4060_s21 + $0x5] sm:$0x1] %vm2004_vm12, %v2174_v57 }
 0x38e   : > { %2594 = vrot.lane.b32.xlu0 %v4176_v59, %s3272_s30 }
 0x38f   : > { %v2112_v0 = vpop.permute.xlu1 %2111 }
 0x390   : > { %2134 = vst.msk [vmem:[%s4060_s21 + $0x13] sm:$0x1] %vm2004_vm12, %v2112_v0  ;;  %v2206_v40 = vpop.permute.xlu0 %2205 }
 0x391   : > { %2378 = vrot.lane.b32.xlu1 %v2343_v3, %s3271_s29  ;;  %2229 = vst.msk [vmem:[%s4060_s21 + $0x6] sm:$0x1] %vm2004_vm12, %v2206_v40 }
 0x392   : > { %2622 = vrot.lane.b32.xlu0 %v4173_v61, %s3273_s4 }
 0x393   : > { %v2144_v15 = vpop.permute.xlu1 %2143 }
 0x394   : > { %2166 = vst.msk [vmem:[%s4060_s21 + $0x14] sm:$0x1] %vm2004_vm12, %v2144_v15  ;;  %v2491_v53 = vpop.permute.xlu0 %2490 }
 0x395   : > { %2496 = vrot.lane.b32.xlu1 %v4212_v17, %s3268_s26  ;;  %2514 = vst.msk [vmem:[%s4060_s21 + $0x8] sm:$0x1] %vm2004_vm12, %v2491_v53 }
 0x396   : > { %2626 = vrot.lane.b32.xlu0 %v4176_v59, %s3273_s4 }
 0x397   : > { %v2176_v3 = vpop.permute.xlu1 %2175 }
 0x398   : > { %2198 = vst.msk [vmem:[%s4060_s21 + $0x15] sm:$0x1] %vm2004_vm12, %v2176_v3  ;;  %v2523_v45 = vpop.permute.xlu0 %2522 }
 0x399   : > { %2500 = vrot.lane.b32.xlu1 %v4233_v9, %s3268_s26  ;;  %2546 = vst.msk [vmem:[%s4060_s21 + $0x9] sm:$0x1] %vm2004_vm12, %v2523_v45 }
 0x39a   : > { %2654 = vrot.lane.b32.xlu0 %v4173_v61, %s3274_s5 }
 0x39b   : > { %v2208_v5 = vpop.permute.xlu1 %2207 }
 0x39c   : > { %2230 = vst.msk [vmem:[%s4060_s21 + $0x16] sm:$0x1] %vm2004_vm12, %v2208_v5  ;;  %v2555_v24 = vpop.permute.xlu0 %2554 }
 0x39d   : > { %2528 = vrot.lane.b32.xlu1 %v4212_v17, %s3269_s27  ;;  %2578 = vst.msk [vmem:[%s4060_s21 + $0xa] sm:$0x1] %vm2004_vm12, %v2555_v24 }
 0x39e   : > { %2799 = vrot.lane.b32.xlu0 %v2740_v12, %s3275_s6 }
 0x39f   : > { %v4493_v33 = vpop.permute.xlu1 %2354 }
 0x3a0   : > { %v2587_v8 = vpop.permute.xlu0 %2586 }
 0x3a1   : > { %2532 = vrot.lane.b32.xlu1 %v4233_v9, %s3269_s27  ;;  %2610 = vst.msk [vmem:[%s4060_s21 + $0xb] sm:$0x1] %vm2004_vm12, %v2587_v8  ;;  %v5112_v8 = vrot.slane %v4258_v41, %v4040_v10 }
 0x3a2   : > { %2815 = vrot.lane.b32.xlu0 %v2772_v28, %s3275_s6 }
 0x3a3   : > { %v4503_v61 = vpop.permute.xlu1 %2370 }
 0x3a4   : > { %v2619_v36 = vpop.permute.xlu0 %2618 }
 0x3a5   : > { %2560 = vrot.lane.b32.xlu1 %v4212_v17, %s3270_s28  ;;  %2642 = vst.msk [vmem:[%s4060_s21 + $0xc] sm:$0x1] %vm2004_vm12, %v2619_v36  ;;  %v5113_v36 = vrot.slane %v4271_v16, %v4040_v10 }
 0x3a6   : > { %2658 = vrot.lane.b32.xlu0 %v4176_v59, %s3274_s5 }
 0x3a7   : > { %v2493_v51 = vpop.permute.xlu1 %2492 }
 0x3a8   : > { %2515 = vst.msk [vmem:[%s4060_s21 + $0x18] sm:$0x1] %vm2004_vm12, %v2493_v51  ;;  %v2651_v12 = vpop.permute.xlu0 %2650 }
 0x3a9   : > { %2564 = vrot.lane.b32.xlu1 %v4233_v9, %s3270_s28  ;;  %2674 = vst.msk [vmem:[%s4060_s21 + $0xd] sm:$0x1] %vm2004_vm12, %v2651_v12 }
 0x3aa   : > { %2057 = vrot.lane.b32.xlu0 %v4209_v14, %s3255_s9 }
 0x3ab   : > { %v2525_v13 = vpop.permute.xlu1 %2524 }
 0x3ac   : > { %2547 = vst.msk [vmem:[%s4060_s21 + $0x19] sm:$0x1] %vm2004_vm12, %v2525_v13  ;;  %v2050_v28 = vpop.permute.xlu0 %2049 }
 0x3ad   : > { %2592 = vrot.lane.b32.xlu1 %v4212_v17, %s3272_s30  ;;  %2071 = vst.msk [vmem:[%s4060_s21 + $0x21] sm:$0x1] %vm2004_vm12, %v2050_v28 }
 0x3ae   : > { %2089 = vrot.lane.b32.xlu0 %v4209_v14, %s3254_s8 }
 0x3af   : > { %v2557_v59 = vpop.permute.xlu1 %2556 }
 0x3b0   : > { %2579 = vst.msk [vmem:[%s4060_s21 + $0x1a] sm:$0x1] %vm2004_vm12, %v2557_v59  ;;  %v2054_v46 = vpop.permute.xlu0 %2053 }
 0x3b1   : > { %2596 = vrot.lane.b32.xlu1 %v4233_v9, %s3272_s30  ;;  %2073 = vst.msk [vmem:[%s4060_s21 + $0x41] sm:$0x1] %vm2004_vm12, %v2054_v46 }
 0x3b2   : > { %2121 = vrot.lane.b32.xlu0 %v4209_v14, %s3264_s22 }
 0x3b3   : > { %v2589_v38 = vpop.permute.xlu1 %2588 }
 0x3b4   : > { %2611 = vst.msk [vmem:[%s4060_s21 + $0x1b] sm:$0x1] %vm2004_vm12, %v2589_v38  ;;  %v2082_v49 = vpop.permute.xlu0 %2081 }
 0x3b5   : > { %2624 = vrot.lane.b32.xlu1 %v4212_v17, %s3273_s4  ;;  %2103 = vst.msk [vmem:[%s4060_s21 + $0x22] sm:$0x1] %vm2004_vm12, %v2082_v49 }
 0x3b6   : > { %2153 = vrot.lane.b32.xlu0 %v4209_v14, %s3265_s23 }
 0x3b7   : > { %v2621_v44 = vpop.permute.xlu1 %2620 }
 0x3b8   : > { %2643 = vst.msk [vmem:[%s4060_s21 + $0x1c] sm:$0x1] %vm2004_vm12, %v2621_v44  ;;  %v2086_v31 = vpop.permute.xlu0 %2085 }
 0x3b9   : > { %2628 = vrot.lane.b32.xlu1 %v4233_v9, %s3273_s4  ;;  %2105 = vst.msk [vmem:[%s4060_s21 + $0x42] sm:$0x1] %vm2004_vm12, %v2086_v31 }
 0x3ba   : > { %2185 = vrot.lane.b32.xlu0 %v4209_v14, %s3266_s24 }
 0x3bb   : > { %v2653_v47 = vpop.permute.xlu1 %2652 }
 0x3bc   : > { %2675 = vst.msk [vmem:[%s4060_s21 + $0x1d] sm:$0x1] %vm2004_vm12, %v2653_v47  ;;  %v2114_v1 = vpop.permute.xlu0 %2113 }
 0x3bd   : > { %2801 = vrot.lane.b32.xlu1 %v2744_v35, %s3275_s6  ;;  %2135 = vst.msk [vmem:[%s4060_s21 + $0x23] sm:$0x1] %vm2004_vm12, %v2114_v1 }
 0x3be   : > { %2217 = vrot.lane.b32.xlu0 %v4209_v14, %s3267_s25 }
 0x3bf   : > { %v4565_v7 = vpop.permute.xlu1 %2797 }
 0x3c0   : > { %v2118_v57 = vpop.permute.xlu0 %2117 }
 0x3c1   : > { %2805 = vrot.lane.b32.xlu1 %v2752_v27, %s3275_s6  ;;  %2137 = vst.msk [vmem:[%s4060_s21 + $0x43] sm:$0x1] %vm2004_vm12, %v2118_v57 }
 0x3c2   : > { %2356 = vrot.lane.b32.xlu0 %v2299_v20, %s3271_s29 }
 0x3c3   : > { %v4577_v35 = vpop.permute.xlu1 %2813 }
 0x3c4   : > { %v2146_v14 = vpop.permute.xlu0 %2145 }
 0x3c5   : > { %2817 = vrot.lane.b32.xlu1 %v2776_v48, %s3275_s6  ;;  %2167 = vst.msk [vmem:[%s4060_s21 + $0x24] sm:$0x1] %vm2004_vm12, %v2146_v14 }
 0x3c6   : > { %2360 = vrot.lane.b32.xlu0 %v2307_v26, %s3271_s29 }
 0x3c7   : > { %v2052_v27 = vpop.permute.xlu1 %2051 }
 0x3c8   : > { %2072 = vst.msk [vmem:[%s4060_s21 + $0x31] sm:$0x1] %vm2004_vm12, %v2052_v27  ;;  %v2150_v63 = vpop.permute.xlu0 %2149 }
 0x3c9   : > { %2821 = vrot.lane.b32.xlu1 %v2784_v25, %s3275_s6  ;;  %2169 = vst.msk [vmem:[%s4060_s21 + $0x44] sm:$0x1] %vm2004_vm12, %v2150_v63 }
 0x3ca   : > { %2372 = vrot.lane.b32.xlu0 %v2331_v34, %s3271_s29 }
 0x3cb   : > { %v2056_v52 = vpop.permute.xlu1 %2055 }
 0x3cc   : > { %2074 = vst.msk [vmem:[%s4060_s21 + $0x51] sm:$0x1] %vm2004_vm12, %v2056_v52  ;;  %v2178_v20 = vpop.permute.xlu0 %2177 }
 0x3cd   : > { %2656 = vrot.lane.b32.xlu1 %v4212_v17, %s3274_s5  ;;  %2199 = vst.msk [vmem:[%s4060_s21 + $0x25] sm:$0x1] %vm2004_vm12, %v2178_v20 }
 0x3ce   : > { %2376 = vrot.lane.b32.xlu0 %v2339_v60, %s3271_s29 }
 0x3cf   : > { %v2084_v26 = vpop.permute.xlu1 %2083 }
 0x3d0   : > { %2104 = vst.msk [vmem:[%s4060_s21 + $0x32] sm:$0x1] %vm2004_vm12, %v2084_v26  ;;  %v2182_v2 = vpop.permute.xlu0 %2181 }
 0x3d1   : > { %2660 = vrot.lane.b32.xlu1 %v4233_v9, %s3274_s5  ;;  %2201 = vst.msk [vmem:[%s4060_s21 + $0x45] sm:$0x1] %vm2004_vm12, %v2182_v2 }
 0x3d2   : > { %2502 = vrot.lane.b32.xlu0 %v4265_v50, %s3268_s26 }
 0x3d3   : > { %v2088_v17 = vpop.permute.xlu1 %2087 }
 0x3d4   : > { %2106 = vst.msk [vmem:[%s4060_s21 + $0x52] sm:$0x1] %vm2004_vm12, %v2088_v17  ;;  %v2210_v34 = vpop.permute.xlu0 %2209 }
 0x3d5   : > { %2059 = vrot.lane.b32.xlu1 %v4276_v32, %s3255_s9  ;;  %2231 = vst.msk [vmem:[%s4060_s21 + $0x26] sm:$0x1] %vm2004_vm12, %v2210_v34 }
 0x3d6   : > { %2534 = vrot.lane.b32.xlu0 %v4265_v50, %s3269_s27 }
 0x3d7   : > { %v2116_v58 = vpop.permute.xlu1 %2115 }
 0x3d8   : > { %2136 = vst.msk [vmem:[%s4060_s21 + $0x33] sm:$0x1] %vm2004_vm12, %v2116_v58  ;;  %v2214_v9 = vpop.permute.xlu0 %2213 }
 0x3d9   : > { %2091 = vrot.lane.b32.xlu1 %v4276_v32, %s3254_s8  ;;  %2233 = vst.msk [vmem:[%s4060_s21 + $0x46] sm:$0x1] %vm2004_vm12, %v2214_v9 }
 0x3da   : > { %2566 = vrot.lane.b32.xlu0 %v4265_v50, %s3270_s28 }
 0x3db   : > { %v2120_v60 = vpop.permute.xlu1 %2119 }
 0x3dc   : > { %2138 = vst.msk [vmem:[%s4060_s21 + $0x53] sm:$0x1] %vm2004_vm12, %v2120_v60  ;;  %v2353_v25 = vpop.permute.xlu0 %2352 }
 0x3dd   : > { %2123 = vrot.lane.b32.xlu1 %v4276_v32, %s3264_s22  ;;  %v2385_v48 = vsel %vm2384_vm0, %v2353_v25, %v4493_v33 }
 0x3de   : > { %2401 = vst.msk [vmem:[%s4060_s21 + $0x7] sm:$0x1] %vm2004_vm12, %v2385_v48  ;;  %2598 = vrot.lane.b32.xlu0 %v4265_v50, %s3272_s30 }
 0x3df   : > { %v2148_v0 = vpop.permute.xlu1 %2147 }
 0x3e0   : > { %2168 = vst.msk [vmem:[%s4060_s21 + $0x34] sm:$0x1] %vm2004_vm12, %v2148_v0  ;;  %v2369_v40 = vpop.permute.xlu0 %2368 }
 0x3e1   : > { %2155 = vrot.lane.b32.xlu1 %v4276_v32, %s3265_s23  ;;  %v2389_v15 = vsel %vm2384_vm0, %v2369_v40, %v4503_v61 }
 0x3e2   : > { %2405 = vst.msk [vmem:[%s4060_s21 + $0x47] sm:$0x1] %vm2004_vm12, %v2389_v15  ;;  %2630 = vrot.lane.b32.xlu0 %v4265_v50, %s3273_s4 }
 0x3e3   : > { %v2152_v53 = vpop.permute.xlu1 %2151 }
 0x3e4   : > { %2170 = vst.msk [vmem:[%s4060_s21 + $0x54] sm:$0x1] %vm2004_vm12, %v2152_v53  ;;  %v2495_v3 = vpop.permute.xlu0 %2494 }
 0x3e5   : > { %2187 = vrot.lane.b32.xlu1 %v4276_v32, %s3266_s24  ;;  %2516 = vst.msk [vmem:[%s4060_s21 + $0x28] sm:$0x1] %vm2004_vm12, %v2495_v3 }
 0x3e6   : > { %2803 = vrot.lane.b32.xlu0 %v2748_v54, %s3275_s6 }
 0x3e7   : > { %v2180_v45 = vpop.permute.xlu1 %2179 }
 0x3e8   : > { %2200 = vst.msk [vmem:[%s4060_s21 + $0x35] sm:$0x1] %vm2004_vm12, %v2180_v45  ;;  %v2499_v5 = vpop.permute.xlu0 %2498 }
 0x3e9   : > { %2219 = vrot.lane.b32.xlu1 %v4276_v32, %s3267_s25  ;;  %2518 = vst.msk [vmem:[%s4060_s21 + $0x48] sm:$0x1] %vm2004_vm12, %v2499_v5  ;;  %v5110_v32 = vrot.slane %v4246_v39, %v4086_v43 }
 0x3ea   : > { %2807 = vrot.lane.b32.xlu0 %v2756_v55, %s3275_s6 }
 0x3eb   : > { %v2184_v24 = vpop.permute.xlu1 %2183 }
 0x3ec   : > { %2202 = vst.msk [vmem:[%s4060_s21 + $0x55] sm:$0x1] %vm2004_vm12, %v2184_v24  ;;  %v2527_v21 = vpop.permute.xlu0 %2526 }
 0x3ed   : > { %2366 = vrot.lane.b32.xlu1 %v2319_v56, %s3271_s29  ;;  %2548 = vst.msk [vmem:[%s4060_s21 + $0x29] sm:$0x1] %vm2004_vm12, %v2527_v21  ;;  %v5111_v56 = vrot.slane %v4230_v23, %v4086_v43 }
 0x3ee   : > { %2819 = vrot.lane.b32.xlu0 %v5110_v32, %s3275_s6 }
 0x3ef   : > { %v2212_v54 = vpop.permute.xlu1 %2211 }
 0x3f0   : > { %2232 = vst.msk [vmem:[%s4060_s21 + $0x36] sm:$0x1] %vm2004_vm12, %v2212_v54  ;;  %v2531_v62 = vpop.permute.xlu0 %2530 }
 0x3f1   : > { %2382 = vrot.lane.b32.xlu1 %v2351_v29, %s3271_s29  ;;  %2550 = vst.msk [vmem:[%s4060_s21 + $0x49] sm:$0x1] %vm2004_vm12, %v2531_v62 }
 0x3f2   : > { %2823 = vrot.lane.b32.xlu0 %v5111_v56, %s3275_s6 }
 0x3f3   : > { %v2216_v55 = vpop.permute.xlu1 %2215 }
 0x3f4   : > { %2234 = vst.msk [vmem:[%s4060_s21 + $0x56] sm:$0x1] %vm2004_vm12, %v2216_v55  ;;  %v2559_v39 = vpop.permute.xlu0 %2558 }
 0x3f5   : > { %2504 = vrot.lane.b32.xlu1 %v4295_v37, %s3268_s26  ;;  %2580 = vst.msk [vmem:[%s4060_s21 + $0x2a] sm:$0x1] %vm2004_vm12, %v2559_v39 }
 0x3f6   : > { %2662 = vrot.lane.b32.xlu0 %v4265_v50, %s3274_s5 }
 0x3f7   : > { %v4705_v33 = vpop.permute.xlu1 %2358 }
 0x3f8   : > { %v2563_v29 = vpop.permute.xlu0 %2562 }
 0x3f9   : > { %2536 = vrot.lane.b32.xlu1 %v4295_v37, %s3269_s27  ;;  %2582 = vst.msk [vmem:[%s4060_s21 + $0x4a] sm:$0x1] %vm2004_vm12, %v2563_v29 }
 0x3fa   : > { %2364 = vrot.lane.b32.xlu0 %v5112_v8, %s3271_s29 }
 0x3fb   : > { %v4713_v23 = vpop.permute.xlu1 %2362 }
 0x3fc   : > { %v2591_v61 = vpop.permute.xlu0 %2590 }
 0x3fd   : > { %2568 = vrot.lane.b32.xlu1 %v4295_v37, %s3270_s28  ;;  %2612 = vst.msk [vmem:[%s4060_s21 + $0x2b] sm:$0x1] %vm2004_vm12, %v2591_v61 }
 0x3fe   : > { %2380 = vrot.lane.b32.xlu0 %v5113_v36, %s3271_s29 }
 0x3ff   : > { %v4723_v50 = vpop.permute.xlu1 %2374 }
 0x400   : > { %v2595_v51 = vpop.permute.xlu0 %2594 }
 0x401   : > { %2600 = vrot.lane.b32.xlu1 %v4295_v37, %s3272_s30  ;;  %2614 = vst.msk [vmem:[%s4060_s21 + $0x4b] sm:$0x1] %vm2004_vm12, %v2595_v51 }
 0x402   : > { %2811 = vrot.lane.b32.xlu0 %v2764_v4, %s3275_s6 }
 0x403   : > { %v4733_v41 = vpop.permute.xlu1 %2378 }
 0x404   : > { %v2623_v12 = vpop.permute.xlu0 %2622 }
 0x405   : > { %2632 = vrot.lane.b32.xlu1 %v4295_v37, %s3273_s4  ;;  %2644 = vst.msk [vmem:[%s4060_s21 + $0x2c] sm:$0x1] %vm2004_vm12, %v2623_v12 }
 0x406   : > { %2827 = vrot.lane.b32.xlu0 %v2796_v11, %s3275_s6 }
 0x407   : > { %v2497_v16 = vpop.permute.xlu1 %2496 }
 0x408   : > { %2517 = vst.msk [vmem:[%s4060_s21 + $0x38] sm:$0x1] %vm2004_vm12, %v2497_v16  ;;  %v2627_v13 = vpop.permute.xlu0 %2626 }
 0x409   : > { %2809 = vrot.lane.b32.xlu1 %v2760_v30, %s3275_s6  ;;  %2646 = vst.msk [vmem:[%s4060_s21 + $0x4c] sm:$0x1] %vm2004_vm12, %v2627_v13 }
 0x40a   : > { %2947 = vrot.lane.b32.xlu0 %v4305_v18, %s3263_s19 }
 0x40b   : > { %v2501_v4 = vpop.permute.xlu1 %2500 }
 0x40c   : > { %2519 = vst.msk [vmem:[%s4060_s21 + $0x58] sm:$0x1] %vm2004_vm12, %v2501_v4  ;;  %v2655_v43 = vpop.permute.xlu0 %2654 }
 0x40d   : > { %2825 = vrot.lane.b32.xlu1 %v2792_v19, %s3275_s6  ;;  %2676 = vst.msk [vmem:[%s4060_s21 + $0x2d] sm:$0x1] %vm2004_vm12, %v2655_v43 }
 0x40f   : > { %v2529_v30 = vpop.permute.xlu1 %2528 }
 0x410   : > { %2549 = vst.msk [vmem:[%s4060_s21 + $0x39] sm:$0x1] %vm2004_vm12, %v2529_v30  ;;  %v2800_v42 = vpop.permute.xlu0 %2799 }
 0x411   : > { %2664 = vrot.lane.b32.xlu1 %v4295_v37, %s3274_s5  ;;  %v2830_v18 = vsel %vm2829_vm9, %v4565_v7, %v2800_v42 }
 0x412   : > { %2846 = vst.msk [vmem:[%s4060_s21 + $0xe] sm:$0x1] %vm2004_vm12, %v2830_v18 }
 0x413   : > { %v2533_v10 = vpop.permute.xlu1 %2532 }
 0x414   : > { %2551 = vst.msk [vmem:[%s4060_s21 + $0x59] sm:$0x1] %vm2004_vm12, %v2533_v10  ;;  %v2816_v22 = vpop.permute.xlu0 %2815 }
 0x415   : > { %2949 = vrot.lane.b32.xlu1 %v4311_v6, %s3263_s19  ;;  %v2834_v11 = vsel %vm2829_vm9, %v4577_v35, %v2816_v22 }
 0x416   : > { %2850 = vst.msk [vmem:[%s4060_s21 + $0x4e] sm:$0x1] %vm2004_vm12, %v2834_v11 }
 0x417   : > { %v2561_v37 = vpop.permute.xlu1 %2560 }
 0x418   : > { %2581 = vst.msk [vmem:[%s4060_s21 + $0x3a] sm:$0x1] %vm2004_vm12, %v2561_v37  ;;  %v2659_v19 = vpop.permute.xlu0 %2658 }
 0x419   : > { %2678 = vst.msk [vmem:[%s4060_s21 + $0x4d] sm:$0x1] %vm2004_vm12, %v2659_v19 }
 0x41b   : > { %v2565_v28 = vpop.permute.xlu1 %2564 }
 0x41c   : > { %2583 = vst.msk [vmem:[%s4060_s21 + $0x5a] sm:$0x1] %vm2004_vm12, %v2565_v28  ;;  %v2058_v6 = vpop.permute.xlu0 %2057 }
 0x41d   : > { %2075 = vst.msk [vmem:[%s4060_s21 + $0x61] sm:$0x1] %vm2004_vm12, %v2058_v6 }
 0x41f   : > { %v2593_v59 = vpop.permute.xlu1 %2592 }
 0x420   : > { %2613 = vst.msk [vmem:[%s4060_s21 + $0x3b] sm:$0x1] %vm2004_vm12, %v2593_v59  ;;  %v2090_v46 = vpop.permute.xlu0 %2089 }
 0x421   : > { %2107 = vst.msk [vmem:[%s4060_s21 + $0x62] sm:$0x1] %vm2004_vm12, %v2090_v46 }
 0x423   : > { %v2597_v38 = vpop.permute.xlu1 %2596 }
 0x424   : > { %2615 = vst.msk [vmem:[%s4060_s21 + $0x5b] sm:$0x1] %vm2004_vm12, %v2597_v38  ;;  %v2122_v49 = vpop.permute.xlu0 %2121 }
 0x425   : > { %2139 = vst.msk [vmem:[%s4060_s21 + $0x63] sm:$0x1] %vm2004_vm12, %v2122_v49 }
 0x427   : > { %v2625_v44 = vpop.permute.xlu1 %2624 }
 0x428   : > { %2645 = vst.msk [vmem:[%s4060_s21 + $0x3c] sm:$0x1] %vm2004_vm12, %v2625_v44  ;;  %v2154_v31 = vpop.permute.xlu0 %2153 }
 0x429   : > { %2171 = vst.msk [vmem:[%s4060_s21 + $0x64] sm:$0x1] %vm2004_vm12, %v2154_v31 }
 0x42b   : > { %v2629_v47 = vpop.permute.xlu1 %2628 }
 0x42c   : > { %2647 = vst.msk [vmem:[%s4060_s21 + $0x5c] sm:$0x1] %vm2004_vm12, %v2629_v47  ;;  %v2186_v1 = vpop.permute.xlu0 %2185 }
 0x42d   : > { %2203 = vst.msk [vmem:[%s4060_s21 + $0x65] sm:$0x1] %vm2004_vm12, %v2186_v1 }
 0x42f   : > { %v2802_v7 = vpop.permute.xlu1 %2801 }
 0x430   : > { %v2218_v57 = vpop.permute.xlu0 %2217 }
 0x431   : > { %2235 = vst.msk [vmem:[%s4060_s21 + $0x66] sm:$0x1] %vm2004_vm12, %v2218_v57 }
 0x433   : > { %v2806_v35 = vpop.permute.xlu1 %2805 }
 0x434   : > { %v2357_v14 = vpop.permute.xlu0 %2356 }
 0x435   : > { %v2386_v27 = vsel %vm2384_vm0, %v2357_v14, %v4705_v33 }
 0x436   : > { %2402 = vst.msk [vmem:[%s4060_s21 + $0x17] sm:$0x1] %vm2004_vm12, %v2386_v27 }
 0x437   : > { %v2818_v63 = vpop.permute.xlu1 %2817 }
 0x438   : > { %v2361_v52 = vpop.permute.xlu0 %2360 }
 0x439   : > { %v2387_v20 = vsel %vm2384_vm0, %v2361_v52, %v4713_v23 }
 0x43a   : > { %2403 = vst.msk [vmem:[%s4060_s21 + $0x27] sm:$0x1] %vm2004_vm12, %v2387_v20 }
 0x43b   : > { %v2822_v26 = vpop.permute.xlu1 %2821 }
 0x43c   : > { %v2373_v2 = vpop.permute.xlu0 %2372 }
 0x43d   : > { %v2390_v17 = vsel %vm2384_vm0, %v2373_v2, %v4723_v50 }
 0x43e   : > { %2406 = vst.msk [vmem:[%s4060_s21 + $0x57] sm:$0x1] %vm2004_vm12, %v2390_v17 }
 0x43f   : > { %v2657_v34 = vpop.permute.xlu1 %2656 }
 0x440   : > { %2677 = vst.msk [vmem:[%s4060_s21 + $0x3d] sm:$0x1] %vm2004_vm12, %v2657_v34  ;;  %v2377_v58 = vpop.permute.xlu0 %2376 }
 0x441   : > { %v2391_v9 = vsel %vm2384_vm0, %v2377_v58, %v4733_v41 }
 0x442   : > { %2407 = vst.msk [vmem:[%s4060_s21 + $0x67] sm:$0x1] %vm2004_vm12, %v2391_v9 }
 0x443   : > { %v2661_v60 = vpop.permute.xlu1 %2660 }
 0x444   : > { %2679 = vst.msk [vmem:[%s4060_s21 + $0x5d] sm:$0x1] %vm2004_vm12, %v2661_v60  ;;  %v2503_v25 = vpop.permute.xlu0 %2502 }
 0x445   : > { %2520 = vst.msk [vmem:[%s4060_s21 + $0x68] sm:$0x1] %vm2004_vm12, %v2503_v25 }
 0x447   : > { %v2060_v48 = vpop.permute.xlu1 %2059 }
 0x448   : > { %2076 = vst.msk [vmem:[%s4060_s21 + $0x71] sm:$0x1] %vm2004_vm12, %v2060_v48  ;;  %v2535_v0 = vpop.permute.xlu0 %2534 }
 0x449   : > { %2552 = vst.msk [vmem:[%s4060_s21 + $0x69] sm:$0x1] %vm2004_vm12, %v2535_v0 }
 0x44b   : > { %v2092_v40 = vpop.permute.xlu1 %2091 }
 0x44c   : > { %2108 = vst.msk [vmem:[%s4060_s21 + $0x72] sm:$0x1] %vm2004_vm12, %v2092_v40  ;;  %v2567_v15 = vpop.permute.xlu0 %2566 }
 0x44d   : > { %2584 = vst.msk [vmem:[%s4060_s21 + $0x6a] sm:$0x1] %vm2004_vm12, %v2567_v15 }
 0x44f   : > { %v2124_v53 = vpop.permute.xlu1 %2123 }
 0x450   : > { %2140 = vst.msk [vmem:[%s4060_s21 + $0x73] sm:$0x1] %vm2004_vm12, %v2124_v53  ;;  %v2599_v3 = vpop.permute.xlu0 %2598 }
 0x451   : > { %2616 = vst.msk [vmem:[%s4060_s21 + $0x6b] sm:$0x1] %vm2004_vm12, %v2599_v3 }
 0x453   : > { %v2156_v45 = vpop.permute.xlu1 %2155 }
 0x454   : > { %2172 = vst.msk [vmem:[%s4060_s21 + $0x74] sm:$0x1] %vm2004_vm12, %v2156_v45  ;;  %v2631_v5 = vpop.permute.xlu0 %2630 }
 0x455   : > { %2648 = vst.msk [vmem:[%s4060_s21 + $0x6c] sm:$0x1] %vm2004_vm12, %v2631_v5 }
 0x457   : > { %v2188_v24 = vpop.permute.xlu1 %2187 }
 0x458   : > { %2204 = vst.msk [vmem:[%s4060_s21 + $0x75] sm:$0x1] %vm2004_vm12, %v2188_v24  ;;  %v2804_v21 = vpop.permute.xlu0 %2803 }
 0x459   : > { %v2831_v54 = vsel %vm2829_vm9, %v2802_v7, %v2804_v21 }
 0x45a   : > { %2847 = vst.msk [vmem:[%s4060_s21 + $0x1e] sm:$0x1] %vm2004_vm12, %v2831_v54 }
 0x45b   : > { %v2220_v32 = vpop.permute.xlu1 %2219 }
 0x45c   : > { %2236 = vst.msk [vmem:[%s4060_s21 + $0x76] sm:$0x1] %vm2004_vm12, %v2220_v32  ;;  %v2808_v62 = vpop.permute.xlu0 %2807 }
 0x45d   : > { %v2832_v55 = vsel %vm2829_vm9, %v2806_v35, %v2808_v62 }
 0x45e   : > { %2848 = vst.msk [vmem:[%s4060_s21 + $0x2e] sm:$0x1] %vm2004_vm12, %v2832_v55 }
 0x45f   : > { %v2367_v56 = vpop.permute.xlu1 %2366 }
 0x460   : > { %v2820_v39 = vpop.permute.xlu0 %2819 }
 0x461   : > { %v2835_v33 = vsel %vm2829_vm9, %v2818_v63, %v2820_v39 }
 0x462   : > { %2851 = vst.msk [vmem:[%s4060_s21 + $0x5e] sm:$0x1] %vm2004_vm12, %v2835_v33 }
 0x463   : > { %v2383_v29 = vpop.permute.xlu1 %2382 }
 0x464   : > { %v2824_v23 = vpop.permute.xlu0 %2823 }
 0x465   : > { %v2836_v8 = vsel %vm2829_vm9, %v2822_v26, %v2824_v23 }
 0x466   : > { %2852 = vst.msk [vmem:[%s4060_s21 + $0x6e] sm:$0x1] %vm2004_vm12, %v2836_v8 }
 0x467   : > { %v2505_v61 = vpop.permute.xlu1 %2504 }
 0x468   : > { %2521 = vst.msk [vmem:[%s4060_s21 + $0x78] sm:$0x1] %vm2004_vm12, %v2505_v61  ;;  %v2663_v50 = vpop.permute.xlu0 %2662 }
 0x469   : > { %2680 = vst.msk [vmem:[%s4060_s21 + $0x6d] sm:$0x1] %vm2004_vm12, %v2663_v50 }
 0x46b   : > { %v2537_v36 = vpop.permute.xlu1 %2536 }
 0x46c   : > { %2553 = vst.msk [vmem:[%s4060_s21 + $0x79] sm:$0x1] %vm2004_vm12, %v2537_v36  ;;  %v2365_v51 = vpop.permute.xlu0 %2364 }
 0x46d   : > { %v2388_v41 = vsel %vm2384_vm0, %v2365_v51, %v2367_v56 }
 0x46e   : > { %2404 = vst.msk [vmem:[%s4060_s21 + $0x37] sm:$0x1] %vm2004_vm12, %v2388_v41 }
 0x46f   : > { %v2569_v12 = vpop.permute.xlu1 %2568 }
 0x470   : > { %2585 = vst.msk [vmem:[%s4060_s21 + $0x7a] sm:$0x1] %vm2004_vm12, %v2569_v12  ;;  %v2381_v16 = vpop.permute.xlu0 %2380 }
 0x471   : > { %v2392_v13 = vsel %vm2384_vm0, %v2381_v16, %v2383_v29 }
 0x472   : > { %2408 = vst.msk [vmem:[%s4060_s21 + $0x77] sm:$0x1] %vm2004_vm12, %v2392_v13 }
 0x473   : > { %v2601_v4 = vpop.permute.xlu1 %2600 }
 0x474   : > { %2617 = vst.msk [vmem:[%s4060_s21 + $0x7b] sm:$0x1] %vm2004_vm12, %v2601_v4  ;;  %v2812_v43 = vpop.permute.xlu0 %2811 }
 0x477   : > { %v2633_v30 = vpop.permute.xlu1 %2632 }
 0x478   : > { %2649 = vst.msk [vmem:[%s4060_s21 + $0x7c] sm:$0x1] %vm2004_vm12, %v2633_v30  ;;  %v2828_v42 = vpop.permute.xlu0 %2827 }
 0x47b   : > { %v2810_v18 = vpop.permute.xlu1 %2809 }
 0x47c   : > { %v2833_v10 = vsel %vm2829_vm9, %v2810_v18, %v2812_v43  ;;  %v2948_v22 = vpop.permute.xlu0 %2947 }
 0x47d   : > { %2849 = vst.msk [vmem:[%s4060_s21 + $0x3e] sm:$0x1] %vm2004_vm12, %v2833_v10  ;;  %2965 = vst.msk [vmem:[%s4060_s21 + $0x6f] sm:$0x1] %vm2004_vm12, %v2948_v22 }
 0x47f   : > { %v2826_v11 = vpop.permute.xlu1 %2825 }
 0x480   : > { %v2837_v37 = vsel %vm2829_vm9, %v2826_v11, %v2828_v42 }
 0x481   : > { %2853 = vst.msk [vmem:[%s4060_s21 + $0x7e] sm:$0x1] %vm2004_vm12, %v2837_v37 }
 0x483   : > { %v2665_v19 = vpop.permute.xlu1 %2664 }
 0x484   : > { %2681 = vst.msk [vmem:[%s4060_s21 + $0x7d] sm:$0x1] %vm2004_vm12, %v2665_v19 }
 0x487   : > { %v2950_v28 = vpop.permute.xlu1 %2949 }
 0x488   : > { %2966 = vst.msk [vmem:[%s4060_s21 + $0x7f] sm:$0x1] %vm2004_vm12, %v2950_v28 }
 0x489 PF: > { %s13_s12 = sadd.s32 1, %s3234_s12  }
 0x48a   : > { %p10_p4 = scmp.ge.s32.totalorder %s13_s12, 4  }
 0x48c   :  { %12 = sbr.rel (!%p10_p4) target bundleno = 1 (0x1), region = 64 }

</bundles_post_ra>
